<compile_context>
chip_gen: v6e
topology: v6e:2x2x1
jax: 0.10.0
libtpu: 0.0.40
codegen_flags: <defaults>
</compile_context>

<pallas_src>
import functools
import math

import jax
import jax.numpy as jnp
from jax.experimental import pallas as pl
from jax.experimental.pallas import tpu as pltpu

LANE = 128
SUBLANE = 8


def _round_up(v, m):
    return ((v + m - 1) // m) * m


# ----------------------------- fused kernel --------------------------------

def _graph_encoder_kernel(escale_ref, x_ref, adj_ref, *rest, kdims, nonlins):
    """Fused stack of LorentzGraphConvolution layers, fully VMEM-resident.

    escale_ref : (L,)     f32 SMEM — exp(scale) per layer
    x_ref      : (Np, P)  f32 VMEM — padded node features
    adj_ref    : (Np, Np) f32 VMEM — padded dense adjacency
    rest       : L compact weight refs (k_i, P) f32 VMEM, then the output ref (Np, P)
    """
    n_layers = len(nonlins)
    w_refs = rest[:n_layers]
    o_ref = rest[n_layers]

    x = x_ref[...]                        # (Np, P)
    adj = adj_ref[...]                    # (Np, Np)

    col = jax.lax.broadcasted_iota(jnp.int32, x.shape, 1)
    is_time = col == 0                    # column 0 is the Lorentz time axis

    for li in range(n_layers):
        k = kdims[li]                     # static, per-layer compact contraction width
        nonlin = nonlins[li]
        w = w_refs[li][...]               # (k, P)
        e_scale = escale_ref[li]          # scalar f32 (= exp(scale)) from SMEM

        # ---------------- LorentzLinear (use_bias=False, eval-mode dropout) ----------
        xin = jnp.maximum(x, 0.0) if nonlin else x          # ReLU nonlinearity
        # Columns >= k of xin are zero by construction, so contracting over the compact
        # (k, P) weight is exact. bf16 MXU operands, f32 accumulation.
        h = jnp.dot(xin[:, :k].astype(jnp.bfloat16),
                    w.astype(jnp.bfloat16),
                    preferred_element_type=jnp.float32)      # (Np, P)

        h0 = h[:, :1]                                        # time column: static lane slice
        h_space = jnp.where(is_time, 0.0, h)                 # spatial part (time lane zeroed)
        rest_sq = jnp.maximum(
            jnp.sum(h_space * h_space, axis=-1, keepdims=True), 1e-8)
        time = jax.nn.sigmoid(h0) * e_scale + 1.1
        scale_sqrt = jnp.sqrt((time * time - 1.0) / rest_sq)  # exact form (EUP/VPU slack)
        h = jnp.where(is_time, time, h * scale_sqrt)

        # ---------------- LorentzAgg (use_att=False) ----------------
        support = jnp.dot(adj, h, preferred_element_type=jnp.float32)   # f32 matmul
        t = support[:, :1]                                   # time column: static lane slice
        s_space = jnp.where(is_time, 0.0, support)
        space_sq = jnp.sum(s_space * s_space, axis=-1, keepdims=True)
        inner = t * t - space_sq                             # -<s, s>_L
        x = support * jax.lax.rsqrt(jnp.maximum(jnp.abs(inner), 1e-8))

    o_ref[...] = x


# ----------------------------- wrapper --------------------------------------

def graph_encoder_forward(params, x, adj):
    """GraphEncoder.forward: stack of LorentzGraphConvolution layers (fused)."""
    n, d_in0 = x.shape
    n_layers = len(params)

    # Lane-dense feature width shared by all layers, and lane-dense node count.
    dims = [d_in0] + [w.shape[1] for (w, _, _) in params]
    p = _round_up(max(dims), LANE)
    n_pad = _round_up(n, LANE)

    # Zero-pad inputs (padded rows/cols are mathematically inert).
    x_p = jnp.zeros((n_pad, p), jnp.float32).at[:n, :d_in0].set(x)
    adj_p = jnp.zeros((n_pad, n_pad), jnp.float32).at[:n, :n].set(adj)

    # Compact per-layer weights: pad only the input axis to a sublane multiple and the
    # output axis to the shared lane width P (avoids the over-padded (L, P, P) stack).
    w_pads, escales, nonlins, kdims = [], [], [], []
    for (w, scale, nonlin) in params:
        di, do = w.shape
        k = _round_up(di, SUBLANE)
        w_pads.append(jnp.zeros((k, p), jnp.float32).at[:di, :do].set(w))
        escales.append(jnp.exp(scale).reshape(()))   # hoist exp(scale) out of the kernel
        nonlins.append(bool(nonlin))
        kdims.append(int(k))
    escales = jnp.stack(escales).astype(jnp.float32)  # (L,)

    kernel = functools.partial(_graph_encoder_kernel,
                               kdims=tuple(kdims), nonlins=tuple(nonlins))
    out = pl.pallas_call(
        kernel,
        out_shape=jax.ShapeDtypeStruct((n_pad, p), jnp.float32),
        in_specs=[pl.BlockSpec(memory_space=pltpu.MemorySpace.SMEM)]          # exp(scale)
                 + [pl.BlockSpec(memory_space=pltpu.MemorySpace.VMEM)]        # x
                 + [pl.BlockSpec(memory_space=pltpu.MemorySpace.VMEM)]        # adj
                 + [pl.BlockSpec(memory_space=pltpu.MemorySpace.VMEM)] * n_layers,  # weights
        out_specs=pl.BlockSpec(memory_space=pltpu.MemorySpace.VMEM),
        compiler_params=pltpu.CompilerParams(vmem_limit_bytes=48 * 1024 * 1024),
    )(escales, x_p, adj_p, *w_pads)

    d_out_final = params[-1][0].shape[1]
    return out[:n, :d_out_final]


# --------------------------- parameter init --------------------------------

def init_lorentz_linear_params(key, d_in, d_out):
    """Mirror LorentzLinear.reset_parameters (use_bias=False):
    W ~ U(-1/sqrt(d_out), 1/sqrt(d_out)); weights feeding from input feature 0 zeroed;
    scale = log(10)."""
    stdv = 1.0 / math.sqrt(d_out)
    w = jax.random.uniform(key, (d_in, d_out), jnp.float32, minval=-stdv, maxval=stdv)
    w = w.at[0, :].set(0.0)                 # torch zeroes weight[:, 0] (out,in layout)
    scale = jnp.full((1, 1), math.log(10.0), dtype=jnp.float32)
    return w, scale


def init_graph_encoder_params(key, n_layers, in_features, n_hidden, out_dim):
    dims = [in_features] + [n_hidden] * (n_layers - 1) + [out_dim]
    # layer 0 has nonlin=None, the rest use the provided nonlin (ReLU here)
    nonlins = [False] + [True] * (n_layers - 1)
    params = []
    keys = jax.random.split(key, n_layers)
    for li in range(n_layers):
        w, scale = init_lorentz_linear_params(keys[li], dims[li], dims[li + 1])
        params.append((w, scale, nonlins[li]))
    return params


# ------------------------------- main --------------------------------------

if __name__ == "__main__":
    key = jax.random.PRNGKey(0)
    k_x, k_adj, k_p = jax.random.split(key, 3)

    N = 64            # number of graph nodes
    IN_FEATURES = 16
    N_HIDDEN = 32
    OUT_DIM = 16
    N_LAYERS = 3

    # Node features (synthetic Lorentz-ish input; math does not require valid points).
    x = jax.random.normal(k_x, (N, IN_FEATURES), dtype=jnp.float32)

    # Dense adjacency with self-loops, row-normalized (stand-in for edge_index aggregation).
    a = (jax.random.uniform(k_adj, (N, N)) < 0.1).astype(jnp.float32)
    a = jnp.maximum(a, a.T) + jnp.eye(N, dtype=jnp.float32)
    adj = a / jnp.sum(a, axis=-1, keepdims=True)

    params = init_graph_encoder_params(k_p, N_LAYERS, IN_FEATURES, N_HIDDEN, OUT_DIM)

    out = graph_encoder_forward(params, x, adj)
    out = jax.block_until_ready(out)

    assert out.shape == (N, OUT_DIM), out.shape
    assert bool(jnp.all(jnp.isfinite(out)))
    print("KERNEL_OK")
</pallas_src>

<mosaic_0001>
module attributes {stable_mosaic.version = 11 : i64} {
  func.func @_graph_encoder_kernel(%arg0: memref<3xf32, #tpu.memory_space<smem>>, %arg1: memref<128x128xf32, #tpu.memory_space<vmem>>, %arg2: memref<128x128xf32, #tpu.memory_space<vmem>>, %arg3: memref<16x128xf32, #tpu.memory_space<vmem>>, %arg4: memref<32x128xf32, #tpu.memory_space<vmem>>, %arg5: memref<32x128xf32, #tpu.memory_space<vmem>>, %arg6: memref<128x128xf32, #tpu.memory_space<vmem>>) attributes {dimension_semantics = [], scalar_prefetch = 0 : i64, scratch_operands = 0 : i64, tpu.core_type = #tpu.core_type<tc>} {
    %c0 = arith.constant 0 : index
    %c0_0 = arith.constant 0 : index
    %0 = vector.load %arg1[%c0, %c0_0] : memref<128x128xf32, #tpu.memory_space<vmem>>, vector<128x128xf32>
    %c0_1 = arith.constant 0 : index
    %c0_2 = arith.constant 0 : index
    %1 = vector.load %arg2[%c0_1, %c0_2] : memref<128x128xf32, #tpu.memory_space<vmem>>, vector<128x128xf32>
    %2 = tpu.iota {dimensions = array<i32: 1>} : vector<128x128xi32>
    %c0_i32 = arith.constant 0 : i32
    %3 = vector.broadcast %c0_i32 : i32 to vector<128x128xi32>
    %4 = arith.cmpi eq, %2, %3 : vector<128x128xi32>
    %c0_3 = arith.constant 0 : index
    %c0_4 = arith.constant 0 : index
    %5 = vector.load %arg3[%c0_3, %c0_4] : memref<16x128xf32, #tpu.memory_space<vmem>>, vector<16x128xf32>
    %c0_5 = arith.constant 0 : index
    %6 = memref.load %arg0[%c0_5] : memref<3xf32, #tpu.memory_space<smem>>
    %7 = vector.extract_strided_slice %0 {offsets = [0, 0], sizes = [128, 16], strides = [1, 1]} : vector<128x128xf32> to vector<128x16xf32>
    %8 = arith.truncf %7 : vector<128x16xf32> to vector<128x16xbf16>
    %9 = arith.truncf %5 : vector<16x128xf32> to vector<16x128xbf16>
    %cst = arith.constant dense<0.000000e+00> : vector<128x128xf32>
    %10 = tpu.matmul %8, %9, %cst {dimension_numbers = #tpu.dot_dimension_numbers<[1], [0], [0], [1], [0, 0, 1, 1], [], []>} : vector<128x16xbf16>, vector<16x128xbf16>, vector<128x128xf32> -> vector<128x128xf32>
    %11 = vector.extract_strided_slice %10 {offsets = [0, 0], sizes = [128, 1], strides = [1, 1]} : vector<128x128xf32> to vector<128x1xf32>
    %cst_6 = arith.constant 0.000000e+00 : f32
    %12 = vector.broadcast %cst_6 : f32 to vector<128x128xf32>
    %13 = arith.select %4, %12, %10 : vector<128x128xi1>, vector<128x128xf32>
    %14 = arith.mulf %13, %13 : vector<128x128xf32>
    %cst_7 = arith.constant dense<0.000000e+00> : vector<128xf32>
    %15 = vector.multi_reduction <add>, %14, %cst_7 [1] : vector<128x128xf32> to vector<128xf32>
    %16 = vector.shape_cast %15 : vector<128xf32> to vector<128x1xf32>
    %cst_8 = arith.constant 9.99999993E-9 : f32
    %17 = vector.broadcast %cst_8 : f32 to vector<128x1xf32>
    %18 = arith.maximumf %16, %17 : vector<128x1xf32>
    %19 = arith.negf %11 : vector<128x1xf32>
    %20 = math.exp %19 : vector<128x1xf32>
    %cst_9 = arith.constant 1.000000e+00 : f32
    %21 = vector.broadcast %cst_9 : f32 to vector<128x1xf32>
    %22 = arith.addf %21, %20 : vector<128x1xf32>
    %23 = arith.divf %21, %22 : vector<128x1xf32>
    %24 = vector.broadcast %6 : f32 to vector<128x1xf32>
    %25 = arith.mulf %23, %24 : vector<128x1xf32>
    %cst_10 = arith.constant 1.100000e+00 : f32
    %26 = vector.broadcast %cst_10 : f32 to vector<128x1xf32>
    %27 = arith.addf %25, %26 : vector<128x1xf32>
    %28 = arith.mulf %27, %27 : vector<128x1xf32>
    %cst_11 = arith.constant 1.000000e+00 : f32
    %29 = vector.broadcast %cst_11 : f32 to vector<128x1xf32>
    %30 = arith.subf %28, %29 : vector<128x1xf32>
    %31 = arith.divf %30, %18 : vector<128x1xf32>
    %32 = math.sqrt %31 : vector<128x1xf32>
    %33 = vector.broadcast %32 : vector<128x1xf32> to vector<128x128xf32>
    %34 = arith.mulf %10, %33 : vector<128x128xf32>
    %35 = vector.shape_cast %27 : vector<128x1xf32> to vector<128x1xf32>
    %36 = vector.broadcast %35 : vector<128x1xf32> to vector<128x128xf32>
    %37 = arith.select %4, %36, %34 : vector<128x128xi1>, vector<128x128xf32>
    %cst_12 = arith.constant dense<0.000000e+00> : vector<128x128xf32>
    %38 = tpu.matmul %1, %37, %cst_12 {dimension_numbers = #tpu.dot_dimension_numbers<[1], [0], [0], [1], [0, 0, 1, 1], [], []>} : vector<128x128xf32>, vector<128x128xf32>, vector<128x128xf32> -> vector<128x128xf32>
    %39 = vector.extract_strided_slice %38 {offsets = [0, 0], sizes = [128, 1], strides = [1, 1]} : vector<128x128xf32> to vector<128x1xf32>
    %cst_13 = arith.constant 0.000000e+00 : f32
    %40 = vector.broadcast %cst_13 : f32 to vector<128x128xf32>
    %41 = arith.select %4, %40, %38 : vector<128x128xi1>, vector<128x128xf32>
    %42 = arith.mulf %41, %41 : vector<128x128xf32>
    %cst_14 = arith.constant dense<0.000000e+00> : vector<128xf32>
    %43 = vector.multi_reduction <add>, %42, %cst_14 [1] : vector<128x128xf32> to vector<128xf32>
    %44 = vector.shape_cast %43 : vector<128xf32> to vector<128x1xf32>
    %45 = arith.mulf %39, %39 : vector<128x1xf32>
    %46 = arith.subf %45, %44 : vector<128x1xf32>
    %47 = math.absf %46 : vector<128x1xf32>
    %cst_15 = arith.constant 9.99999993E-9 : f32
    %48 = vector.broadcast %cst_15 : f32 to vector<128x1xf32>
    %49 = arith.maximumf %47, %48 : vector<128x1xf32>
    %50 = math.rsqrt %49 : vector<128x1xf32>
    %51 = vector.broadcast %50 : vector<128x1xf32> to vector<128x128xf32>
    %52 = arith.mulf %38, %51 : vector<128x128xf32>
    %c0_16 = arith.constant 0 : index
    %c0_17 = arith.constant 0 : index
    %53 = vector.load %arg4[%c0_16, %c0_17] : memref<32x128xf32, #tpu.memory_space<vmem>>, vector<32x128xf32>
    %c1 = arith.constant 1 : index
    %54 = memref.load %arg0[%c1] : memref<3xf32, #tpu.memory_space<smem>>
    %cst_18 = arith.constant 0.000000e+00 : f32
    %55 = vector.broadcast %cst_18 : f32 to vector<128x128xf32>
    %56 = arith.maximumf %52, %55 : vector<128x128xf32>
    %57 = vector.extract_strided_slice %56 {offsets = [0, 0], sizes = [128, 32], strides = [1, 1]} : vector<128x128xf32> to vector<128x32xf32>
    %58 = arith.truncf %57 : vector<128x32xf32> to vector<128x32xbf16>
    %59 = arith.truncf %53 : vector<32x128xf32> to vector<32x128xbf16>
    %cst_19 = arith.constant dense<0.000000e+00> : vector<128x128xf32>
    %60 = tpu.matmul %58, %59, %cst_19 {dimension_numbers = #tpu.dot_dimension_numbers<[1], [0], [0], [1], [0, 0, 1, 1], [], []>} : vector<128x32xbf16>, vector<32x128xbf16>, vector<128x128xf32> -> vector<128x128xf32>
    %61 = vector.extract_strided_slice %60 {offsets = [0, 0], sizes = [128, 1], strides = [1, 1]} : vector<128x128xf32> to vector<128x1xf32>
    %cst_20 = arith.constant 0.000000e+00 : f32
    %62 = vector.broadcast %cst_20 : f32 to vector<128x128xf32>
    %63 = arith.select %4, %62, %60 : vector<128x128xi1>, vector<128x128xf32>
    %64 = arith.mulf %63, %63 : vector<128x128xf32>
    %cst_21 = arith.constant dense<0.000000e+00> : vector<128xf32>
    %65 = vector.multi_reduction <add>, %64, %cst_21 [1] : vector<128x128xf32> to vector<128xf32>
    %66 = vector.shape_cast %65 : vector<128xf32> to vector<128x1xf32>
    %cst_22 = arith.constant 9.99999993E-9 : f32
    %67 = vector.broadcast %cst_22 : f32 to vector<128x1xf32>
    %68 = arith.maximumf %66, %67 : vector<128x1xf32>
    %69 = arith.negf %61 : vector<128x1xf32>
    %70 = math.exp %69 : vector<128x1xf32>
    %cst_23 = arith.constant 1.000000e+00 : f32
    %71 = vector.broadcast %cst_23 : f32 to vector<128x1xf32>
    %72 = arith.addf %71, %70 : vector<128x1xf32>
    %73 = arith.divf %71, %72 : vector<128x1xf32>
    %74 = vector.broadcast %54 : f32 to vector<128x1xf32>
    %75 = arith.mulf %73, %74 : vector<128x1xf32>
    %cst_24 = arith.constant 1.100000e+00 : f32
    %76 = vector.broadcast %cst_24 : f32 to vector<128x1xf32>
    %77 = arith.addf %75, %76 : vector<128x1xf32>
    %78 = arith.mulf %77, %77 : vector<128x1xf32>
    %cst_25 = arith.constant 1.000000e+00 : f32
    %79 = vector.broadcast %cst_25 : f32 to vector<128x1xf32>
    %80 = arith.subf %78, %79 : vector<128x1xf32>
    %81 = arith.divf %80, %68 : vector<128x1xf32>
    %82 = math.sqrt %81 : vector<128x1xf32>
    %83 = vector.broadcast %82 : vector<128x1xf32> to vector<128x128xf32>
    %84 = arith.mulf %60, %83 : vector<128x128xf32>
    %85 = vector.shape_cast %77 : vector<128x1xf32> to vector<128x1xf32>
    %86 = vector.broadcast %85 : vector<128x1xf32> to vector<128x128xf32>
    %87 = arith.select %4, %86, %84 : vector<128x128xi1>, vector<128x128xf32>
    %cst_26 = arith.constant dense<0.000000e+00> : vector<128x128xf32>
    %88 = tpu.matmul %1, %87, %cst_26 {dimension_numbers = #tpu.dot_dimension_numbers<[1], [0], [0], [1], [0, 0, 1, 1], [], []>} : vector<128x128xf32>, vector<128x128xf32>, vector<128x128xf32> -> vector<128x128xf32>
    %89 = vector.extract_strided_slice %88 {offsets = [0, 0], sizes = [128, 1], strides = [1, 1]} : vector<128x128xf32> to vector<128x1xf32>
    %cst_27 = arith.constant 0.000000e+00 : f32
    %90 = vector.broadcast %cst_27 : f32 to vector<128x128xf32>
    %91 = arith.select %4, %90, %88 : vector<128x128xi1>, vector<128x128xf32>
    %92 = arith.mulf %91, %91 : vector<128x128xf32>
    %cst_28 = arith.constant dense<0.000000e+00> : vector<128xf32>
    %93 = vector.multi_reduction <add>, %92, %cst_28 [1] : vector<128x128xf32> to vector<128xf32>
    %94 = vector.shape_cast %93 : vector<128xf32> to vector<128x1xf32>
    %95 = arith.mulf %89, %89 : vector<128x1xf32>
    %96 = arith.subf %95, %94 : vector<128x1xf32>
    %97 = math.absf %96 : vector<128x1xf32>
    %cst_29 = arith.constant 9.99999993E-9 : f32
    %98 = vector.broadcast %cst_29 : f32 to vector<128x1xf32>
    %99 = arith.maximumf %97, %98 : vector<128x1xf32>
    %100 = math.rsqrt %99 : vector<128x1xf32>
    %101 = vector.broadcast %100 : vector<128x1xf32> to vector<128x128xf32>
    %102 = arith.mulf %88, %101 : vector<128x128xf32>
    %c0_30 = arith.constant 0 : index
    %c0_31 = arith.constant 0 : index
    %103 = vector.load %arg5[%c0_30, %c0_31] : memref<32x128xf32, #tpu.memory_space<vmem>>, vector<32x128xf32>
    %c2 = arith.constant 2 : index
    %104 = memref.load %arg0[%c2] : memref<3xf32, #tpu.memory_space<smem>>
    %cst_32 = arith.constant 0.000000e+00 : f32
    %105 = vector.broadcast %cst_32 : f32 to vector<128x128xf32>
    %106 = arith.maximumf %102, %105 : vector<128x128xf32>
    %107 = vector.extract_strided_slice %106 {offsets = [0, 0], sizes = [128, 32], strides = [1, 1]} : vector<128x128xf32> to vector<128x32xf32>
    %108 = arith.truncf %107 : vector<128x32xf32> to vector<128x32xbf16>
    %109 = arith.truncf %103 : vector<32x128xf32> to vector<32x128xbf16>
    %cst_33 = arith.constant dense<0.000000e+00> : vector<128x128xf32>
    %110 = tpu.matmul %108, %109, %cst_33 {dimension_numbers = #tpu.dot_dimension_numbers<[1], [0], [0], [1], [0, 0, 1, 1], [], []>} : vector<128x32xbf16>, vector<32x128xbf16>, vector<128x128xf32> -> vector<128x128xf32>
    %111 = vector.extract_strided_slice %110 {offsets = [0, 0], sizes = [128, 1], strides = [1, 1]} : vector<128x128xf32> to vector<128x1xf32>
    %cst_34 = arith.constant 0.000000e+00 : f32
    %112 = vector.broadcast %cst_34 : f32 to vector<128x128xf32>
    %113 = arith.select %4, %112, %110 : vector<128x128xi1>, vector<128x128xf32>
    %114 = arith.mulf %113, %113 : vector<128x128xf32>
    %cst_35 = arith.constant dense<0.000000e+00> : vector<128xf32>
    %115 = vector.multi_reduction <add>, %114, %cst_35 [1] : vector<128x128xf32> to vector<128xf32>
    %116 = vector.shape_cast %115 : vector<128xf32> to vector<128x1xf32>
    %cst_36 = arith.constant 9.99999993E-9 : f32
    %117 = vector.broadcast %cst_36 : f32 to vector<128x1xf32>
    %118 = arith.maximumf %116, %117 : vector<128x1xf32>
    %119 = arith.negf %111 : vector<128x1xf32>
    %120 = math.exp %119 : vector<128x1xf32>
    %cst_37 = arith.constant 1.000000e+00 : f32
    %121 = vector.broadcast %cst_37 : f32 to vector<128x1xf32>
    %122 = arith.addf %121, %120 : vector<128x1xf32>
    %123 = arith.divf %121, %122 : vector<128x1xf32>
    %124 = vector.broadcast %104 : f32 to vector<128x1xf32>
    %125 = arith.mulf %123, %124 : vector<128x1xf32>
    %cst_38 = arith.constant 1.100000e+00 : f32
    %126 = vector.broadcast %cst_38 : f32 to vector<128x1xf32>
    %127 = arith.addf %125, %126 : vector<128x1xf32>
    %128 = arith.mulf %127, %127 : vector<128x1xf32>
    %cst_39 = arith.constant 1.000000e+00 : f32
    %129 = vector.broadcast %cst_39 : f32 to vector<128x1xf32>
    %130 = arith.subf %128, %129 : vector<128x1xf32>
    %131 = arith.divf %130, %118 : vector<128x1xf32>
    %132 = math.sqrt %131 : vector<128x1xf32>
    %133 = vector.broadcast %132 : vector<128x1xf32> to vector<128x128xf32>
    %134 = arith.mulf %110, %133 : vector<128x128xf32>
    %135 = vector.shape_cast %127 : vector<128x1xf32> to vector<128x1xf32>
    %136 = vector.broadcast %135 : vector<128x1xf32> to vector<128x128xf32>
    %137 = arith.select %4, %136, %134 : vector<128x128xi1>, vector<128x128xf32>
    %cst_40 = arith.constant dense<0.000000e+00> : vector<128x128xf32>
    %138 = tpu.matmul %1, %137, %cst_40 {dimension_numbers = #tpu.dot_dimension_numbers<[1], [0], [0], [1], [0, 0, 1, 1], [], []>} : vector<128x128xf32>, vector<128x128xf32>, vector<128x128xf32> -> vector<128x128xf32>
    %139 = vector.extract_strided_slice %138 {offsets = [0, 0], sizes = [128, 1], strides = [1, 1]} : vector<128x128xf32> to vector<128x1xf32>
    %cst_41 = arith.constant 0.000000e+00 : f32
    %140 = vector.broadcast %cst_41 : f32 to vector<128x128xf32>
    %141 = arith.select %4, %140, %138 : vector<128x128xi1>, vector<128x128xf32>
    %142 = arith.mulf %141, %141 : vector<128x128xf32>
    %cst_42 = arith.constant dense<0.000000e+00> : vector<128xf32>
    %143 = vector.multi_reduction <add>, %142, %cst_42 [1] : vector<128x128xf32> to vector<128xf32>
    %144 = vector.shape_cast %143 : vector<128xf32> to vector<128x1xf32>
    %145 = arith.mulf %139, %139 : vector<128x1xf32>
    %146 = arith.subf %145, %144 : vector<128x1xf32>
    %147 = math.absf %146 : vector<128x1xf32>
    %cst_43 = arith.constant 9.99999993E-9 : f32
    %148 = vector.broadcast %cst_43 : f32 to vector<128x1xf32>
    %149 = arith.maximumf %147, %148 : vector<128x1xf32>
    %150 = math.rsqrt %149 : vector<128x1xf32>
    %151 = vector.broadcast %150 : vector<128x1xf32> to vector<128x128xf32>
    %152 = arith.mulf %138, %151 : vector<128x128xf32>
    %c0_44 = arith.constant 0 : index
    %c0_45 = arith.constant 0 : index
    %153 = vector.load %arg6[%c0_44, %c0_45] : memref<128x128xf32, #tpu.memory_space<vmem>>, vector<128x128xf32>
    tpu.vector_store %arg6[%c0_44, %c0_45], %152 {strides = array<i32>} : memref<128x128xf32, #tpu.memory_space<vmem>>, vector<128x128xf32>,
    return
  }
}

</mosaic_0001>

<bundles_post_ra>
// kernel: tpu_custom_call.1
= control target key start
LH: loop header
LB: loop body
LE: loop exit
PB: predicated region body
PF: predicated region fallthrough
CT: control target
= control target key end

     0   :  { %11 = vsyncpa [#allocation5], 0  ;;  %s6182_s0 = inlined_call_operand.hbm [shape: f32[3], index: 0, kind: input, shape index: {}]   ;;  %s6183_s1 = inlined_call_operand.hbm [shape: f32[128,128], index: 1, kind: input, shape index: {}]   ;;  %s6184_s2 = inlined_call_operand.hbm [shape: f32[128,128], index: 2, kind: input, shape index: {}]   ;;  %s6185_s3 = inlined_call_operand.hbm [shape: f32[16,128], index: 3, kind: input, shape index: {}]   ;;  %s6186_s4 = inlined_call_operand.hbm [shape: f32[32,128], index: 4, kind: input, shape index: {}]   ;;  %s6187_s5 = inlined_call_operand.hbm [shape: f32[32,128], index: 5, kind: input, shape index: {}]   ;;  %s6188_s6 = inlined_call_operand.hbm [shape: f32[128,128], index: 6, kind: output, shape index: {}]  }
   0x1   :  { %12 = vsyncpa [#allocation3], 0 }
   0x2   :  { %13 = vsyncpa [#allocation8], 0 }
   0x3   :  { %14 = vsyncpa [#allocation11], 0 }
   0x4   :  { %15 = vsyncpa [#allocation4], 0  ;;  %s4665_s21 = smov [#allocation7]   ;;  %s4666_s23 = smov [#allocation10]  }
   0x5   :  { %s41_s22 = sshll.u32 %s4665_s21, 4  ;;  %s65_s24 = sshll.u32 %s4666_s23, 4  ;;  %s42_s22 = int_to_ptr.vmem [resolvable:$true] %s41_s22  ;;  %s66_s24 = int_to_ptr.vmem [resolvable:$true] %s65_s24 }
   0x6   :  { %s4535_s25 = scalar_lea.vmem %s42_s22, 2048  ;;  %p4540_p1 = scmp.lt.s32.totalorder %s42_s22, %s42_s22 }
   0x7   :  { %p4536_p0 = scmp.ne.s32.totalorder %s42_s22, %s4535_s25  ;;  %p4541_p2 = scmp.lt.s32.totalorder %s4535_s25, %s4535_s25 }
   0x9   :  { %p4542_p3 = por %p4541_p2, %p4540_p1 }
   0xb   :  { %p4543_p4 = pnand %p4542_p3, %p4536_p0 }
   0xd   :  { %4546 = shalt.err (!%p4543_p4)
}
   0xe   :  { %s4667_s26 = smov 128   ;;  %s4668_s27 = smov 8  }
   0xf   :  { %47 = dma.hbm_to_vmem [thread:$0]  %s6184_s2, 2048, %s42_s22, [#allocation8], %s4667_s26, %s4667_s26, %s4668_s27  }
  0x10   :  { %s4555_s30 = scalar_lea.vmem %s66_s24, 512  ;;  %p4560_p6 = scmp.lt.s32.totalorder %s66_s24, %s66_s24 }
  0x11   :  { %p4556_p5 = scmp.ne.s32.totalorder %s66_s24, %s4555_s30  ;;  %p4561_p7 = scmp.lt.s32.totalorder %s4555_s30, %s4555_s30 }
  0x13   :  { %p4562_p8 = por %p4561_p7, %p4560_p6 }
  0x15   :  { %p4563_p9 = pnand %p4562_p8, %p4556_p5 }
  0x17   :  { %4566 = shalt.err (!%p4563_p9)
}
  0x18   :  { %71 = dma.hbm_to_vmem [thread:$0]  %s6186_s4, 512, %s66_s24, [#allocation11], %s4667_s26, %s4667_s26, %s4668_s27  }
  0x19   :  { %s4669_s9 = smov [#allocation2]   ;;  %s4670_s2 = smov [#allocation6]  }
  0x1a   :  { %23 = dma.hbm_to_smem %s6182_s0, 16, %s4669_s9, [#allocation5]  }
  0x1b   :  { %s29_s12 = sshll.u32 %s4670_s2, 4  ;;  %s4671_s13 = smov [#allocation9]   ;;  %s30_s12 = int_to_ptr.vmem [resolvable:$true] %s29_s12 }
  0x1c   :  { %s53_s14 = sshll.u32 %s4671_s13, 4  ;;  %s4583_s15 = scalar_lea.vmem %s30_s12, 2048  ;;  %s54_s14 = int_to_ptr.vmem [resolvable:$true] %s53_s14 }
  0x1d   :  { %p4584_p10 = scmp.ne.s32.totalorder %s30_s12, %s4583_s15  ;;  %p4588_p11 = scmp.lt.s32.totalorder %s30_s12, %s30_s12 }
  0x1e   :  { %p4589_p12 = scmp.lt.s32.totalorder %s4583_s15, %s4583_s15 }
  0x20   :  { %p4590_p13 = por %p4589_p12, %p4588_p11 }
  0x22   :  { %p4591_p0 = pnand %p4590_p13, %p4584_p10 }
  0x24   :  { %4594 = shalt.err (!%p4591_p0)
}
  0x25   :  { %35 = dma.hbm_to_vmem [thread:$0]  %s6183_s1, 2048, %s30_s12, [#allocation3], %s4667_s26, %s4667_s26, %s4668_s27  }
  0x26   :  { %s4603_s0 = scalar_lea.vmem %s54_s14, 256  ;;  %p4608_p2 = scmp.lt.s32.totalorder %s54_s14, %s54_s14 }
  0x27   :  { %p4604_p1 = scmp.ne.s32.totalorder %s54_s14, %s4603_s0  ;;  %p4609_p3 = scmp.lt.s32.totalorder %s4603_s0, %s4603_s0 }
  0x29   :  { %p4610_p4 = por %p4609_p3, %p4608_p2 }
  0x2b   :  { %p4611_p5 = pnand %p4610_p4, %p4604_p1 }
  0x2d   :  { %4614 = shalt.err (!%p4611_p5)
}
  0x2e   :  { %59 = dma.hbm_to_vmem [thread:$0]  %s6185_s3, 256, %s54_s14, [#allocation8], %s4667_s26, %s4667_s26, %s4668_s27  }
  0x2f   :  { %s4672_s19 = smov [#allocation12]  }
  0x30   :  { %s77_s20 = sshll.u32 %s4672_s19, 4  ;;  %s78_s20 = int_to_ptr.vmem [resolvable:$true] %s77_s20 }
  0x31   :  { %s4623_s21 = scalar_lea.vmem %s78_s20, 512  ;;  %p4628_p7 = scmp.lt.s32.totalorder %s78_s20, %s78_s20 }
  0x32   :  { %p4624_p6 = scmp.ne.s32.totalorder %s78_s20, %s4623_s21  ;;  %p4629_p8 = scmp.lt.s32.totalorder %s4623_s21, %s4623_s21 }
  0x34   :  { %p4630_p9 = por %p4629_p8, %p4628_p7 }
  0x36   :  { %p4631_p10 = pnand %p4630_p9, %p4624_p6 }
  0x38   :  { %4634 = shalt.err (!%p4631_p10)
}
  0x39   :  { %83 = dma.hbm_to_vmem [thread:$0]  %s6187_s5, 512, %s78_s20, [#allocation11], %s4667_s26, %s4667_s26, %s4668_s27  }
  0x3a   :  { %4655 = dma.done.wait [#allocation5], 16  }
  0x3b   :  { %4656 = vsyncadd [#allocation5], 4294967280 }
  0x3c   :  { %4657 = dma.done.wait [#allocation3], 2048  }
  0x3d   :  { %4658 = vsyncadd [#allocation3], 4294965248 }
  0x3e   :  { %4659 = dma.done.wait [#allocation8], 2304  }
  0x3f   :  { %4660 = vsyncadd [#allocation8], 4294964992 }
  0x40   :  { %4661 = dma.done.wait [#allocation11], 1024  }
  0x41   :  { %4662 = vsyncadd [#allocation11], 4294966272 }
  0x42   :  { %102 = sfence }
  0x43   :  { %v139_v0 = vld [vmem:[#allocation9] sm:$0xff]  ;;  %v140_v1 = vld [vmem:[#allocation9 + $0x8] sm:$0xff]  ;;  %vm151_vm0 = vcmask 130048   ;;  %v106_v5 = vld [vmem:[#allocation6 + $0x10] sm:$0xff]  ;;  %v4673_v27 = vmov 0   ;;  %v136_v38 = vlaneseq  ;;  %s141_s3 = sld [smem:[#allocation2]] }
  0x44   :  { %v104_v2 = vld [vmem:[#allocation6] sm:$0xff]  ;;  %v150_v3 = vpack.c.bf16 %v140_v1, %v139_v0  ;;  %v105_v4 = vld [vmem:[#allocation6 + $0x8] sm:$0xff]  ;;  %v107_v6 = vld [vmem:[#allocation6 + $0x18] sm:$0xff]  ;;  %4015 = vset.pattern.permute.xlu1 %v4673_v27  ;;  %4016 = vset.pattern.permute.xlu0 %v4673_v27  ;;  %s3540_s5 = sld [smem:[#allocation2 + $0x1]]  ;;  %s4674_s24 = smov [#allocation13]  }
  0x45   :  { %v142_v7 = vpack.c.bf16 %v105_v4, %v104_v2  ;;  %v108_v8 = vld [vmem:[#allocation6 + $0x20] sm:$0xff]  ;;  %v109_v9 = vld [vmem:[#allocation6 + $0x28] sm:$0xff]  ;;  %v143_v10 = vpack.c.bf16 %v107_v6, %v106_v5  ;;  %v110_v12 = vld [vmem:[#allocation6 + $0x30] sm:$0xff]  ;;  %v4775_v41 = vand.u32 127, %v136_v38  ;;  %s3581_s23 = sld [smem:[#allocation2 + $0x2]]  ;;  %s3485_s25 = sshll.u32 %s4674_s24, 4  ;;  %s3486_s25 = int_to_ptr.vmem [resolvable:$true] %s3485_s25 }
  0x46   :  { %3747 = vmatprep.subr.bf16.mxu0 %v150_v3  ;;  %v144_v11 = vpack.c.bf16 %v109_v9, %v108_v8  ;;  %v111_v13 = vld [vmem:[#allocation6 + $0x38] sm:$0xff]  ;;  %v112_v14 = vld [vmem:[#allocation6 + $0x40] sm:$0xff]  ;;  %v113_v15 = vld [vmem:[#allocation6 + $0x48] sm:$0xff]  ;;  %s4635_s28 = scalar_lea.vmem %s3486_s25, 2048  ;;  %p4640_p12 = scmp.lt.s32.totalorder %s3486_s25, %s3486_s25 }
  0x47   :  { %3748 = vmatpush3.bf16.msra.mxu0 %v150_v3  ;;  %3749 = vmatprep.mubr.msk.bf16.mxu0 %vm151_vm0, %v142_v7  ;;  %v145_v16 = vpack.c.bf16 %v111_v13, %v110_v12  ;;  %v146_v17 = vpack.c.bf16 %v113_v15, %v112_v14  ;;  %v114_v18 = vld [vmem:[#allocation6 + $0x50] sm:$0xff]  ;;  %v115_v19 = vld [vmem:[#allocation6 + $0x58] sm:$0xff]  ;;  %v116_v20 = vld [vmem:[#allocation6 + $0x60] sm:$0xff]  ;;  %vm138_vm1 = vcmp.eq.s32.totalorder %v4775_v41, 0  ;;  %p4636_p11 = scmp.ne.s32.totalorder %s3486_s25, %s4635_s28  ;;  %p4641_p13 = scmp.lt.s32.totalorder %s4635_s28, %s4635_s28 }
  0x48   :  { %v117_v21 = vld [vmem:[#allocation6 + $0x68] sm:$0xff]  ;;  %v147_v22 = vpack.c.bf16 %v115_v19, %v114_v18  ;;  %v118_v24 = vld [vmem:[#allocation6 + $0x70] sm:$0xff]  ;;  %v119_v25 = vld [vmem:[#allocation6 + $0x78] sm:$0xff] }
  0x49   :  { %v148_v23 = vpack.c.bf16 %v117_v21, %v116_v20  ;;  %v149_v26 = vpack.c.bf16 %v119_v25, %v118_v24  ;;  %p4642_p0 = por %p4641_p13, %p4640_p12 }
  0x4a   :  { %3750 = vmatmul.mubr.msk.bf16.vlgmr.msra.gmra.mxu0 %vm151_vm0, %v143_v10 }
  0x4b   :  { %3753 = vmatprep.mubr.msk.bf16.mxu0 %vm151_vm0, %v144_v11  ;;  %p4643_p1 = pnand %p4642_p0, %p4636_p11 }
  0x52   :  { %3754 = vmatmul.mubr.msk.bf16.gmra.mxu0 %vm151_vm0, %v145_v16 }
  0x53   :  { %3757 = vmatprep.mubr.msk.bf16.mxu0 %vm151_vm0, %v146_v17 }
  0x5a   :  { %3758 = vmatmul.mubr.msk.bf16.gmra.mxu0 %vm151_vm0, %v147_v22 }
  0x5b   :  { %3761 = vmatprep.mubr.msk.bf16.mxu0 %vm151_vm0, %v148_v23 }
  0x62   :  { %3762 = vmatmul.mubr.msk.bf16.gmra.mxu0 %vm151_vm0, %v149_v26 }
 0x10a   :  { %v4751_v28 = vpop.f32.mrf.mxu0 }
 0x10b   :  { %v275_v13 = vsel %vm138_vm1, 0.0, %v4751_v28 }
 0x10c   :  { %v4753_v29 = vpop.f32.mrf.mxu0  ;;  %v291_v18 = vmul.f32 %v275_v13, %v275_v13 }
 0x10d   :  { %v273_v20 = vsel %vm138_vm1, 0.0, %v4753_v29 }
 0x10e   :  { %v4755_v30 = vpop.f32.mrf.mxu0  ;;  %v289_v25 = vmul.f32 %v273_v20, %v273_v20 }
 0x10f   :  { %v276_v16 = vsel %vm138_vm1, 0.0, %v4755_v30 }
 0x110   :  { %v4757_v31 = vpop.f32.mrf.mxu0  ;;  %v292_v22 = vmul.f32 %v276_v16, %v276_v16 }
 0x111   :  { %v274_v23 = vsel %vm138_vm1, 0.0, %v4757_v31 }
 0x112   :  { %v4759_v32 = vpop.f32.mrf.mxu0  ;;  %v290_v38 = vmul.f32 %v274_v23, %v274_v23 }
 0x113   :  { %v279_v1 = vsel %vm138_vm1, 0.0, %v4759_v32 }
 0x114   :  { %v4761_v33 = vpop.f32.mrf.mxu0  ;;  %v295_v4 = vmul.f32 %v279_v1, %v279_v1 }
 0x115   :  { %v277_v6 = vsel %vm138_vm1, 0.0, %v4761_v33 }
 0x116   :  { %v4763_v34 = vpop.f32.mrf.mxu0  ;;  %v293_v11 = vmul.f32 %v277_v6, %v277_v6 }
 0x117   :  { %v280_v3 = vsel %vm138_vm1, 0.0, %v4763_v34  ;;  %v3515_v16 = vmul.f32 -1.442695, %v4763_v34 }
 0x118   :  { %v4765_v35 = vpop.f32.mrf.mxu0  ;;  %v296_v8 = vmul.f32 %v280_v3, %v280_v3 }
 0x119   :  { %v278_v9 = vsel %vm138_vm1, 0.0, %v4765_v35  ;;  %v3513_v20 = vmul.f32 -1.442695, %v4765_v35 }
 0x11a   :  { %v4767_v36 = vpop.f32.mrf.mxu0  ;;  %v294_v15 = vmul.f32 %v278_v9, %v278_v9 }
 0x11b   :  { %v3518_v47 = vmul.f32 -1.442695, %v4767_v36  ;;  %v283_v55 = vsel %vm138_vm1, 0.0, %v4767_v36 }
 0x11c   :  { %v4769_v37 = vpop.f32.mrf.mxu0  ;;  %v299_v58 = vmul.f32 %v283_v55, %v283_v55 }
 0x11d   :  { %4017 = vpow2.f32 %v3518_v47  ;;  %v3516_v54 = vmul.f32 -1.442695, %v4769_v37  ;;  %v281_v60 = vsel %vm138_vm1, 0.0, %v4769_v37 }
 0x11e   :  { %v4771_v39 = vpop.f32.mrf.mxu0  ;;  %v297_v63 = vmul.f32 %v281_v60, %v281_v60 }
 0x11f   :  { %v284_v57 = vsel %vm138_vm1, 0.0, %v4771_v39  ;;  %4019 = vpow2.f32 %v3516_v54  ;;  %v3519_v59 = vmul.f32 -1.442695, %v4771_v39 }
 0x120   :  { %v4773_v40 = vpop.f32.mrf.mxu0  ;;  %v300_v61 = vmul.f32 %v284_v57, %v284_v57 }
 0x121   :  { %v282_v62 = vsel %vm138_vm1, 0.0, %v4773_v40  ;;  %4021 = vpow2.f32 %v3519_v59  ;;  %v3517_v0 = vmul.f32 -1.442695, %v4773_v40 }
 0x122   :  { %v4777_v42 = vpop.f32.mrf.mxu0  ;;  %v298_v2 = vmul.f32 %v282_v62, %v282_v62 }
 0x123   :  { %v287_v52 = vsel %vm138_vm1, 0.0, %v4777_v42  ;;  %4023 = vpow2.f32 %v3517_v0  ;;  %v3522_v5 = vmul.f32 -1.442695, %v4777_v42 }
 0x124   :  { %v4779_v43 = vpop.f32.mrf.mxu0  ;;  %v303_v56 = vmul.f32 %v287_v52, %v287_v52 }
 0x125   :  { %v285_v44 = vsel %vm138_vm1, 0.0, %v4779_v43  ;;  %v3520_v10 = vmul.f32 -1.442695, %v4779_v43  ;;  %4025 = vpow2.f32 %v3522_v5 }
 0x126   :  { %v4785_v45 = vpop.f32.mrf.mxu0  ;;  %v301_v46 = vmul.f32 %v285_v44, %v285_v44 }
 0x127   :  { %v288_v48 = vsel %vm138_vm1, 0.0, %v4785_v45  ;;  %4027 = vpow2.f32 %v3520_v10  ;;  %v3523_v17 = vmul.f32 -1.442695, %v4785_v45 }
 0x128   :  { %329 = vadd.xlane.f32.xlu1 %v301_v46  ;;  %v4791_v49 = vpop.f32.mrf.mxu0  ;;  %v304_v50 = vmul.f32 %v288_v48, %v288_v48 }
 0x129   :  { %v286_v51 = vsel %vm138_vm1, 0.0, %v4791_v49  ;;  %v3521_v24 = vmul.f32 -1.442695, %v4791_v49 }
 0x12a   :  { %335 = vadd.xlane.f32.xlu0 %v304_v50  ;;  %v302_v53 = vmul.f32 %v286_v51, %v286_v51  ;;  %v4018_v7 = vpop.eup %4017  ;;  %v4842_v51 = vstv %s141_s3 }
 0x12b   :  { %v411_v12 = vadd.f32 1.0, %v4018_v7 }
 0x12c   :  { %331 = vadd.xlane.f32.xlu1 %v302_v53  ;;  %v4020_v14 = vpop.eup %4019 }
 0x12d   :  { %4029 = vrcp.f32 %v411_v12  ;;  %v409_v19 = vadd.f32 1.0, %v4020_v14 }
 0x12e   :  { %333 = vadd.xlane.f32.xlu0 %v303_v56  ;;  %v4022_v21 = vpop.eup %4021  ;;  %4031 = vpow2.f32 %v3523_v17  ;;  %v3514_v17 = vmul.f32 -1.442695, %v4759_v32 }
 0x12f   :  { %4033 = vrcp.f32 %v409_v19  ;;  %v412_v26 = vadd.f32 1.0, %v4022_v21  ;;  %v3512_v19 = vmul.f32 -1.442695, %v4761_v33 }
 0x130   :  { %325 = vadd.xlane.f32.xlu1 %v299_v58  ;;  %v4024_v27 = vpop.eup %4023  ;;  %4035 = vpow2.f32 %v3521_v24 }
 0x131   :  { %4037 = vrcp.f32 %v412_v26  ;;  %v410_v44 = vadd.f32 1.0, %v4024_v27  ;;  %v3508_v27 = vmul.f32 -1.442695, %v4753_v29 }
 0x132   :  { %327 = vadd.xlane.f32.xlu0 %v300_v61  ;;  %v4026_v46 = vpop.eup %4025 }
 0x133   :  { %4039 = vrcp.f32 %v410_v44  ;;  %v415_v48 = vadd.f32 1.0, %v4026_v46  ;;  %v3509_v46 = vmul.f32 -1.442695, %v4757_v31 }
 0x134   :  { %321 = vadd.xlane.f32.xlu1 %v297_v63  ;;  %v4028_v47 = vpop.eup %4027 }
 0x135   :  { %4041 = vrcp.f32 %v415_v48  ;;  %v413_v53 = vadd.f32 1.0, %v4028_v47 }
 0x136   :  { %323 = vadd.xlane.f32.xlu0 %v298_v2 }
 0x137   :  { %4043 = vrcp.f32 %v413_v53 }
 0x138   :  { %317 = vadd.xlane.f32.xlu1 %v295_v4 }
 0x13a   :  { %319 = vadd.xlane.f32.xlu0 %v296_v8  ;;  %v4030_v50 = vpop.eup %4029 }
 0x13b   :  { %v4032_v52 = vpop.eup %4031  ;;  %v460_v54 = vmul.f32 %v4030_v50, %v4842_v51 }
 0x13c   :  { %313 = vadd.xlane.f32.xlu1 %v293_v11  ;;  %v4034_v55 = vpop.eup %4033  ;;  %v416_v57 = vadd.f32 1.0, %v4032_v52 }
 0x13d   :  { %v4036_v56 = vpop.eup %4035  ;;  %v4845_v58 = vadd.f32 1.1, %v460_v54  ;;  %v458_v59 = vmul.f32 %v4034_v55, %v4842_v51 }
 0x13e   :  { %315 = vadd.xlane.f32.xlu0 %v294_v15  ;;  %v4038_v60 = vpop.eup %4037  ;;  %4045 = vrcp.f32 %v416_v57  ;;  %v414_v61 = vadd.f32 1.0, %v4036_v56 }
 0x13f   :  { %v4849_v62 = vadd.f32 1.1, %v458_v59  ;;  %v461_v63 = vmul.f32 %v4038_v60, %v4842_v51 }
 0x140   :  { %309 = vadd.xlane.f32.xlu1 %v291_v18  ;;  %v4040_v0 = vpop.eup %4039  ;;  %4047 = vrcp.f32 %v414_v61  ;;  %v3510_v18 = vmul.f32 -1.442695, %v4751_v28 }
 0x141   :  { %v4853_v1 = vadd.f32 1.1, %v461_v63  ;;  %v459_v2 = vmul.f32 %v4040_v0, %v4842_v51  ;;  %4049 = vpow2.f32 %v3515_v16 }
 0x142   :  { %311 = vadd.xlane.f32.xlu0 %v292_v22  ;;  %v4042_v3 = vpop.eup %4041  ;;  %4051 = vpow2.f32 %v3514_v17  ;;  %v3511_v22 = vmul.f32 -1.442695, %v4755_v30 }
 0x143   :  { %v4857_v4 = vadd.f32 1.1, %v459_v2  ;;  %v464_v5 = vmul.f32 %v4042_v3, %v4842_v51  ;;  %4053 = vpow2.f32 %v3510_v18  ;;  %v493_v17 = vmul.f32 %v4853_v1, %v4853_v1 }
 0x144   :  { %305 = vadd.xlane.f32.xlu1 %v289_v25  ;;  %v4044_v6 = vpop.eup %4043  ;;  %4055 = vpow2.f32 %v3512_v19 }
 0x145   :  { %v4861_v7 = vadd.f32 1.1, %v464_v5  ;;  %v462_v8 = vmul.f32 %v4044_v6, %v4842_v51  ;;  %4057 = vpow2.f32 %v3513_v20 }
 0x146   :  { %307 = vadd.xlane.f32.xlu0 %v290_v38  ;;  %4059 = vpow2.f32 %v3511_v22 }
 0x147   :  { %v4865_v10 = vadd.f32 1.1, %v462_v8 }
 0x14b   :  { %v4046_v9 = vpop.eup %4045 }
 0x14c   :  { %v465_v11 = vmul.f32 %v4046_v9, %v4842_v51 }
 0x14d   :  { %v4048_v12 = vpop.eup %4047 }
 0x14e   :  { %v4869_v13 = vadd.f32 1.1, %v465_v11  ;;  %v463_v14 = vmul.f32 %v4048_v12, %v4842_v51  ;;  %v4050_v21 = vpop.eup %4049  ;;  %v496_v11 = vmul.f32 %v4861_v7, %v4861_v7 }
 0x14f   :  { %v408_v24 = vadd.f32 1.0, %v4050_v21  ;;  %v4052_v44 = vpop.eup %4051  ;;  %v494_v21 = vmul.f32 %v4865_v10, %v4865_v10 }
 0x150   :  { %v4873_v15 = vadd.f32 1.1, %v463_v14  ;;  %v4054_v52 = vpop.eup %4053  ;;  %v407_v53 = vadd.f32 1.0, %v4052_v44  ;;  %v3538_v20 = vadd.f32 -1.0, %v496_v11 }
 0x151   :  { %4061 = vrcp.f32 %v408_v24  ;;  %v4056_v55 = vpop.eup %4055  ;;  %v403_v63 = vadd.f32 1.0, %v4054_v52 }
 0x152   :  { %v4058_v61 = vpop.eup %4057  ;;  %v405_v0 = vadd.f32 1.0, %v4056_v55 }
 0x153   :  { %v4060_v3 = vpop.eup %4059  ;;  %v406_v6 = vadd.f32 1.0, %v4058_v61 }
 0x154   :  { %v404_v9 = vadd.f32 1.0, %v4060_v3 }
 0x155   :  { %806 = vperm.xlu1 %4015, %v4845_v58  }
 0x159   :  { %796 = vperm.xlu1 %4015, %v4849_v62  }
 0x15d   :  { %811 = vperm.xlu1 %4015, %v4853_v1   ;;  %v492_v1 = vmul.f32 %v4845_v58, %v4845_v58 }
 0x15e   :  { %v4062_v8 = vpop.eup %4061 }
 0x15f   :  { %v457_v18 = vmul.f32 %v4062_v8, %v4842_v51 }
 0x161   :  { %801 = vperm.xlu1 %4015, %v4857_v4  }
 0x165   :  { %826 = vperm.xlu1 %4015, %v4861_v7  }
 0x169   :  { %816 = vperm.xlu1 %4015, %v4865_v10   ;;  %v495_v10 = vmul.f32 %v4873_v15, %v4873_v15 }
 0x16d   :  { %831 = vperm.xlu1 %4015, %v4869_v13  }
 0x171   :  { %821 = vperm.xlu1 %4015, %v4873_v15  }
 0x1b1   :  { %v330_v23 = vpop.xlane.xlu1 %329 }
 0x1b2   :  { %v349_v48 = vmax.f32 %v330_v23, 1e-08 }
 0x1b3   :  { %v4882_v25 = vpop.xlane.xlu0 %335 }
 0x1b4   :  { %v352_v22 = vmax.f32 %v4882_v25, 1e-08 }
 0x1b5   :  { %v332_v26 = vpop.xlane.xlu1 %331 }
 0x1b6   :  { %v350_v59 = vmax.f32 %v332_v26, 1e-08 }
 0x1b7   :  { %v334_v38 = vpop.xlane.xlu0 %333 }
 0x1b8   :  { %v351_v47 = vmax.f32 %v334_v38, 1e-08  ;;  %v3535_v38 = vadd.f32 -1.0, %v493_v17 }
 0x1b9   :  { %v326_v50 = vpop.xlane.xlu1 %325 }
 0x1ba   :  { %4063 = vrcp.f32 %v351_v47  ;;  %v347_v56 = vmax.f32 %v326_v50, 1e-08 }
 0x1bb   :  { %4065 = vpow2.f32 %v3508_v27  ;;  %v328_v54 = vpop.xlane.xlu0 %327 }
 0x1bc   :  { %4067 = vpow2.f32 %v3509_v46  ;;  %v348_v57 = vmax.f32 %v328_v54, 1e-08  ;;  %v4898_v46 = vadd.f32 1.1, %v457_v18 }
 0x1bd   :  { %4069 = vrcp.f32 %v349_v48  ;;  %v322_v60 = vpop.xlane.xlu1 %321  ;;  %v3536_v48 = vadd.f32 -1.0, %v494_v21 }
 0x1be   :  { %4071 = vrcp.f32 %v348_v57  ;;  %v345_v5 = vmax.f32 %v322_v60, 1e-08  ;;  %v490_v57 = vmul.f32 %v4849_v62, %v4849_v62  ;;  %v489_v15 = vmul.f32 %v4898_v46, %v4898_v46 }
 0x1bf   :  { %4073 = vrcp.f32 %v407_v53  ;;  %v324_v2 = vpop.xlane.xlu0 %323  ;;  %v3537_v60 = vadd.f32 -1.0, %v495_v10 }
 0x1c0   :  { %4075 = vrcp.f32 %v347_v56  ;;  %v346_v14 = vmax.f32 %v324_v2, 1e-08  ;;  %v3534_v56 = vadd.f32 -1.0, %v492_v1  ;;  %v3532_v8 = vadd.f32 -1.0, %v490_v57 }
 0x1c1   :  { %4077 = vrcp.f32 %v350_v59  ;;  %v318_v7 = vpop.xlane.xlu1 %317  ;;  %v3531_v11 = vadd.f32 -1.0, %v489_v15 }
 0x1c2   :  { %4079 = vrcp.f32 %v403_v63  ;;  %v343_v44 = vmax.f32 %v318_v7, 1e-08 }
 0x1c3   :  { %4081 = vrcp.f32 %v405_v0  ;;  %v320_v12 = vpop.xlane.xlu0 %319 }
 0x1c4   :  { %4083 = vrcp.f32 %v345_v5  ;;  %v344_v16 = vmax.f32 %v320_v12, 1e-08 }
 0x1c5   :  { %4085 = vrcp.f32 %v406_v6  ;;  %v314_v2 = vpop.xlane.xlu1 %313 }
 0x1c6   :  { %4087 = vrcp.f32 %v344_v16 }
 0x1c7   :  { %v4064_v19 = vpop.eup %4063  ;;  %4089 = vrcp.f32 %v404_v9  ;;  %v316_v53 = vpop.xlane.xlu0 %315  ;;  %v491_v9 = vmul.f32 %v4857_v4, %v4857_v4 }
 0x1c8   :  { %v4066_v23 = vpop.eup %4065  ;;  %4091 = vrcp.f32 %v346_v14  ;;  %v4894_v26 = vmul.f32 %v4064_v19, %v3538_v20  ;;  %v342_v61 = vmax.f32 %v316_v53, 1e-08  ;;  %v341_v14 = vmax.f32 %v314_v2, 1e-08 }
 0x1c9   :  { %v4068_v24 = vpop.eup %4067  ;;  %4093 = vrcp.f32 %v352_v22  ;;  %v401_v17 = vadd.f32 1.0, %v4066_v23  ;;  %v497_v22 = vmul.f32 %v4869_v13, %v4869_v13 }
 0x1ca   :  { %v4070_v27 = vpop.eup %4069  ;;  %v402_v50 = vadd.f32 1.0, %v4068_v24  ;;  %4095 = vrsqrt.f32 %v4894_v26  ;;  %v3533_v24 = vadd.f32 -1.0, %v491_v9  ;;  %vm646_vm4 = vcmp.eq.f32.partialorder %v4894_v26, inf }
 0x1cb   :  { %v4072_v47 = vpop.eup %4071  ;;  %v4904_v55 = vmul.f32 %v4070_v27, %v3536_v48  ;;  %4097 = vrcp.f32 %v343_v44  ;;  %v312_v20 = vpop.xlane.xlu0 %311  ;;  %vm648_vm6 = vcmp.eq.f32.partialorder %v4894_v26, 0.0 }
 0x1cc   :  { %v4074_v25 = vpop.eup %4073  ;;  %v4902_v52 = vmul.f32 %v4072_v47, %v3535_v38  ;;  %v340_v27 = vmax.f32 %v312_v20, 1e-08  ;;  %v3539_v47 = vadd.f32 -1.0, %v497_v22  ;;  %v310_v48 = vpop.xlane.xlu1 %309 }
 0x1cd   :  { %v4076_v54 = vpop.eup %4075  ;;  %v456_v62 = vmul.f32 %v4074_v25, %v4842_v51  ;;  %v339_v15 = vmax.f32 %v310_v48, 1e-08  ;;  %vm632_vm5 = vcmp.eq.f32.partialorder %v4904_v55, inf  ;;  %vm634_vm7 = vcmp.eq.f32.partialorder %v4904_v55, 0.0 }
 0x1ce   :  { %v4078_v58 = vpop.eup %4077  ;;  %4099 = vrsqrt.f32 %v4902_v52  ;;  %v4912_v0 = vmul.f32 %v4076_v54, %v3534_v56  ;;  %vm625_vm2 = vcmp.eq.f32.partialorder %v4902_v52, inf  ;;  %v628_v9 = vand.u32 2147483648, %v4902_v52 }
 0x1cf   :  { %v4080_v59 = vpop.eup %4079  ;;  %4101 = vrcp.f32 %v402_v50  ;;  %v4914_v5 = vmul.f32 %v4078_v58, %v3537_v60  ;;  %v4928_v4 = vadd.f32 1.1, %v456_v62  ;;  %v308_v56 = vpop.xlane.xlu0 %307  ;;  %vm627_vm3 = vcmp.eq.f32.partialorder %v4902_v52, 0.0 }
 0x1d0   :  { %v4082_v63 = vpop.eup %4081  ;;  %4103 = vrsqrt.f32 %v4904_v55  ;;  %v452_v44 = vmul.f32 %v4080_v59, %v4842_v51  ;;  %vm618_vm11 = vcmp.eq.f32.partialorder %v4912_v0, inf  ;;  %vm620_vm12 = vcmp.eq.f32.partialorder %v4912_v0, 0.0 }
 0x1d1   :  { %v4084_v3 = vpop.eup %4083  ;;  %4105 = vrcp.f32 %v342_v61  ;;  %v454_v7 = vmul.f32 %v4082_v63, %v4842_v51  ;;  %v488_v10 = vmul.f32 %v4928_v4, %v4928_v4  ;;  %vm639_vm10 = vcmp.eq.f32.partialorder %v4914_v5, inf }
 0x1d2   :  { %v4086_v6 = vpop.eup %4085  ;;  %v4920_v18 = vmul.f32 %v4084_v3, %v3532_v8  ;;  %4107 = vrsqrt.f32 %v4912_v0  ;;  %v4949_v60 = vadd.f32 1.1, %v452_v44  ;;  %v338_v8 = vmax.f32 %v308_v56, 1e-08 }
 0x1d3   :  { %v4088_v12 = vpop.eup %4087  ;;  %4109 = vrsqrt.f32 %v4914_v5  ;;  %v455_v23 = vmul.f32 %v4086_v6, %v4842_v51  ;;  %v4940_v25 = vadd.f32 1.1, %v454_v7  ;;  %v3530_v3 = vadd.f32 -1.0, %v488_v10 }
 0x1d4   :  { %v4090_v16 = vpop.eup %4089  ;;  %v4922_v19 = vmul.f32 %v4088_v12, %v3531_v11  ;;  %vm641_vm13 = vcmp.eq.f32.partialorder %v4914_v5, 0.0  ;;  %vm604_vm14 = vcmp.eq.f32.partialorder %v4920_v18, inf  ;;  %vm606_vm15 = vcmp.eq.f32.partialorder %v4920_v18, 0.0 }
 0x1d5   :  { %v4092_v21 = vpop.eup %4091  ;;  %v453_v13 = vmul.f32 %v4090_v16, %v4842_v51  ;;  %v4942_v53 = vadd.f32 1.1, %v455_v23  ;;  %v486_v62 = vmul.f32 %v4940_v25, %v4940_v25 }
 0x1d6   :  { %4111 = vrsqrt.f32 %v4922_v19  ;;  %v4094_v1 = vpop.eup %4093  ;;  %v4933_v38 = vmul.f32 %v4092_v21, %v3533_v24  ;;  %vm597_vm8 = vcmp.eq.f32.partialorder %v4922_v19, inf  ;;  %vm599_vm9 = vcmp.eq.f32.partialorder %v4922_v19, 0.0 }
 0x1d7   :  { %4113 = vrcp.f32 %v341_v14  ;;  %v4096_v50 = vpop.eup %4095  ;;  %v4944_v58 = vmul.f32 %v4094_v1, %v3539_v47  ;;  %v4947_v59 = vadd.f32 1.1, %v453_v13  ;;  %v487_v11 = vmul.f32 %v4942_v53, %v4942_v53 }
 0x1d8   :  { %4115 = vrsqrt.f32 %v4920_v18  ;;  %v4098_v54 = vpop.eup %4097  ;;  %v645_v2 = vmul.f32 %v4096_v50, %v4894_v26  ;;  %v3528_v23 = vadd.f32 -1.0, %v486_v62  ;;  %v649_v1 = vand.u32 2147483648, %v4894_v26 }
 0x1d9   :  { %4117 = vrcp.f32 %v401_v17  ;;  %v4961_v14 = vmul.f32 %v4098_v54, %v3530_v3  ;;  %v306_v17 = vpop.xlane.xlu1 %305  ;;  %v3529_v13 = vadd.f32 -1.0, %v487_v11  ;;  %v635_v3 = vand.u32 2147483648, %v4904_v55 }
 0x1da   :  { %4119 = vrcp.f32 %v340_v27  ;;  %v647_v7 = vsel %vm646_vm4, %v4894_v26, %v645_v2  ;;  %v337_v47 = vmax.f32 %v306_v17, 1e-08  ;;  %vm611_vm0 = vcmp.eq.f32.partialorder %v4933_v38, inf }
 0x1db   :  { %v4100_v57 = vpop.eup %4099  ;;  %4121 = vrsqrt.f32 %v4933_v38  ;;  %v650_v10 = vsel %vm648_vm6, %v649_v1, %v647_v7  ;;  %vm655_vm4 = vcmp.eq.f32.partialorder %v4944_v58, 0.0  ;;  %vm592_vm6 = vcmp.eq.f32.partialorder %v4961_v14, 0.0 }
 0x1dc   :  { %v4102_v61 = vpop.eup %4101  ;;  %v624_v63 = vmul.f32 %v4100_v57, %v4902_v52  ;;  %4123 = vrsqrt.f32 %v4944_v58 }
 0x1dd   :  { %v4104_v6 = vpop.eup %4103  ;;  %4125 = vrcp.f32 %v339_v15  ;;  %v451_v21 = vmul.f32 %v4102_v61, %v4842_v51  ;;  %v600_v15 = vand.u32 2147483648, %v4922_v19 }
 0x1de   :  { %v626_v12 = vsel %vm625_vm2, %v4902_v52, %v624_v63  ;;  %v4106_v16 = vpop.eup %4105  ;;  %v631_v24 = vmul.f32 %v4104_v6, %v4904_v55  ;;  %v485_v52 = vmul.f32 %v4947_v59, %v4947_v59  ;;  %4127 = vrcp.f32 %v338_v8 }
 0x1df   :  { %v629_v20 = vsel %vm627_vm3, %v628_v9, %v626_v12  ;;  %v4108_v22 = vpop.eup %4107  ;;  %4129 = vrsqrt.f32 %v4961_v14  ;;  %v4977_v56 = vmul.f32 %v4106_v16, %v3529_v13  ;;  %vm613_vm2 = vcmp.eq.f32.partialorder %v4933_v38, 0.0 }
 0x1e0   :  { %715 = vperm.xlu1 %4015, %v629_v20   ;;  %v4110_v27 = vpop.eup %4109  ;;  %v617_v54 = vmul.f32 %v4108_v22, %v4912_v0  ;;  %v633_v26 = vsel %vm632_vm5, %v4904_v55, %v631_v24  ;;  %4131 = vrcp.f32 %v337_v47  ;;  %v621_v20 = vand.u32 2147483648, %v4912_v0 }
 0x1e1   :  { %v638_v61 = vmul.f32 %v4110_v27, %v4914_v5  ;;  %v636_v9 = vsel %vm634_vm7, %v635_v3, %v633_v26  ;;  %4133 = vrsqrt.f32 %v4977_v56  ;;  %v484_v22 = vmul.f32 %v4949_v60, %v4949_v60 }
 0x1e2   :  { %v619_v11 = vsel %vm618_vm11, %v4912_v0, %v617_v54  ;;  %v642_v55 = vand.u32 2147483648, %v4914_v5  ;;  %v3527_v7 = vadd.f32 -1.0, %v485_v52  ;;  %v5004_v24 = vadd.f32 1.1, %v451_v21 }
 0x1e3   :  { %v4112_v44 = vpop.eup %4111  ;;  %v640_v17 = vsel %vm639_vm10, %v4914_v5, %v638_v61  ;;  %v607_v21 = vand.u32 2147483648, %v4920_v18  ;;  %v3526_v5 = vadd.f32 -1.0, %v484_v22  ;;  %vm653_vm3 = vcmp.eq.f32.partialorder %v4944_v58, inf }
 0x1e4   :  { %v4114_v48 = vpop.eup %4113  ;;  %v596_v50 = vmul.f32 %v4112_v44, %v4922_v19  ;;  %730 = vperm.xlu1 %4015, %v650_v10   ;;  %v643_v27 = vsel %vm641_vm13, %v642_v55, %v640_v17  ;;  %v483_v47 = vmul.f32 %v5004_v24, %v5004_v24  ;;  %vm590_vm5 = vcmp.eq.f32.partialorder %v4961_v14, inf }
 0x1e5   :  { %v4116_v57 = vpop.eup %4115  ;;  %v4990_v6 = vmul.f32 %v4114_v48, %v3528_v23  ;;  %v622_v23 = vsel %vm620_vm12, %v621_v20, %v619_v11  ;;  %vm583_vm7 = vcmp.eq.f32.partialorder %v4977_v56, inf }
 0x1e6   :  { %v4118_v63 = vpop.eup %4117  ;;  %v598_v2 = vsel %vm597_vm8, %v4922_v19, %v596_v50  ;;  %v603_v12 = vmul.f32 %v4116_v57, %v4920_v18  ;;  %v3525_v61 = vadd.f32 -1.0, %v483_v47  ;;  %vm585_vm8 = vcmp.eq.f32.partialorder %v4977_v56, 0.0 }
 0x1e7   :  { %v601_v62 = vsel %vm599_vm9, %v600_v15, %v598_v2  ;;  %v4120_v8 = vpop.eup %4119  ;;  %v450_v16 = vmul.f32 %v4118_v63, %v4842_v51  ;;  %4135 = vrsqrt.f32 %v4990_v6  ;;  %vm576_vm9 = vcmp.eq.f32.partialorder %v4990_v6, inf }
 0x1e8   :  { %695 = vperm.xlu0 %4016, %v601_v62   ;;  %v4122_v19 = vpop.eup %4121  ;;  %720 = vperm.xlu1 %4015, %v636_v9   ;;  %v605_v1 = vsel %vm604_vm14, %v4920_v18, %v603_v12  ;;  %v5011_v44 = vmul.f32 %v4120_v8, %v3527_v7  ;;  %v614_v18 = vand.u32 2147483648, %v4933_v38  ;;  %v656_v9 = vand.u32 2147483648, %v4944_v58 }
 0x1e9   :  { %v4124_v51 = vpop.eup %4123  ;;  %v610_v13 = vmul.f32 %v4122_v19, %v4933_v38  ;;  %v5014_v52 = vadd.f32 1.1, %v450_v16  ;;  %v608_v10 = vsel %vm606_vm15, %v607_v21, %v605_v1  ;;  %v586_v7 = vand.u32 2147483648, %v4977_v56 }
 0x1ea   :  { %v4126_v0 = vpop.eup %4125  ;;  %v652_v57 = vmul.f32 %v4124_v51, %v4944_v58  ;;  %4137 = vrsqrt.f32 %v5011_v44  ;;  %vm578_vm10 = vcmp.eq.f32.partialorder %v4990_v6, 0.0  ;;  %vm569_vm11 = vcmp.eq.f32.partialorder %v5011_v44, inf }
 0x1eb   :  { %v4128_v48 = vpop.eup %4127  ;;  %v612_v54 = vsel %vm611_vm0, %v4933_v38, %v610_v13  ;;  %v5022_v15 = vmul.f32 %v4126_v0, %v3526_v5  ;;  %v482_v26 = vmul.f32 %v5014_v52, %v5014_v52  ;;  %v572_v0 = vand.u32 2147483648, %v5011_v44 }
 0x1ec   :  { %710 = vperm.xlu0 %4016, %v622_v23   ;;  %725 = vperm.xlu1 %4015, %v643_v27   ;;  %v4130_v50 = vpop.eup %4129  ;;  %v615_v63 = vsel %vm613_vm2, %v614_v18, %v612_v54  ;;  %v654_v3 = vsel %vm653_vm3, %v4944_v58, %v652_v57  ;;  %v5033_v8 = vmul.f32 %v4128_v48, %v3525_v61  ;;  %v579_v27 = vand.u32 2147483648, %v4990_v6  ;;  %v807_v18 = vpop.permute.xlu1 %806 }
 0x1ed   :  { %v4132_v2 = vpop.eup %4131  ;;  %v589_v62 = vmul.f32 %v4130_v50, %v4961_v14  ;;  %4139 = vrsqrt.f32 %v5022_v15  ;;  %v3524_v38 = vadd.f32 -1.0, %v482_v26  ;;  %v657_v11 = vsel %vm655_vm4, %v656_v9, %v654_v3 }
 0x1ee   :  { %4141 = vrsqrt.f32 %v5033_v8  ;;  %vm571_vm12 = vcmp.eq.f32.partialorder %v5011_v44, 0.0  ;;  %vm562_vm13 = vcmp.eq.f32.partialorder %v5022_v15, inf  ;;  %v565_v47 = vand.u32 2147483648, %v5022_v15 }
 0x1ef   :  { %v515_v19 = vmul.f32 %v4132_v2, %v3524_v38  ;;  %v591_v16 = vsel %vm590_vm5, %v4961_v14, %v589_v62  ;;  %vm564_vm14 = vcmp.eq.f32.partialorder %v5022_v15, 0.0  ;;  %vm555_vm15 = vcmp.eq.f32.partialorder %v5033_v8, inf }
 0x1f0   :  { %700 = vperm.xlu0 %4016, %v608_v10   ;;  %791 = vperm.xlu1 %4015, %v4898_v46   ;;  %v4134_v46 = vpop.eup %4133  ;;  %v558_v10 = vand.u32 2147483648, %v5033_v8  ;;  %vm557_vm0 = vcmp.eq.f32.partialorder %v5033_v8, 0.0  ;;  %v797_v26 = vpop.permute.xlu1 %796  ;;  %vm1266_vm4 = vcmask 261120  }
 0x1f1   :  { %v582_v17 = vmul.f32 %v4134_v46, %v4977_v56  ;;  %4143 = vrsqrt.f32 %v515_v19  ;;  %vm548_vm2 = vcmp.eq.f32.partialorder %v515_v19, inf  ;;  %vm550_vm3 = vcmp.eq.f32.partialorder %v515_v19, 0.0 }
 0x1f3   :  { %v584_v58 = vsel %vm583_vm7, %v4977_v56, %v582_v17 }
 0x1f4   :  { %705 = vperm.xlu0 %4016, %v615_v63   ;;  %786 = vperm.xlu1 %4015, %v4928_v4   ;;  %v4136_v12 = vpop.eup %4135  ;;  %v593_v4 = vand.u32 2147483648, %v4961_v14  ;;  %v812_v61 = vpop.permute.xlu1 %811 }
 0x1f5   :  { %v575_v22 = vmul.f32 %v4136_v12, %v4990_v6 }
 0x1f6   :  { %v594_v20 = vsel %vm592_vm6, %v593_v4, %v591_v16 }
 0x1f7   :  { %v4138_v55 = vpop.eup %4137  ;;  %v577_v14 = vsel %vm576_vm9, %v4990_v6, %v575_v22 }
 0x1f8   :  { %735 = vperm.xlu0 %4016, %v657_v11   ;;  %781 = vperm.xlu1 %4015, %v4942_v53   ;;  %v587_v53 = vsel %vm585_vm8, %v586_v7, %v584_v58  ;;  %v568_v23 = vmul.f32 %v4138_v55, %v5011_v44  ;;  %v802_v63 = vpop.permute.xlu1 %801 }
 0x1fa   :  { %v4140_v51 = vpop.eup %4139  ;;  %v570_v56 = vsel %vm569_vm11, %v5011_v44, %v568_v23 }
 0x1fb   :  { %v561_v1 = vmul.f32 %v4140_v51, %v5022_v15  ;;  %v4142_v13 = vpop.eup %4141 }
 0x1fc   :  { %690 = vperm.xlu0 %4016, %v594_v20   ;;  %776 = vperm.xlu1 %4015, %v4940_v25   ;;  %v580_v25 = vsel %vm578_vm10, %v579_v27, %v577_v14  ;;  %v554_v21 = vmul.f32 %v4142_v13, %v5033_v8  ;;  %v827_v2 = vpop.permute.xlu1 %826 }
 0x1fd   :  { %v563_v6 = vsel %vm562_vm13, %v5022_v15, %v561_v1  ;;  %v5074_v15 = vld [vmem:[#allocation7] sm:$0xff] }
 0x1fe   :  { %v4144_v5 = vpop.eup %4143  ;;  %v556_v44 = vsel %vm555_vm15, %v5033_v8, %v554_v21  ;;  %3797 = vmatprep.mubr.f32.mxu1 %v5074_v15 }
 0x1ff   :  { %v547_v48 = vmul.f32 %v4144_v5, %v515_v19  ;;  %v559_v50 = vsel %vm557_vm0, %v558_v10, %v556_v44 }
 0x200   :  { %685 = vperm.xlu0 %4016, %v587_v53   ;;  %771 = vperm.xlu1 %4015, %v4947_v59   ;;  %v573_v59 = vsel %vm571_vm12, %v572_v0, %v570_v56  ;;  %v817_v3 = vpop.permute.xlu1 %816 }
 0x201   :  { %v549_v54 = vsel %vm548_vm2, %v515_v19, %v547_v48 }
 0x204   :  { %680 = vperm.xlu0 %4016, %v580_v25   ;;  %766 = vperm.xlu1 %4015, %v4949_v60   ;;  %v566_v60 = vsel %vm564_vm14, %v565_v47, %v563_v6  ;;  %v832_v62 = vpop.permute.xlu1 %831 }
 0x208   :  { %675 = vperm.xlu0 %4016, %v573_v59   ;;  %761 = vperm.xlu1 %4015, %v5004_v24   ;;  %v551_v24 = vand.u32 2147483648, %v515_v19  ;;  %v822_v8 = vpop.permute.xlu1 %821 }
 0x20a   :  { %v552_v57 = vsel %vm550_vm3, %v551_v24, %v549_v54 }
 0x20c   :  { %670 = vperm.xlu0 %4016, %v566_v60  }
 0x210   :  { %665 = vperm.xlu0 %4016, %v559_v50  }
 0x214   :  { %660 = vperm.xlu0 %4016, %v552_v57  }
 0x218   :  { %756 = vperm.xlu0 %4016, %v5014_v52  }
 0x25b   :  { %v716_v46 = vpop.permute.xlu1 %715 }
 0x25c   :  { %v749_v27 = vmul.f32 %v4771_v39, %v716_v46  ;;  %v127_v46 = vld [vmem:[#allocation7 + $0x38] sm:$0xff] }
 0x25e   :  { %v845_v56 = vsel %vm138_vm1, %v812_v61, %v749_v27 }
 0x25f   :  { %v731_v9 = vpop.permute.xlu1 %730 }
 0x260   :  { %v752_v52 = vmul.f32 %v4777_v42, %v731_v9  ;;  %v128_v9 = vld [vmem:[#allocation7 + $0x40] sm:$0xff] }
 0x262   :  { %v848_v23 = vsel %vm138_vm1, %v827_v2, %v752_v52  ;;  %v122_v2 = vld [vmem:[#allocation7 + $0x10] sm:$0xff] }
 0x263   :  { %v696_v38 = vpop.permute.xlu0 %695  ;;  %v721_v11 = vpop.permute.xlu1 %720 }
 0x264   :  { %v750_v14 = vmul.f32 %v721_v11, %v4779_v43  ;;  %v130_v11 = vld [vmem:[#allocation7 + $0x50] sm:$0xff] }
 0x266   :  { %v846_v43 = vsel %vm138_vm1, %v817_v3, %v750_v14  ;;  %v123_v3 = vld [vmem:[#allocation7 + $0x18] sm:$0xff] }
 0x267   :  { %v711_v12 = vpop.permute.xlu0 %710  ;;  %v726_v19 = vpop.permute.xlu1 %725 }
 0x268   :  { %v751_v55 = vmul.f32 %v726_v19, %v4791_v49  ;;  %v748_v49 = vmul.f32 %v4767_v36, %v711_v12  ;;  %v131_v12 = vld [vmem:[#allocation7 + $0x58] sm:$0xff]  ;;  %v132_v19 = vld [vmem:[#allocation7 + $0x60] sm:$0xff] }
 0x26a   :  { %v847_v42 = vsel %vm138_vm1, %v822_v8, %v751_v55  ;;  %v844_v36 = vsel %vm138_vm1, %v807_v18, %v748_v49  ;;  %v126_v8 = vld [vmem:[#allocation7 + $0x30] sm:$0xff] }
 0x26b   :  { %v701_v16 = vpop.permute.xlu0 %700  ;;  %v792_v17 = vpop.permute.xlu1 %791 }
 0x26c   :  { %v746_v13 = vmul.f32 %v701_v16, %v4769_v37  ;;  %v133_v16 = vld [vmem:[#allocation7 + $0x68] sm:$0xff] }
 0x26e   :  { %v842_v21 = vsel %vm138_vm1, %v797_v26, %v746_v13 }
 0x26f   :  { %v706_v4 = vpop.permute.xlu0 %705  ;;  %v787_v20 = vpop.permute.xlu1 %786 }
 0x270   :  { %v747_v25 = vmul.f32 %v706_v4, %v4773_v40  ;;  %v745_v40 = vmul.f32 %v4763_v34, %v696_v38  ;;  %v129_v38 = vld [vmem:[#allocation7 + $0x48] sm:$0xff]  ;;  %v135_v4 = vld [vmem:[#allocation7 + $0x78] sm:$0xff] }
 0x272   :  { %v843_v0 = vsel %vm138_vm1, %v802_v63, %v747_v25  ;;  %v841_v47 = vsel %vm138_vm1, %v792_v17, %v745_v40  ;;  %v121_v63 = vld [vmem:[#allocation7 + $0x8] sm:$0xff]  ;;  %v134_v17 = vld [vmem:[#allocation7 + $0x70] sm:$0xff] }
 0x273   :  { %v736_v58 = vpop.permute.xlu0 %735  ;;  %v782_v51 = vpop.permute.xlu1 %781 }
 0x274   :  { %v753_v22 = vmul.f32 %v4785_v45, %v736_v58 }
 0x276   :  { %v849_v7 = vsel %vm138_vm1, %v832_v62, %v753_v22  ;;  %v124_v62 = vld [vmem:[#allocation7 + $0x20] sm:$0xff] }
 0x277   :  { %v691_v53 = vpop.permute.xlu0 %690  ;;  %3765 = vmatprep.subr.mxu1 %v849_v7  ;;  %v777_v39 = vpop.permute.xlu1 %776 }
 0x278   :  { %3766 = vmatpush3.msra.mxu1 %v849_v7  ;;  %v744_v6 = vmul.f32 %v4759_v32, %v691_v53 }
 0x279   :  { %3767 = vmatprep.subr.mxu1 %v848_v23 }
 0x27a   :  { %3768 = vmatpush3.msra.mxu1 %v848_v23  ;;  %v840_v32 = vsel %vm138_vm1, %v787_v20, %v744_v6 }
 0x27b   :  { %v686_v45 = vpop.permute.xlu0 %685  ;;  %3769 = vmatprep.subr.mxu1 %v847_v42  ;;  %v772_v37 = vpop.permute.xlu1 %771 }
 0x27c   :  { %3770 = vmatpush3.msra.mxu1 %v847_v42  ;;  %v743_v5 = vmul.f32 %v686_v45, %v4765_v35 }
 0x27d   :  { %3771 = vmatprep.subr.mxu1 %v846_v43 }
 0x27e   :  { %3772 = vmatpush3.msra.mxu1 %v846_v43  ;;  %v839_v48 = vsel %vm138_vm1, %v782_v51, %v743_v5 }
 0x27f   :  { %v681_v1 = vpop.permute.xlu0 %680  ;;  %3773 = vmatprep.subr.mxu1 %v845_v56  ;;  %v767_v35 = vpop.permute.xlu1 %766 }
 0x280   :  { %3774 = vmatpush3.msra.mxu1 %v845_v56  ;;  %v742_v44 = vmul.f32 %v681_v1, %v4761_v33 }
 0x281   :  { %3775 = vmatprep.subr.mxu1 %v844_v36 }
 0x282   :  { %3776 = vmatpush3.msra.mxu1 %v844_v36  ;;  %v838_v33 = vsel %vm138_vm1, %v777_v39, %v742_v44 }
 0x283   :  { %v676_v59 = vpop.permute.xlu0 %675  ;;  %3777 = vmatprep.subr.mxu1 %v843_v0  ;;  %v762_v18 = vpop.permute.xlu1 %761 }
 0x284   :  { %3778 = vmatpush3.msra.mxu1 %v843_v0  ;;  %v741_v34 = vmul.f32 %v4755_v30, %v676_v59 }
 0x285   :  { %3779 = vmatprep.subr.mxu1 %v842_v21 }
 0x286   :  { %3780 = vmatpush3.msra.mxu1 %v842_v21  ;;  %v837_v30 = vsel %vm138_vm1, %v772_v37, %v741_v34 }
 0x287   :  { %v671_v60 = vpop.permute.xlu0 %670  ;;  %3781 = vmatprep.subr.mxu1 %v841_v47 }
 0x288   :  { %3782 = vmatpush3.msra.mxu1 %v841_v47  ;;  %v740_v50 = vmul.f32 %v4751_v28, %v671_v60 }
 0x289   :  { %3783 = vmatprep.subr.mxu1 %v840_v32 }
 0x28a   :  { %3784 = vmatpush3.msra.mxu1 %v840_v32  ;;  %v836_v57 = vsel %vm138_vm1, %v767_v35, %v740_v50 }
 0x28b   :  { %v666_v10 = vpop.permute.xlu0 %665  ;;  %3785 = vmatprep.subr.mxu1 %v839_v48 }
 0x28c   :  { %3786 = vmatpush3.msra.mxu1 %v839_v48  ;;  %v739_v54 = vmul.f32 %v666_v10, %v4757_v31 }
 0x28d   :  { %3787 = vmatprep.subr.mxu1 %v838_v33 }
 0x28e   :  { %3788 = vmatpush3.msra.mxu1 %v838_v33  ;;  %v835_v26 = vsel %vm138_vm1, %v762_v18, %v739_v54 }
 0x28f   :  { %v661_v24 = vpop.permute.xlu0 %660  ;;  %3789 = vmatprep.subr.mxu1 %v837_v30 }
 0x290   :  { %3790 = vmatpush3.msra.mxu1 %v837_v30  ;;  %v738_v28 = vmul.f32 %v661_v24, %v4753_v29  ;;  %v125_v29 = vld [vmem:[#allocation7 + $0x28] sm:$0xff] }
 0x291   :  { %3791 = vmatprep.subr.mxu1 %v836_v57 }
 0x292   :  { %3792 = vmatpush3.msra.mxu1 %v836_v57 }
 0x293   :  { %v757_v61 = vpop.permute.xlu0 %756  ;;  %3793 = vmatprep.subr.mxu1 %v835_v26 }
 0x294   :  { %3794 = vmatpush3.msra.mxu1 %v835_v26  ;;  %v834_v31 = vsel %vm138_vm1, %v757_v61, %v738_v28 }
 0x295   :  { %3795 = vmatprep.subr.mxu1 %v834_v31 }
 0x296   :  { %3796 = vmatpush3.msra.mxu1 %v834_v31 }
 0x297   :  { %3798 = vmatmul.mubr.f32.vlgmr.msra.gmra.mxu1 %v121_v63  ;;  %v1237_v63 = vld [vmem:[#allocation10 + $0x10] sm:$0xff] }
 0x298   :  { %3800 = vmatprep.mubr.f32.mxu1 %v122_v2  ;;  %v1238_v2 = vld [vmem:[#allocation10 + $0x18] sm:$0xff] }
 0x29b   :  { %3801 = vmatmul.mubr.f32.gmra.mxu1 %v123_v3  ;;  %v1235_v3 = vld [vmem:[#allocation10] sm:$0xff] }
 0x29c   :  { %3803 = vmatprep.mubr.f32.mxu1 %v124_v62  ;;  %v1265_v62 = vpack.c.bf16 %v1238_v2, %v1237_v63 }
 0x29e   :  { %3821 = vmatprep.subr.bf16.mxu0 %v1265_v62 }
 0x29f   :  { %3804 = vmatmul.mubr.f32.gmra.mxu1 %v125_v29  ;;  %v1236_v29 = vld [vmem:[#allocation10 + $0x8] sm:$0xff]  ;;  %3822 = vmatpush3.bf16.msra.mxu0 %v1265_v62 }
 0x2a0   :  { %3806 = vmatprep.mubr.f32.mxu1 %v126_v8  ;;  %v1264_v8 = vpack.c.bf16 %v1236_v29, %v1235_v3 }
 0x2a2   :  { %3823 = vmatprep.subr.bf16.mxu0 %v1264_v8 }
 0x2a3   :  { %3807 = vmatmul.mubr.f32.gmra.mxu1 %v127_v46  ;;  %3824 = vmatpush3.bf16.msra.mxu0 %v1264_v8 }
 0x2a4   :  { %3809 = vmatprep.mubr.f32.mxu1 %v128_v9 }
 0x2a7   :  { %3810 = vmatmul.mubr.f32.gmra.mxu1 %v129_v38 }
 0x2a8   :  { %3812 = vmatprep.mubr.f32.mxu1 %v130_v11 }
 0x2ab   :  { %3813 = vmatmul.mubr.f32.gmra.mxu1 %v131_v12 }
 0x2ac   :  { %3815 = vmatprep.mubr.f32.mxu1 %v132_v19 }
 0x2af   :  { %3816 = vmatmul.mubr.f32.gmra.mxu1 %v133_v16 }
 0x2b0   :  { %3818 = vmatprep.mubr.f32.mxu1 %v134_v17 }
 0x2b3   :  { %3819 = vmatmul.mubr.f32.gmra.mxu1 %v135_v4 }
 0x2b4   :  { %3873 = vmatprep.mubr.f32.mxu1 %v5074_v15 }
 0x357   :  { %v5127_v20 = vpop.f32.mrf.mxu1 }
 0x358   :  { %v996_v58 = vsel %vm138_vm1, 0.0, %v5127_v20  ;;  %v1060_v46 = vmul.f32 %v5127_v20, %v5127_v20 }
 0x359   :  { %v5132_v52 = vpop.f32.mrf.mxu1  ;;  %v1012_v22 = vmul.f32 %v996_v58, %v996_v58 }
 0x35a   :  { %v995_v55 = vsel %vm138_vm1, 0.0, %v5132_v52  ;;  %v1059_v38 = vmul.f32 %v5132_v52, %v5132_v52 }
 0x35b   :  { %1029 = vadd.xlane.f32.xlu0 %v1012_v22  ;;  %v5137_v7 = vpop.f32.mrf.mxu1  ;;  %v1011_v53 = vmul.f32 %v995_v55, %v995_v55 }
 0x35c   :  { %v998_v15 = vsel %vm138_vm1, 0.0, %v5137_v7  ;;  %v1062_v17 = vmul.f32 %v5137_v7, %v5137_v7 }
 0x35d   :  { %1027 = vadd.xlane.f32.xlu1 %v1011_v53  ;;  %v5142_v14 = vpop.f32.mrf.mxu1  ;;  %v1014_v27 = vmul.f32 %v998_v15, %v998_v15 }
 0x35e   :  { %v997_v23 = vsel %vm138_vm1, 0.0, %v5142_v14  ;;  %v1061_v4 = vmul.f32 %v5142_v14, %v5142_v14 }
 0x35f   :  { %v5147_v51 = vpop.f32.mrf.mxu1  ;;  %v1013_v42 = vmul.f32 %v997_v23, %v997_v23 }
 0x360   :  { %v1000_v45 = vsel %vm138_vm1, 0.0, %v5147_v51 }
 0x361   :  { %1033 = vadd.xlane.f32.xlu1 %v1014_v27  ;;  %1031 = vadd.xlane.f32.xlu0 %v1013_v42  ;;  %v5152_v49 = vpop.f32.mrf.mxu1  ;;  %v1016_v56 = vmul.f32 %v1000_v45, %v1000_v45  ;;  %v1064_v42 = vmul.f32 %v5147_v51, %v5147_v51 }
 0x362   :  { %v999_v43 = vsel %vm138_vm1, 0.0, %v5152_v49  ;;  %v1063_v45 = vmul.f32 %v5152_v49, %v5152_v49 }
 0x363   :  { %v5157_v25 = vpop.f32.mrf.mxu1  ;;  %v1015_v39 = vmul.f32 %v999_v43, %v999_v43 }
 0x364   :  { %v1002_v1 = vsel %vm138_vm1, 0.0, %v5157_v25 }
 0x365   :  { %1037 = vadd.xlane.f32.xlu1 %v1016_v56  ;;  %1035 = vadd.xlane.f32.xlu0 %v1015_v39  ;;  %v5162_v13 = vpop.f32.mrf.mxu1  ;;  %v1018_v59 = vmul.f32 %v1002_v1, %v1002_v1 }
 0x366   :  { %v1001_v36 = vsel %vm138_vm1, 0.0, %v5162_v13 }
 0x367   :  { %v5167_v0 = vpop.f32.mrf.mxu1  ;;  %v1017_v40 = vmul.f32 %v1001_v36, %v1001_v36 }
 0x368   :  { %v1004_v6 = vsel %vm138_vm1, 0.0, %v5167_v0 }
 0x369   :  { %1041 = vadd.xlane.f32.xlu1 %v1018_v59  ;;  %1039 = vadd.xlane.f32.xlu0 %v1017_v40  ;;  %v5172_v21 = vpop.f32.mrf.mxu1  ;;  %v1020_v47 = vmul.f32 %v1004_v6, %v1004_v6 }
 0x36a   :  { %v1003_v37 = vsel %vm138_vm1, 0.0, %v5172_v21 }
 0x36b   :  { %v5177_v5 = vpop.f32.mrf.mxu1  ;;  %v1019_v60 = vmul.f32 %v1003_v37, %v1003_v37  ;;  %v1066_v37 = vmul.f32 %v5157_v25, %v5157_v25 }
 0x36c   :  { %v1006_v44 = vsel %vm138_vm1, 0.0, %v5177_v5 }
 0x36d   :  { %1045 = vadd.xlane.f32.xlu1 %v1020_v47  ;;  %1043 = vadd.xlane.f32.xlu0 %v1019_v60  ;;  %v5182_v32 = vpop.f32.mrf.mxu1  ;;  %v1022_v35 = vmul.f32 %v1006_v44, %v1006_v44  ;;  %v1065_v47 = vmul.f32 %v5162_v13, %v5162_v13 }
 0x36e   :  { %v1005_v34 = vsel %vm138_vm1, 0.0, %v5182_v32 }
 0x36f   :  { %v5187_v48 = vpop.f32.mrf.mxu1  ;;  %v1021_v10 = vmul.f32 %v1005_v34, %v1005_v34 }
 0x370   :  { %v1008_v50 = vsel %vm138_vm1, 0.0, %v5187_v48 }
 0x371   :  { %1049 = vadd.xlane.f32.xlu1 %v1022_v35  ;;  %1047 = vadd.xlane.f32.xlu0 %v1021_v10  ;;  %v5192_v33 = vpop.f32.mrf.mxu1  ;;  %v1024_v24 = vmul.f32 %v1008_v50, %v1008_v50 }
 0x372   :  { %v1007_v54 = vsel %vm138_vm1, 0.0, %v5192_v33 }
 0x373   :  { %v5197_v30 = vpop.f32.mrf.mxu1  ;;  %v1023_v57 = vmul.f32 %v1007_v54, %v1007_v54 }
 0x374   :  { %v1010_v18 = vsel %vm138_vm1, 0.0, %v5197_v30 }
 0x375   :  { %1053 = vadd.xlane.f32.xlu1 %v1024_v24  ;;  %1051 = vadd.xlane.f32.xlu0 %v1023_v57  ;;  %v5202_v28 = vpop.f32.mrf.mxu1  ;;  %v1026_v61 = vmul.f32 %v1010_v18, %v1010_v18  ;;  %v1068_v57 = vmul.f32 %v5167_v0, %v5167_v0  ;;  %v1067_v18 = vmul.f32 %v5172_v21, %v5172_v21 }
 0x376   :  { %v1009_v26 = vsel %vm138_vm1, 0.0, %v5202_v28 }
 0x377   :  { %v1025_v31 = vmul.f32 %v1009_v26, %v1009_v26 }
 0x379   :  { %1057 = vadd.xlane.f32.xlu1 %v1026_v61  ;;  %1055 = vadd.xlane.f32.xlu0 %v1025_v31 }
 0x3e4   :  { %v1030_v9 = vpop.xlane.xlu0 %1029 }
 0x3e5   :  { %v1076_v11 = vsub.f32 %v1060_v46, %v1030_v9  ;;  %v1070_v46 = vmul.f32 %v5177_v5, %v5177_v5  ;;  %v1069_v9 = vmul.f32 %v5182_v32, %v5182_v32 }
 0x3e6   :  { %v1028_v12 = vpop.xlane.xlu1 %1027 }
 0x3e7   :  { %v1092_v19 = vand.u32 2147483647, %v1076_v11  ;;  %v1075_v16 = vsub.f32 %v1059_v38, %v1028_v12 }
 0x3e9   :  { %v1108_v58 = vmax.f32 %v1092_v19, 1e-08  ;;  %v1091_v22 = vand.u32 2147483647, %v1075_v16 }
 0x3ea   :  { %v1034_v55 = vpop.xlane.xlu1 %1033  ;;  %v1032_v53 = vpop.xlane.xlu0 %1031 }
 0x3eb   :  { %4145 = vrsqrt.f32 %v1108_v58  ;;  %v1107_v15 = vmax.f32 %v1091_v22, 1e-08  ;;  %v1078_v23 = vsub.f32 %v1062_v17, %v1034_v55  ;;  %v1077_v27 = vsub.f32 %v1061_v4, %v1032_v53 }
 0x3ec   :  { %v1072_v55 = vmul.f32 %v5187_v48, %v5187_v48  ;;  %v1071_v53 = vmul.f32 %v5192_v33, %v5192_v33 }
 0x3ed   :  { %4147 = vrsqrt.f32 %v1107_v15  ;;  %v1094_v43 = vand.u32 2147483647, %v1078_v23  ;;  %v1093_v56 = vand.u32 2147483647, %v1077_v27 }
 0x3ee   :  { %v1038_v39 = vpop.xlane.xlu1 %1037  ;;  %v1036_v1 = vpop.xlane.xlu0 %1035 }
 0x3ef   :  { %v1110_v36 = vmax.f32 %v1094_v43, 1e-08  ;;  %v1109_v59 = vmax.f32 %v1093_v56, 1e-08  ;;  %v1080_v40 = vsub.f32 %v1064_v42, %v1038_v39  ;;  %v1079_v6 = vsub.f32 %v1063_v45, %v1036_v1 }
 0x3f1   :  { %4149 = vrsqrt.f32 %v1110_v36  ;;  %v1096_v60 = vand.u32 2147483647, %v1080_v40  ;;  %v1095_v44 = vand.u32 2147483647, %v1079_v6  ;;  %v1073_v40 = vmul.f32 %v5202_v28, %v5202_v28 }
 0x3f2   :  { %4151 = vrsqrt.f32 %v1109_v59  ;;  %v1042_v34 = vpop.xlane.xlu1 %1041  ;;  %v1040_v35 = vpop.xlane.xlu0 %1039  ;;  %v1074_v59 = vmul.f32 %v5197_v30, %v5197_v30 }
 0x3f3   :  { %v1112_v10 = vmax.f32 %v1096_v60, 1e-08  ;;  %v1111_v50 = vmax.f32 %v1095_v44, 1e-08  ;;  %v1082_v54 = vsub.f32 %v1066_v37, %v1042_v34  ;;  %v1081_v24 = vsub.f32 %v1065_v47, %v1040_v35 }
 0x3f5   :  { %4153 = vrsqrt.f32 %v1112_v10  ;;  %v1098_v26 = vand.u32 2147483647, %v1082_v54  ;;  %v1097_v61 = vand.u32 2147483647, %v1081_v24 }
 0x3f6   :  { %4155 = vrsqrt.f32 %v1111_v50  ;;  %v1046_v31 = vpop.xlane.xlu1 %1045  ;;  %v1044_v63 = vpop.xlane.xlu0 %1043 }
 0x3f7   :  { %v1114_v2 = vmax.f32 %v1098_v26, 1e-08  ;;  %v1113_v3 = vmax.f32 %v1097_v61, 1e-08  ;;  %v1084_v62 = vsub.f32 %v1068_v57, %v1046_v31  ;;  %v1083_v29 = vsub.f32 %v1067_v18, %v1044_v63 }
 0x3f8   :  { %v4146_v8 = vpop.eup %4145 }
 0x3f9   :  { %4157 = vrsqrt.f32 %v1114_v2  ;;  %v1100_v38 = vand.u32 2147483647, %v1084_v62  ;;  %v1099_v11 = vand.u32 2147483647, %v1083_v29  ;;  %1146 = vperm.xlu1 %4015, %v4146_v8  }
 0x3fa   :  { %v4148_v12 = vpop.eup %4147  ;;  %4159 = vrsqrt.f32 %v1113_v3  ;;  %v1050_v19 = vpop.xlane.xlu1 %1049 }
 0x3fb   :  { %v1048_v16 = vpop.xlane.xlu0 %1047  ;;  %v1116_v17 = vmax.f32 %v1100_v38, 1e-08  ;;  %v1115_v4 = vmax.f32 %v1099_v11, 1e-08  ;;  %v1086_v58 = vsub.f32 %v1070_v46, %v1050_v19  ;;  %1141 = vperm.xlu0 %4016, %v4148_v12  }
 0x3fc   :  { %v1085_v22 = vsub.f32 %v1069_v9, %v1048_v16 }
 0x3fd   :  { %4161 = vrsqrt.f32 %v1116_v17  ;;  %v1102_v15 = vand.u32 2147483647, %v1086_v58 }
 0x3fe   :  { %v1101_v23 = vand.u32 2147483647, %v1085_v22  ;;  %v4150_v27 = vpop.eup %4149  ;;  %4163 = vrsqrt.f32 %v1115_v4  ;;  %v1054_v42 = vpop.xlane.xlu1 %1053 }
 0x3ff   :  { %v1052_v45 = vpop.xlane.xlu0 %1051  ;;  %v4152_v43 = vpop.eup %4151  ;;  %v1118_v56 = vmax.f32 %v1102_v15, 1e-08  ;;  %v1088_v1 = vsub.f32 %v1072_v55, %v1054_v42  ;;  %1156 = vperm.xlu0 %4016, %v4150_v27  }
 0x400   :  { %v1117_v39 = vmax.f32 %v1101_v23, 1e-08  ;;  %v1087_v36 = vsub.f32 %v1071_v53, %v1052_v45  ;;  %1151 = vperm.xlu1 %4015, %v4152_v43  }
 0x401   :  { %4165 = vrsqrt.f32 %v1118_v56  ;;  %v1104_v6 = vand.u32 2147483647, %v1088_v1 }
 0x402   :  { %v1103_v37 = vand.u32 2147483647, %v1087_v36  ;;  %v4154_v47 = vpop.eup %4153  ;;  %4167 = vrsqrt.f32 %v1117_v39  ;;  %v1058_v60 = vpop.xlane.xlu1 %1057 }
 0x403   :  { %v1056_v44 = vpop.xlane.xlu0 %1055  ;;  %v4156_v34 = vpop.eup %4155  ;;  %v1120_v35 = vmax.f32 %v1104_v6, 1e-08  ;;  %v1090_v50 = vsub.f32 %v1074_v59, %v1058_v60  ;;  %1166 = vperm.xlu0 %4016, %v4154_v47  }
 0x404   :  { %v1119_v10 = vmax.f32 %v1103_v37, 1e-08  ;;  %v1089_v54 = vsub.f32 %v1073_v40, %v1056_v44  ;;  %1161 = vperm.xlu1 %4015, %v4156_v34  }
 0x405   :  { %4169 = vrsqrt.f32 %v1120_v35  ;;  %v1106_v24 = vand.u32 2147483647, %v1090_v50 }
 0x406   :  { %v1105_v57 = vand.u32 2147483647, %v1089_v54  ;;  %v4158_v18 = vpop.eup %4157  ;;  %4171 = vrsqrt.f32 %v1119_v10 }
 0x407   :  { %v4160_v26 = vpop.eup %4159  ;;  %v1122_v61 = vmax.f32 %v1106_v24, 1e-08  ;;  %1176 = vperm.xlu0 %4016, %v4158_v18  }
 0x408   :  { %v1121_v31 = vmax.f32 %v1105_v57, 1e-08  ;;  %1171 = vperm.xlu1 %4015, %v4160_v26  }
 0x409   :  { %4173 = vrsqrt.f32 %v1122_v61 }
 0x40a   :  { %v4162_v63 = vpop.eup %4161  ;;  %4175 = vrsqrt.f32 %v1121_v31 }
 0x40b   :  { %v4164_v2 = vpop.eup %4163  ;;  %1186 = vperm.xlu0 %4016, %v4162_v63  }
 0x40c   :  { %1181 = vperm.xlu1 %4015, %v4164_v2  }
 0x40e   :  { %v4166_v3 = vpop.eup %4165 }
 0x40f   :  { %v4168_v62 = vpop.eup %4167  ;;  %1196 = vperm.xlu0 %4016, %v4166_v3  }
 0x410   :  { %1191 = vperm.xlu1 %4015, %v4168_v62  }
 0x412   :  { %v4170_v29 = vpop.eup %4169 }
 0x413   :  { %v4172_v8 = vpop.eup %4171  ;;  %1206 = vperm.xlu0 %4016, %v4170_v29  }
 0x414   :  { %1201 = vperm.xlu1 %4015, %v4172_v8  }
 0x416   :  { %v4174_v46 = vpop.eup %4173 }
 0x417   :  { %v4176_v9 = vpop.eup %4175  ;;  %1216 = vperm.xlu0 %4016, %v4174_v46  }
 0x418   :  { %1211 = vperm.xlu1 %4015, %v4176_v9  }
 0x474   :  { %v1147_v38 = vpop.permute.xlu1 %1146 }
 0x475   :  { %v1220_v11 = vmul.f32 %v5127_v20, %v1147_v38 }
 0x476   :  { %v1142_v12 = vpop.permute.xlu0 %1141 }
 0x477   :  { %v1219_v19 = vmul.f32 %v1142_v12, %v5132_v52  ;;  %v1241_v16 = vmax.f32 %v1220_v11, 0.0 }
 0x479   :  { %v1240_v17 = vmax.f32 %v1219_v19, 0.0 }
 0x47a   :  { %v1157_v4 = vpop.permute.xlu0 %1156 }
 0x47b   :  { %v1256_v58 = vpack.c.bf16 %v1241_v16, %v1240_v17  ;;  %v1152_v22 = vpop.permute.xlu1 %1151  ;;  %v1222_v55 = vmul.f32 %v5137_v7, %v1157_v4 }
 0x47c   :  { %v1221_v53 = vmul.f32 %v1152_v22, %v5142_v14 }
 0x47d   :  { %v1243_v15 = vmax.f32 %v1222_v55, 0.0  ;;  %3825 = vmatprep.mubr.msk.bf16.mxu0 %vm1266_vm4, %v1256_v58 }
 0x47e   :  { %v1242_v23 = vmax.f32 %v1221_v53, 0.0  ;;  %v1167_v27 = vpop.permute.xlu0 %1166 }
 0x47f   :  { %v1162_v42 = vpop.permute.xlu1 %1161  ;;  %v1224_v20 = vmul.f32 %v5147_v51, %v1167_v27 }
 0x480   :  { %v1257_v45 = vpack.c.bf16 %v1243_v15, %v1242_v23  ;;  %v1223_v52 = vmul.f32 %v1162_v42, %v5152_v49 }
 0x481   :  { %v1245_v43 = vmax.f32 %v1224_v20, 0.0 }
 0x482   :  { %v1244_v56 = vmax.f32 %v1223_v52, 0.0  ;;  %3826 = vmatmul.mubr.msk.bf16.vlgmr.msra.gmra.mxu0 %vm1266_vm4, %v1257_v45  ;;  %v1177_v39 = vpop.permute.xlu0 %1176 }
 0x483   :  { %v1172_v1 = vpop.permute.xlu1 %1171  ;;  %v1226_v7 = vmul.f32 %v5157_v25, %v1177_v39 }
 0x484   :  { %v1258_v14 = vpack.c.bf16 %v1245_v43, %v1244_v56  ;;  %v1225_v36 = vmul.f32 %v1172_v1, %v5162_v13 }
 0x485   :  { %v1247_v59 = vmax.f32 %v1226_v7, 0.0 }
 0x486   :  { %v1246_v40 = vmax.f32 %v1225_v36, 0.0  ;;  %3829 = vmatprep.mubr.msk.bf16.mxu0 %vm1266_vm4, %v1258_v14  ;;  %v1187_v6 = vpop.permute.xlu0 %1186 }
 0x487   :  { %v1182_v51 = vpop.permute.xlu1 %1181  ;;  %v1228_v37 = vmul.f32 %v5167_v0, %v1187_v6 }
 0x488   :  { %v1259_v49 = vpack.c.bf16 %v1247_v59, %v1246_v40  ;;  %v1227_v47 = vmul.f32 %v1182_v51, %v5172_v21 }
 0x489   :  { %v1249_v60 = vmax.f32 %v1228_v37, 0.0 }
 0x48a   :  { %v1248_v44 = vmax.f32 %v1227_v47, 0.0  ;;  %3830 = vmatmul.mubr.msk.bf16.gmra.mxu0 %vm1266_vm4, %v1259_v49  ;;  %v1197_v34 = vpop.permute.xlu0 %1196 }
 0x48b   :  { %v1192_v25 = vpop.permute.xlu1 %1191  ;;  %v1230_v35 = vmul.f32 %v5177_v5, %v1197_v34 }
 0x48c   :  { %v1260_v13 = vpack.c.bf16 %v1249_v60, %v1248_v44  ;;  %v1229_v10 = vmul.f32 %v1192_v25, %v5182_v32 }
 0x48d   :  { %v1251_v50 = vmax.f32 %v1230_v35, 0.0 }
 0x48e   :  { %v1250_v54 = vmax.f32 %v1229_v10, 0.0  ;;  %3833 = vmatprep.mubr.msk.bf16.mxu0 %vm1266_vm4, %v1260_v13  ;;  %v1207_v24 = vpop.permute.xlu0 %1206 }
 0x48f   :  { %v1202_v0 = vpop.permute.xlu1 %1201  ;;  %v1232_v57 = vmul.f32 %v5187_v48, %v1207_v24 }
 0x490   :  { %v1261_v21 = vpack.c.bf16 %v1251_v50, %v1250_v54  ;;  %v1231_v18 = vmul.f32 %v1202_v0, %v5192_v33 }
 0x491   :  { %v1253_v26 = vmax.f32 %v1232_v57, 0.0 }
 0x492   :  { %v1252_v61 = vmax.f32 %v1231_v18, 0.0  ;;  %3834 = vmatmul.mubr.msk.bf16.gmra.mxu0 %vm1266_vm4, %v1261_v21  ;;  %v1217_v31 = vpop.permute.xlu0 %1216 }
 0x493   :  { %v1212_v5 = vpop.permute.xlu1 %1211  ;;  %v1234_v63 = vmul.f32 %v5197_v30, %v1217_v31 }
 0x494   :  { %v1262_v32 = vpack.c.bf16 %v1253_v26, %v1252_v61  ;;  %v1233_v2 = vmul.f32 %v1212_v5, %v5202_v28 }
 0x495   :  { %v1255_v3 = vmax.f32 %v1234_v63, 0.0 }
 0x496   :  { %v1254_v62 = vmax.f32 %v1233_v2, 0.0  ;;  %3837 = vmatprep.mubr.msk.bf16.mxu0 %vm1266_vm4, %v1262_v32 }
 0x498   :  { %v1263_v29 = vpack.c.bf16 %v1255_v3, %v1254_v62 }
 0x49a   :  { %3838 = vmatmul.mubr.msk.bf16.gmra.mxu0 %vm1266_vm4, %v1263_v29 }
 0x542   :  { %v5263_v48 = vpop.f32.mrf.mxu0 }
 0x543   :  { %v1390_v24 = vsel %vm138_vm1, 0.0, %v5263_v48 }
 0x544   :  { %v5265_v33 = vpop.f32.mrf.mxu0  ;;  %v1406_v26 = vmul.f32 %v1390_v24, %v1390_v24 }
 0x545   :  { %v1388_v31 = vsel %vm138_vm1, 0.0, %v5265_v33 }
 0x546   :  { %v5267_v8 = vpop.f32.mrf.mxu0  ;;  %v1404_v2 = vmul.f32 %v1388_v31, %v1388_v31 }
 0x547   :  { %v1391_v10 = vsel %vm138_vm1, 0.0, %v5267_v8 }
 0x548   :  { %v5269_v46 = vpop.f32.mrf.mxu0  ;;  %v1407_v21 = vmul.f32 %v1391_v10, %v1391_v10 }
 0x549   :  { %v1389_v18 = vsel %vm138_vm1, 0.0, %v5269_v46 }
 0x54a   :  { %v5271_v9 = vpop.f32.mrf.mxu0  ;;  %v1405_v32 = vmul.f32 %v1389_v18, %v1389_v18 }
 0x54b   :  { %v1394_v49 = vsel %vm138_vm1, 0.0, %v5271_v9 }
 0x54c   :  { %v5273_v30 = vpop.f32.mrf.mxu0  ;;  %v1410_v44 = vmul.f32 %v1394_v49, %v1394_v49 }
 0x54d   :  { %v1392_v25 = vsel %vm138_vm1, 0.0, %v5273_v30 }
 0x54e   :  { %v5275_v28 = vpop.f32.mrf.mxu0  ;;  %v1408_v54 = vmul.f32 %v1392_v25, %v1392_v25 }
 0x54f   :  { %v1395_v6 = vsel %vm138_vm1, 0.0, %v5275_v28 }
 0x550   :  { %v5277_v38 = vpop.f32.mrf.mxu0  ;;  %v1411_v47 = vmul.f32 %v1395_v6, %v1395_v6 }
 0x551   :  { %v1393_v60 = vsel %vm138_vm1, 0.0, %v5277_v38 }
 0x552   :  { %v5279_v11 = vpop.f32.mrf.mxu0  ;;  %v1409_v13 = vmul.f32 %v1393_v60, %v1393_v60 }
 0x553   :  { %v3559_v27 = vmul.f32 -1.442695, %v5279_v11  ;;  %v1398_v39 = vsel %vm138_vm1, 0.0, %v5279_v11 }
 0x554   :  { %v5281_v12 = vpop.f32.mrf.mxu0  ;;  %v1414_v14 = vmul.f32 %v1398_v39, %v1398_v39 }
 0x555   :  { %4177 = vpow2.f32 %v3559_v27  ;;  %v3557_v56 = vmul.f32 -1.442695, %v5281_v12  ;;  %v1396_v59 = vsel %vm138_vm1, 0.0, %v5281_v12 }
 0x556   :  { %v5283_v19 = vpop.f32.mrf.mxu0  ;;  %v1412_v51 = vmul.f32 %v1396_v59, %v1396_v59 }
 0x557   :  { %v1399_v52 = vsel %vm138_vm1, 0.0, %v5283_v19  ;;  %4179 = vpow2.f32 %v3557_v56  ;;  %v3560_v36 = vmul.f32 -1.442695, %v5283_v19 }
 0x558   :  { %v5285_v16 = vpop.f32.mrf.mxu0  ;;  %v1415_v1 = vmul.f32 %v1399_v52, %v1399_v52 }
 0x559   :  { %v1397_v7 = vsel %vm138_vm1, 0.0, %v5285_v16  ;;  %4181 = vpow2.f32 %v3560_v36  ;;  %v3558_v37 = vmul.f32 -1.442695, %v5285_v16 }
 0x55a   :  { %v5287_v17 = vpop.f32.mrf.mxu0  ;;  %v1413_v40 = vmul.f32 %v1397_v7, %v1397_v7 }
 0x55b   :  { %v1402_v4 = vsel %vm138_vm1, 0.0, %v5287_v17  ;;  %4183 = vpow2.f32 %v3558_v37  ;;  %v3563_v34 = vmul.f32 -1.442695, %v5287_v17 }
 0x55c   :  { %v5292_v58 = vpop.f32.mrf.mxu0  ;;  %v1418_v22 = vmul.f32 %v1402_v4, %v1402_v4 }
 0x55d   :  { %v1400_v20 = vsel %vm138_vm1, 0.0, %v5292_v58  ;;  %v3561_v50 = vmul.f32 -1.442695, %v5292_v58  ;;  %4185 = vpow2.f32 %v3563_v34 }
 0x55e   :  { %1448 = vadd.xlane.f32.xlu0 %v1418_v22  ;;  %v5294_v55 = vpop.f32.mrf.mxu0  ;;  %v1416_v43 = vmul.f32 %v1400_v20, %v1400_v20 }
 0x55f   :  { %v1403_v53 = vsel %vm138_vm1, 0.0, %v5294_v55  ;;  %4187 = vpow2.f32 %v3561_v50  ;;  %v3564_v61 = vmul.f32 -1.442695, %v5294_v55 }
 0x560   :  { %v5299_v15 = vpop.f32.mrf.mxu0  ;;  %v1419_v23 = vmul.f32 %v1403_v53, %v1403_v53 }
 0x561   :  { %v1401_v42 = vsel %vm138_vm1, 0.0, %v5299_v15  ;;  %v3562_v3 = vmul.f32 -1.442695, %v5299_v15 }
 0x562   :  { %1450 = vadd.xlane.f32.xlu1 %v1419_v23  ;;  %v1417_v45 = vmul.f32 %v1401_v42, %v1401_v42  ;;  %v4178_v35 = vpop.eup %4177  ;;  %v5351_v42 = vstv %s3540_s5 }
 0x563   :  { %v1526_v0 = vadd.f32 1.0, %v4178_v35 }
 0x564   :  { %1446 = vadd.xlane.f32.xlu0 %v1417_v45  ;;  %v4180_v57 = vpop.eup %4179 }
 0x565   :  { %4189 = vrcp.f32 %v1526_v0  ;;  %v1524_v5 = vadd.f32 1.0, %v4180_v57  ;;  %v3556_v57 = vmul.f32 -1.442695, %v5275_v28 }
 0x566   :  { %1444 = vadd.xlane.f32.xlu1 %v1416_v43  ;;  %v4182_v63 = vpop.eup %4181  ;;  %4191 = vpow2.f32 %v3564_v61 }
 0x567   :  { %4193 = vrcp.f32 %v1524_v5  ;;  %v1527_v62 = vadd.f32 1.0, %v4182_v63 }
 0x568   :  { %1442 = vadd.xlane.f32.xlu0 %v1415_v1  ;;  %v4184_v29 = vpop.eup %4183  ;;  %4195 = vpow2.f32 %v3562_v3 }
 0x569   :  { %4197 = vrcp.f32 %v1527_v62  ;;  %v1525_v4 = vadd.f32 1.0, %v4184_v29  ;;  %v3553_v62 = vmul.f32 -1.442695, %v5273_v30 }
 0x56a   :  { %1440 = vadd.xlane.f32.xlu1 %v1414_v14  ;;  %v4186_v22 = vpop.eup %4185 }
 0x56b   :  { %4199 = vrcp.f32 %v1525_v4  ;;  %v1530_v23 = vadd.f32 1.0, %v4186_v22  ;;  %v3552_v4 = vmul.f32 -1.442695, %v5267_v8 }
 0x56c   :  { %1438 = vadd.xlane.f32.xlu0 %v1413_v40  ;;  %v4188_v53 = vpop.eup %4187 }
 0x56d   :  { %4201 = vrcp.f32 %v1530_v23  ;;  %v1528_v45 = vadd.f32 1.0, %v4188_v53 }
 0x56e   :  { %1436 = vadd.xlane.f32.xlu1 %v1412_v51 }
 0x56f   :  { %4203 = vrcp.f32 %v1528_v45 }
 0x570   :  { %1434 = vadd.xlane.f32.xlu0 %v1411_v47 }
 0x572   :  { %1432 = vadd.xlane.f32.xlu1 %v1410_v44  ;;  %v4190_v27 = vpop.eup %4189 }
 0x573   :  { %v4192_v20 = vpop.eup %4191  ;;  %v1575_v52 = vmul.f32 %v4190_v27, %v5351_v42  ;;  %v3551_v27 = vmul.f32 -1.442695, %v5263_v48 }
 0x574   :  { %1430 = vadd.xlane.f32.xlu0 %v1409_v13  ;;  %v4194_v43 = vpop.eup %4193  ;;  %v1531_v39 = vadd.f32 1.0, %v4192_v20 }
 0x575   :  { %v4196_v56 = vpop.eup %4195  ;;  %v5354_v1 = vadd.f32 1.1, %v1575_v52  ;;  %v1573_v7 = vmul.f32 %v4194_v43, %v5351_v42 }
 0x576   :  { %1428 = vadd.xlane.f32.xlu1 %v1408_v54  ;;  %v4198_v14 = vpop.eup %4197  ;;  %4205 = vrcp.f32 %v1531_v39  ;;  %v1529_v36 = vadd.f32 1.0, %v4196_v56 }
 0x577   :  { %v5358_v59 = vadd.f32 1.1, %v1573_v7  ;;  %v1576_v40 = vmul.f32 %v4198_v14, %v5351_v42  ;;  %v3550_v14 = vmul.f32 -1.442695, %v5269_v46 }
 0x578   :  { %1426 = vadd.xlane.f32.xlu0 %v1407_v21  ;;  %v4200_v6 = vpop.eup %4199  ;;  %4207 = vrcp.f32 %v1529_v36  ;;  %v3555_v21 = vmul.f32 -1.442695, %v5271_v9 }
 0x579   :  { %v5362_v51 = vadd.f32 1.1, %v1576_v40  ;;  %v1574_v37 = vmul.f32 %v4200_v6, %v5351_v42  ;;  %4209 = vpow2.f32 %v3556_v57 }
 0x57a   :  { %1424 = vadd.xlane.f32.xlu1 %v1406_v26  ;;  %v4202_v49 = vpop.eup %4201  ;;  %4211 = vpow2.f32 %v3555_v21 }
 0x57b   :  { %v5366_v47 = vadd.f32 1.1, %v1574_v37  ;;  %v1579_v60 = vmul.f32 %v4202_v49, %v5351_v42 }
 0x57c   :  { %1422 = vadd.xlane.f32.xlu0 %v1405_v32  ;;  %v4204_v44 = vpop.eup %4203  ;;  %v3554_v32 = vmul.f32 -1.442695, %v5277_v38 }
 0x57d   :  { %v1595_v34 = vadd.f32 1.1, %v1579_v60  ;;  %v1577_v25 = vmul.f32 %v4204_v44, %v5351_v42 }
 0x57e   :  { %1420 = vadd.xlane.f32.xlu1 %v1404_v2 }
 0x57f   :  { %v5371_v13 = vadd.f32 1.1, %v1577_v25  ;;  %v1611_v53 = vmul.f32 %v1595_v34, %v1595_v34 }
 0x581   :  { %v3579_v45 = vadd.f32 -1.0, %v1611_v53 }
 0x583   :  { %v4206_v35 = vpop.eup %4205 }
 0x584   :  { %v1580_v10 = vmul.f32 %v4206_v35, %v5351_v42 }
 0x585   :  { %v4208_v50 = vpop.eup %4207 }
 0x586   :  { %v5375_v54 = vadd.f32 1.1, %v1580_v10  ;;  %v1578_v24 = vmul.f32 %v4208_v50, %v5351_v42  ;;  %v4210_v18 = vpop.eup %4209 }
 0x587   :  { %v4212_v26 = vpop.eup %4211  ;;  %v1523_v31 = vadd.f32 1.0, %v4210_v18  ;;  %v3549_v18 = vmul.f32 -1.442695, %v5265_v33 }
 0x588   :  { %v5379_v0 = vadd.f32 1.1, %v1578_v24  ;;  %v1522_v63 = vadd.f32 1.0, %v4212_v26 }
 0x58f   :  { %1921 = vperm.xlu1 %4015, %v5354_v1  }
 0x593   :  { %1911 = vperm.xlu1 %4015, %v5358_v59  }
 0x597   :  { %1926 = vperm.xlu1 %4015, %v5362_v51  }
 0x59b   :  { %1916 = vperm.xlu1 %4015, %v5366_v47  }
 0x59f   :  { %1941 = vperm.xlu1 %4015, %v1595_v34  }
 0x5a3   :  { %1931 = vperm.xlu1 %4015, %v5371_v13  }
 0x5a7   :  { %1946 = vperm.xlu1 %4015, %v5375_v54  }
 0x5ab   :  { %1936 = vperm.xlu1 %4015, %v5379_v0  }
 0x5e7   :  { %v1449_v61 = vpop.xlane.xlu0 %1448 }
 0x5e8   :  { %v1466_v5 = vmax.f32 %v1449_v61, 1e-08 }
 0x5ea   :  { %4213 = vrcp.f32 %v1466_v5 }
 0x5eb   :  { %v5385_v2 = vpop.xlane.xlu1 %1450  ;;  %4215 = vrcp.f32 %v1523_v31 }
 0x5ec   :  { %4217 = vrcp.f32 %v1522_v63 }
 0x5ed   :  { %v5387_v3 = vpop.xlane.xlu0 %1446  ;;  %4219 = vpow2.f32 %v3554_v32  ;;  %v1607_v32 = vmul.f32 %v5354_v1, %v5354_v1  ;;  %v1605_v1 = vmul.f32 %v5358_v59, %v5358_v59 }
 0x5ee   :  { %4221 = vpow2.f32 %v3553_v62 }
 0x5ef   :  { %v5390_v29 = vpop.xlane.xlu1 %1444  ;;  %4223 = vpow2.f32 %v3552_v4 }
 0x5f0   :  { %4225 = vpow2.f32 %v3551_v27 }
 0x5f1   :  { %v1443_v22 = vpop.xlane.xlu0 %1442 }
 0x5f2   :  { %v1463_v50 = vmax.f32 %v1443_v22, 1e-08  ;;  %v1464_v22 = vmax.f32 %v5390_v29, 1e-08  ;;  %v1467_v29 = vmax.f32 %v5385_v2, 1e-08 }
 0x5f3   :  { %v1441_v23 = vpop.xlane.xlu1 %1440  ;;  %v1465_v2 = vmax.f32 %v5387_v3, 1e-08 }
 0x5f4   :  { %v1462_v52 = vmax.f32 %v1441_v23, 1e-08 }
 0x5f5   :  { %v1439_v20 = vpop.xlane.xlu0 %1438 }
 0x5f6   :  { %4227 = vrcp.f32 %v1462_v52  ;;  %v1461_v61 = vmax.f32 %v1439_v20, 1e-08  ;;  %v3575_v20 = vadd.f32 -1.0, %v1607_v32 }
 0x5f7   :  { %v4214_v43 = vpop.eup %4213  ;;  %v1437_v56 = vpop.xlane.xlu1 %1436 }
 0x5f8   :  { %v1658_v39 = vmul.f32 %v4214_v43, %v3579_v45  ;;  %v4216_v7 = vpop.eup %4215  ;;  %v1460_v60 = vmax.f32 %v1437_v56, 1e-08 }
 0x5f9   :  { %v1435_v36 = vpop.xlane.xlu0 %1434  ;;  %v4218_v40 = vpop.eup %4217  ;;  %v1572_v34 = vmul.f32 %v4216_v7, %v5351_v42 }
 0x5fa   :  { %v1459_v6 = vmax.f32 %v1435_v36, 1e-08  ;;  %4229 = vrsqrt.f32 %v1658_v39  ;;  %v4220_v49 = vpop.eup %4219  ;;  %v1571_v25 = vmul.f32 %v4218_v40, %v5351_v42  ;;  %vm1761_vm5 = vcmp.eq.f32.partialorder %v1658_v39, inf }
 0x5fb   :  { %v1433_v37 = vpop.xlane.xlu1 %1432  ;;  %v1521_v35 = vadd.f32 1.0, %v4220_v49  ;;  %v4222_v10 = vpop.eup %4221  ;;  %v1588_v24 = vadd.f32 1.1, %v1572_v34  ;;  %v1764_v7 = vand.u32 2147483648, %v1658_v39  ;;  %vm1763_vm6 = vcmp.eq.f32.partialorder %v1658_v39, 0.0 }
 0x5fc   :  { %4231 = vrcp.f32 %v1459_v6  ;;  %v1458_v44 = vmax.f32 %v1433_v37, 1e-08  ;;  %v5397_v57 = vadd.f32 1.1, %v1571_v25  ;;  %v4224_v21 = vpop.eup %4223  ;;  %v1520_v26 = vadd.f32 1.0, %v4222_v10 }
 0x5fd   :  { %4233 = vpow2.f32 %v3550_v14  ;;  %v1604_v31 = vmul.f32 %v1588_v24, %v1588_v24  ;;  %v4226_v5 = vpop.eup %4225  ;;  %v1519_v63 = vadd.f32 1.0, %v4224_v21  ;;  %v1608_v34 = vmul.f32 %v5362_v51, %v5362_v51 }
 0x5fe   :  { %4235 = vrcp.f32 %v1458_v44  ;;  %v1603_v62 = vmul.f32 %v5397_v57, %v5397_v57  ;;  %v1518_v23 = vadd.f32 1.0, %v4226_v5  ;;  %v3573_v44 = vadd.f32 -1.0, %v1605_v1 }
 0x5ff   :  { %4237 = vrcp.f32 %v1460_v60  ;;  %v3572_v27 = vadd.f32 -1.0, %v1604_v31  ;;  %v1606_v21 = vmul.f32 %v5366_v47, %v5366_v47  ;;  %v1429_v31 = vpop.xlane.xlu1 %1428 }
 0x600   :  { %4239 = vrcp.f32 %v1521_v35  ;;  %v3571_v43 = vadd.f32 -1.0, %v1603_v62  ;;  %v1431_v35 = vpop.xlane.xlu0 %1430  ;;  %v1456_v62 = vmax.f32 %v1429_v31, 1e-08 }
 0x601   :  { %4241 = vrcp.f32 %v1463_v50  ;;  %v3576_v50 = vadd.f32 -1.0, %v1608_v34  ;;  %v1457_v51 = vmax.f32 %v1431_v35, 1e-08  ;;  %v3574_v47 = vadd.f32 -1.0, %v1606_v21 }
 0x602   :  { %4243 = vpow2.f32 %v3549_v18 }
 0x603   :  { %v4228_v4 = vpop.eup %4227  ;;  %4245 = vrcp.f32 %v1520_v26 }
 0x604   :  { %4247 = vrcp.f32 %v1461_v61  ;;  %v5410_v6 = vmul.f32 %v4228_v4, %v3575_v20  ;;  %v1427_v20 = vpop.xlane.xlu0 %1426 }
 0x605   :  { %4249 = vrcp.f32 %v1519_v63 }
 0x606   :  { %4251 = vrcp.f32 %v1464_v22  ;;  %vm1733_vm11 = vcmp.eq.f32.partialorder %v5410_v6, inf  ;;  %vm1735_vm12 = vcmp.eq.f32.partialorder %v5410_v6, 0.0 }
 0x607   :  { %v4230_v53 = vpop.eup %4229 }
 0x608   :  { %v1760_v52 = vmul.f32 %v4230_v53, %v1658_v39 }
 0x609   :  { %v4232_v45 = vpop.eup %4231 }
 0x60a   :  { %v4234_v56 = vpop.eup %4233  ;;  %v5407_v14 = vmul.f32 %v4232_v45, %v3572_v27  ;;  %v1762_v40 = vsel %vm1761_vm5, %v1658_v39, %v1760_v52 }
 0x60b   :  { %v4236_v36 = vpop.eup %4235  ;;  %v1765_v37 = vsel %vm1763_vm6, %v1764_v7, %v1762_v40  ;;  %v1517_v59 = vadd.f32 1.0, %v4234_v56 }
 0x60c   :  { %v5412_v49 = vmul.f32 %v4236_v36, %v3571_v43  ;;  %4253 = vrsqrt.f32 %v5407_v14  ;;  %v4238_v60 = vpop.eup %4237  ;;  %1845 = vperm.xlu1 %4015, %v1765_v37   ;;  %v1455_v36 = vmax.f32 %v1427_v20, 1e-08  ;;  %vm1712_vm9 = vcmp.eq.f32.partialorder %v5407_v14, inf }
 0x60d   :  { %4255 = vrcp.f32 %v1518_v23  ;;  %v4240_v39 = vpop.eup %4239  ;;  %v5419_v25 = vmul.f32 %v4238_v60, %v3573_v44  ;;  %v1610_v60 = vmul.f32 %v5379_v0, %v5379_v0  ;;  %v1715_v31 = vand.u32 2147483648, %v5407_v14 }
 0x60e   :  { %4257 = vrsqrt.f32 %v5412_v49  ;;  %v4242_v10 = vpop.eup %4241  ;;  %v1570_v26 = vmul.f32 %v4240_v39, %v5351_v42  ;;  %vm1705_vm7 = vcmp.eq.f32.partialorder %v5412_v49, inf  ;;  %v1708_v44 = vand.u32 2147483648, %v5412_v49 }
 0x60f   :  { %4259 = vrcp.f32 %v1467_v29  ;;  %v4244_v18 = vpop.eup %4243  ;;  %v5425_v3 = vmul.f32 %v4242_v10, %v3576_v50  ;;  %vm1707_vm8 = vcmp.eq.f32.partialorder %v5412_v49, 0.0  ;;  %vm1714_vm10 = vcmp.eq.f32.partialorder %v5407_v14, 0.0 }
 0x610   :  { %4261 = vrsqrt.f32 %v5410_v6  ;;  %1906 = vperm.xlu1 %4015, %v1588_v24   ;;  %v4246_v61 = vpop.eup %4245  ;;  %v1609_v24 = vmul.f32 %v5371_v13, %v5371_v13  ;;  %v1516_v32 = vadd.f32 1.0, %v4244_v18  ;;  %v1586_v4 = vadd.f32 1.1, %v1570_v26 }
 0x611   :  { %4263 = vrcp.f32 %v1517_v59  ;;  %v4248_v5 = vpop.eup %4247  ;;  %v1569_v22 = vmul.f32 %v4246_v61, %v5351_v42  ;;  %v1612_v13 = vmul.f32 %v5375_v54, %v5375_v54  ;;  %v1425_v59 = vpop.xlane.xlu1 %1424  ;;  %vm1719_vm13 = vcmp.eq.f32.partialorder %v5419_v25, inf }
 0x612   :  { %4265 = vrcp.f32 %v1465_v2  ;;  %v4250_v63 = vpop.eup %4249  ;;  %v5432_v23 = vmul.f32 %v4248_v5, %v3574_v47  ;;  %v3577_v45 = vadd.f32 -1.0, %v1609_v24  ;;  %v1454_v21 = vmax.f32 %v1425_v59, 1e-08  ;;  %v1423_v61 = vpop.xlane.xlu0 %1422 }
 0x613   :  { %4267 = vrsqrt.f32 %v5419_v25  ;;  %v4252_v53 = vpop.eup %4251  ;;  %v1568_v52 = vmul.f32 %v4250_v63, %v5351_v42  ;;  %v1585_v1 = vadd.f32 1.1, %v1569_v22  ;;  %v3580_v37 = vadd.f32 -1.0, %v1612_v13 }
 0x614   :  { %1901 = vperm.xlu1 %4015, %v5397_v57   ;;  %4269 = vrcp.f32 %v1457_v51  ;;  %v5438_v56 = vmul.f32 %v4252_v53, %v3577_v45  ;;  %v1602_v5 = vmul.f32 %v1586_v4, %v1586_v4  ;;  %v1453_v22 = vmax.f32 %v1423_v61, 1e-08 }
 0x615   :  { %4271 = vrsqrt.f32 %v5425_v3  ;;  %v1584_v34 = vadd.f32 1.1, %v1568_v52  ;;  %v1421_v53 = vpop.xlane.xlu1 %1420  ;;  %v1601_v20 = vmul.f32 %v1585_v1, %v1585_v1  ;;  %vm1721_vm14 = vcmp.eq.f32.partialorder %v5419_v25, 0.0 }
 0x616   :  { %4273 = vrcp.f32 %v1516_v32  ;;  %v3570_v13 = vadd.f32 -1.0, %v1602_v5  ;;  %vm1740_vm15 = vcmp.eq.f32.partialorder %v5425_v3, inf  ;;  %vm1742_vm0 = vcmp.eq.f32.partialorder %v5425_v3, 0.0 }
 0x617   :  { %4275 = vrcp.f32 %v1456_v62  ;;  %vm1726_vm2 = vcmp.eq.f32.partialorder %v5432_v23, inf  ;;  %vm1728_vm3 = vcmp.eq.f32.partialorder %v5432_v23, 0.0  ;;  %vm1747_vm5 = vcmp.eq.f32.partialorder %v5438_v56, inf }
 0x618   :  { %1896 = vperm.xlu1 %4015, %v1586_v4   ;;  %4277 = vrsqrt.f32 %v5432_v23  ;;  %vm1749_vm6 = vcmp.eq.f32.partialorder %v5438_v56, 0.0 }
 0x619   :  { %v4254_v27 = vpop.eup %4253  ;;  %4279 = vrsqrt.f32 %v5438_v56 }
 0x61a   :  { %v4256_v57 = vpop.eup %4255  ;;  %v1711_v40 = vmul.f32 %v4254_v27, %v5407_v14  ;;  %4281 = vrcp.f32 %v1455_v36 }
 0x61b   :  { %v4258_v43 = vpop.eup %4257  ;;  %v1567_v39 = vmul.f32 %v4256_v57, %v5351_v42 }
 0x61c   :  { %v4260_v7 = vpop.eup %4259  ;;  %v1704_v29 = vmul.f32 %v4258_v43, %v5412_v49  ;;  %1891 = vperm.xlu1 %4015, %v1585_v1   ;;  %v1713_v18 = vsel %vm1712_vm9, %v5407_v14, %v1711_v40  ;;  %v1736_v14 = vand.u32 2147483648, %v5410_v6  ;;  %v1452_v43 = vmax.f32 %v1421_v53, 1e-08 }
 0x61d   :  { %v4262_v54 = vpop.eup %4261  ;;  %v5450_v10 = vmul.f32 %v4260_v7, %v3580_v37  ;;  %v1583_v24 = vadd.f32 1.1, %v1567_v39  ;;  %v1716_v47 = vsel %vm1714_vm10, %v1715_v31, %v1713_v18  ;;  %v3569_v37 = vadd.f32 -1.0, %v1601_v20 }
 0x61e   :  { %v1706_v2 = vsel %vm1705_vm7, %v5412_v49, %v1704_v29  ;;  %v4264_v35 = vpop.eup %4263  ;;  %v1732_v51 = vmul.f32 %v4262_v54, %v5410_v6  ;;  %v3578_v49 = vadd.f32 -1.0, %v1610_v60  ;;  %v1600_v60 = vmul.f32 %v1584_v34, %v1584_v34 }
 0x61f   :  { %v1709_v50 = vsel %vm1707_vm8, %v1708_v44, %v1706_v2  ;;  %v4266_v0 = vpop.eup %4265  ;;  %v1566_v63 = vmul.f32 %v4264_v35, %v5351_v42  ;;  %4283 = vrsqrt.f32 %v5450_v10  ;;  %vm1768_vm7 = vcmp.eq.f32.partialorder %v5450_v10, inf }
 0x620   :  { %1805 = vperm.xlu0 %4016, %v1709_v50   ;;  %v4268_v26 = vpop.eup %4267  ;;  %1886 = vperm.xlu1 %4015, %v1584_v34   ;;  %v5459_v32 = vmul.f32 %v4266_v0, %v3578_v49  ;;  %4285 = vrcp.f32 %v1454_v21  ;;  %v1734_v27 = vsel %vm1733_vm11, %v5410_v6, %v1732_v51  ;;  %v1722_v6 = vand.u32 2147483648, %v5419_v25 }
 0x621   :  { %v4270_v62 = vpop.eup %4269  ;;  %v1718_v4 = vmul.f32 %v4268_v26, %v5419_v25  ;;  %v1582_v57 = vadd.f32 1.1, %v1566_v63  ;;  %v1737_v7 = vsel %vm1735_vm12, %v1736_v14, %v1734_v27  ;;  %v1743_v0 = vand.u32 2147483648, %v5425_v3 }
 0x622   :  { %v4272_v45 = vpop.eup %4271  ;;  %4287 = vrsqrt.f32 %v5459_v32  ;;  %v5469_v29 = vmul.f32 %v4270_v62, %v3570_v13  ;;  %v1599_v21 = vmul.f32 %v1583_v24, %v1583_v24  ;;  %vm1770_vm8 = vcmp.eq.f32.partialorder %v5450_v10, 0.0 }
 0x623   :  { %v4274_v52 = vpop.eup %4273  ;;  %4289 = vrcp.f32 %v1453_v22  ;;  %v1720_v40 = vsel %vm1719_vm13, %v5419_v25, %v1718_v4  ;;  %v1739_v54 = vmul.f32 %v4272_v45, %v5425_v3  ;;  %v3568_v25 = vadd.f32 -1.0, %v1600_v60 }
 0x624   :  { %1810 = vperm.xlu0 %4016, %v1716_v47   ;;  %1881 = vperm.xlu1 %4015, %v1583_v24   ;;  %v4276_v36 = vpop.eup %4275  ;;  %4291 = vrcp.f32 %v1452_v43  ;;  %v1723_v59 = vsel %vm1721_vm14, %v1722_v6, %v1720_v40  ;;  %v1565_v34 = vmul.f32 %v4274_v52, %v5351_v42  ;;  %v1729_v42 = vand.u32 2147483648, %v5432_v23 }
 0x625   :  { %v4278_v1 = vpop.eup %4277  ;;  %v5476_v2 = vmul.f32 %v4276_v36, %v3569_v37  ;;  %v1741_v39 = vsel %vm1740_vm15, %v5425_v3, %v1739_v54  ;;  %4293 = vrsqrt.f32 %v5469_v29  ;;  %v3567_v24 = vadd.f32 -1.0, %v1599_v21 }
 0x626   :  { %v4280_v44 = vpop.eup %4279  ;;  %v1725_v35 = vmul.f32 %v4278_v1, %v5432_v23  ;;  %v1744_v18 = vsel %vm1742_vm0, %v1743_v0, %v1741_v39  ;;  %v5491_v5 = vadd.f32 1.1, %v1565_v34  ;;  %v1598_v3 = vmul.f32 %v1582_v57, %v1582_v57 }
 0x627   :  { %v4282_v50 = vpop.eup %4281  ;;  %v1746_v61 = vmul.f32 %v4280_v44, %v5438_v56  ;;  %4295 = vrsqrt.f32 %v5476_v2  ;;  %v1750_v4 = vand.u32 2147483648, %v5438_v56  ;;  %vm1754_vm9 = vcmp.eq.f32.partialorder %v5459_v32, inf }
 0x628   :  { %1825 = vperm.xlu0 %4016, %v1737_v7   ;;  %1876 = vperm.xlu1 %4015, %v1582_v57   ;;  %v5485_v26 = vmul.f32 %v4282_v50, %v3568_v25  ;;  %v1727_v49 = vsel %vm1726_vm2, %v5432_v23, %v1725_v35  ;;  %v1597_v45 = vmul.f32 %v5491_v5, %v5491_v5  ;;  %v3566_v23 = vadd.f32 -1.0, %v1598_v3 }
 0x629   :  { %v1730_v63 = vsel %vm1728_vm3, %v1729_v42, %v1727_v49  ;;  %v1748_v22 = vsel %vm1747_vm5, %v5438_v56, %v1746_v61  ;;  %v1771_v7 = vand.u32 2147483648, %v5450_v10  ;;  %v1757_v37 = vand.u32 2147483648, %v5459_v32 }
 0x62a   :  { %4297 = vrsqrt.f32 %v5485_v26  ;;  %v1751_v14 = vsel %vm1749_vm6, %v1750_v4, %v1748_v22  ;;  %v3565_v36 = vadd.f32 -1.0, %v1597_v45  ;;  %vm1756_vm10 = vcmp.eq.f32.partialorder %v5459_v32, 0.0  ;;  %v1922_v4 = vpop.permute.xlu1 %1921 }
 0x62b   :  { %vm1698_vm11 = vcmp.eq.f32.partialorder %v5469_v29, inf  ;;  %v1701_v39 = vand.u32 2147483648, %v5469_v29  ;;  %vm1700_vm12 = vcmp.eq.f32.partialorder %v5469_v29, 0.0  ;;  %vm1691_vm13 = vcmp.eq.f32.partialorder %v5476_v2, inf }
 0x62c   :  { %1815 = vperm.xlu0 %4016, %v1723_v59   ;;  %v4284_v51 = vpop.eup %4283  ;;  %v1694_v34 = vand.u32 2147483648, %v5476_v2  ;;  %vm1693_vm14 = vcmp.eq.f32.partialorder %v5476_v2, 0.0  ;;  %vm1684_vm15 = vcmp.eq.f32.partialorder %v5485_v26, inf  ;;  %vm1686_vm0 = vcmp.eq.f32.partialorder %v5485_v26, 0.0 }
 0x62d   :  { %v4286_v31 = vpop.eup %4285  ;;  %v1767_v53 = vmul.f32 %v4284_v51, %v5450_v10  ;;  %v1687_v51 = vand.u32 2147483648, %v5485_v26 }
 0x62e   :  { %v5495_v62 = vmul.f32 %v4286_v31, %v3567_v24  ;;  %v1912_v45 = vpop.permute.xlu1 %1911 }
 0x62f   :  { %v4288_v47 = vpop.eup %4287  ;;  %v1769_v57 = vsel %vm1768_vm7, %v5450_v10, %v1767_v53 }
 0x630   :  { %1830 = vperm.xlu0 %4016, %v1744_v18   ;;  %v4290_v27 = vpop.eup %4289  ;;  %v1753_v52 = vmul.f32 %v4288_v47, %v5459_v32  ;;  %4299 = vrsqrt.f32 %v5495_v62  ;;  %v1772_v40 = vsel %vm1770_vm8, %v1771_v7, %v1769_v57  ;;  %vm1677_vm2 = vcmp.eq.f32.partialorder %v5495_v62, inf }
 0x631   :  { %v4292_v13 = vpop.eup %4291  ;;  %v1632_v20 = vmul.f32 %v4290_v27, %v3566_v23  ;;  %v1680_v42 = vand.u32 2147483648, %v5495_v62  ;;  %vm1679_vm3 = vcmp.eq.f32.partialorder %v5495_v62, 0.0 }
 0x632   :  { %v4294_v43 = vpop.eup %4293  ;;  %v1630_v56 = vmul.f32 %v4292_v13, %v3565_v36  ;;  %v1755_v54 = vsel %vm1754_vm9, %v5459_v32, %v1753_v52 }
 0x633   :  { %v1697_v1 = vmul.f32 %v4294_v43, %v5469_v29  ;;  %4301 = vrsqrt.f32 %v1632_v20  ;;  %v1758_v60 = vsel %vm1756_vm10, %v1757_v37, %v1755_v54  ;;  %vm1670_vm5 = vcmp.eq.f32.partialorder %v1632_v20, inf }
 0x634   :  { %1820 = vperm.xlu0 %4016, %v1730_v63   ;;  %v4296_v6 = vpop.eup %4295  ;;  %4303 = vrsqrt.f32 %v1630_v56  ;;  %v1673_v47 = vand.u32 2147483648, %v1632_v20  ;;  %vm1672_vm6 = vcmp.eq.f32.partialorder %v1632_v20, 0.0  ;;  %vm1663_vm7 = vcmp.eq.f32.partialorder %v1630_v56, inf }
 0x635   :  { %v1699_v10 = vsel %vm1698_vm11, %v5469_v29, %v1697_v1  ;;  %v1690_v59 = vmul.f32 %v4296_v6, %v5476_v2  ;;  %v1666_v53 = vand.u32 2147483648, %v1630_v56  ;;  %vm1665_vm8 = vcmp.eq.f32.partialorder %v1630_v56, 0.0 }
 0x636   :  { %v1702_v35 = vsel %vm1700_vm12, %v1701_v39, %v1699_v10 }
 0x637   :  { %v4298_v44 = vpop.eup %4297  ;;  %v1692_v32 = vsel %vm1691_vm13, %v5476_v2, %v1690_v59 }
 0x638   :  { %1835 = vperm.xlu0 %4016, %v1751_v14   ;;  %v1683_v50 = vmul.f32 %v4298_v44, %v5485_v26  ;;  %v1695_v25 = vsel %vm1693_vm14, %v1694_v34, %v1692_v32 }
 0x63a   :  { %v1685_v21 = vsel %vm1684_vm15, %v5485_v26, %v1683_v50 }
 0x63b   :  { %v1688_v49 = vsel %vm1686_vm0, %v1687_v51, %v1685_v21 }
 0x63c   :  { %1850 = vperm.xlu0 %4016, %v1772_v40  }
 0x63d   :  { %v4300_v0 = vpop.eup %4299 }
 0x63e   :  { %v1676_v29 = vmul.f32 %v4300_v0, %v5495_v62 }
 0x640   :  { %1840 = vperm.xlu0 %4016, %v1758_v60   ;;  %v4302_v18 = vpop.eup %4301  ;;  %v1678_v61 = vsel %vm1677_vm2, %v5495_v62, %v1676_v29  ;;  %v1927_v62 = vpop.permute.xlu1 %1926 }
 0x641   :  { %v1669_v2 = vmul.f32 %v4302_v18, %v1632_v20  ;;  %v4304_v31 = vpop.eup %4303  ;;  %v1681_v24 = vsel %vm1679_vm3, %v1680_v42, %v1678_v61 }
 0x642   :  { %v1662_v63 = vmul.f32 %v4304_v31, %v1630_v56 }
 0x643   :  { %v1671_v3 = vsel %vm1670_vm5, %v1632_v20, %v1669_v2 }
 0x644   :  { %1800 = vperm.xlu0 %4016, %v1702_v35   ;;  %v1674_v26 = vsel %vm1672_vm6, %v1673_v47, %v1671_v3  ;;  %v1664_v22 = vsel %vm1663_vm7, %v1630_v56, %v1662_v63  ;;  %v1917_v23 = vpop.permute.xlu1 %1916 }
 0x645   :  { %v1667_v27 = vsel %vm1665_vm8, %v1666_v53, %v1664_v22 }
 0x648   :  { %1795 = vperm.xlu0 %4016, %v1695_v25   ;;  %v1942_v14 = vpop.permute.xlu1 %1941 }
 0x64c   :  { %1790 = vperm.xlu0 %4016, %v1688_v49   ;;  %v1932_v13 = vpop.permute.xlu1 %1931 }
 0x650   :  { %1785 = vperm.xlu0 %4016, %v1681_v24   ;;  %v1947_v43 = vpop.permute.xlu1 %1946 }
 0x654   :  { %1780 = vperm.xlu0 %4016, %v1674_v26   ;;  %v1937_v7 = vpop.permute.xlu1 %1936 }
 0x658   :  { %1775 = vperm.xlu0 %4016, %v1667_v27  }
 0x65c   :  { %1871 = vperm.xlu0 %4016, %v5491_v5  }
 0x687   :  { %v1846_v40 = vpop.permute.xlu1 %1845 }
 0x688   :  { %v1867_v5 = vmul.f32 %v5287_v17, %v1846_v40  ;;  %v4508_v40 = vld [vmem:[#allocation7 + $0x60] sm:$0xff] }
 0x68a   :  { %v1963_v32 = vsel %vm138_vm1, %v1942_v14, %v1867_v5  ;;  %v4499_v14 = vld [vmem:[#allocation7 + $0x18] sm:$0xff] }
 0x68b   :  { %v1907_v56 = vpop.permute.xlu1 %1906 }
 0x68f   :  { %v1902_v37 = vpop.permute.xlu1 %1901 }
 0x693   :  { %v1897_v50 = vpop.permute.xlu1 %1896 }
 0x69b   :  { %v1806_v57 = vpop.permute.xlu0 %1805 }
 0x69c   :  { %v1859_v49 = vmul.f32 %v5271_v9, %v1806_v57  ;;  %v4502_v57 = vld [vmem:[#allocation7 + $0x30] sm:$0xff] }
 0x69e   :  { %v1955_v9 = vsel %vm138_vm1, %v1902_v37, %v1859_v49 }
 0x69f   :  { %v1811_v52 = vpop.permute.xlu0 %1810 }
 0x6a0   :  { %v1860_v18 = vmul.f32 %v5275_v28, %v1811_v52  ;;  %v4503_v52 = vld [vmem:[#allocation7 + $0x38] sm:$0xff] }
 0x6a2   :  { %v1956_v28 = vsel %vm138_vm1, %v1907_v56, %v1860_v18  ;;  %v4511_v56 = vld [vmem:[#allocation7 + $0x78] sm:$0xff] }
 0x6a3   :  { %v1826_v20 = vpop.permute.xlu0 %1825 }
 0x6a4   :  { %v1863_v34 = vmul.f32 %v5279_v11, %v1826_v20  ;;  %v4505_v20 = vld [vmem:[#allocation7 + $0x48] sm:$0xff] }
 0x6a6   :  { %v1959_v11 = vsel %vm138_vm1, %v1922_v4, %v1863_v34 }
 0x6a7   :  { %v1816_v36 = vpop.permute.xlu0 %1815 }
 0x6a8   :  { %v1861_v29 = vmul.f32 %v1816_v36, %v5281_v12  ;;  %v4507_v36 = vld [vmem:[#allocation7 + $0x58] sm:$0xff] }
 0x6aa   :  { %v1957_v61 = vsel %vm138_vm1, %v1912_v45, %v1861_v29 }
 0x6ab   :  { %v1831_v54 = vpop.permute.xlu0 %1830 }
 0x6ac   :  { %v1864_v0 = vmul.f32 %v5283_v19, %v1831_v54  ;;  %v1892_v19 = vpop.permute.xlu1 %1891  ;;  %v4509_v54 = vld [vmem:[#allocation7 + $0x68] sm:$0xff] }
 0x6ae   :  { %v1960_v25 = vsel %vm138_vm1, %v1927_v62, %v1864_v0  ;;  %v4497_v62 = vld [vmem:[#allocation7 + $0x8] sm:$0xff] }
 0x6af   :  { %v1821_v1 = vpop.permute.xlu0 %1820 }
 0x6b0   :  { %v1887_v12 = vpop.permute.xlu1 %1886 }
 0x6b3   :  { %v1836_v6 = vpop.permute.xlu0 %1835 }
 0x6b4   :  { %v1865_v39 = vmul.f32 %v1836_v6, %v5292_v58 }
 0x6b6   :  { %v1961_v58 = vsel %vm138_vm1, %v1932_v13, %v1865_v39  ;;  %v4500_v13 = vld [vmem:[#allocation7 + $0x20] sm:$0xff] }
 0x6b7   :  { %v1851_v60 = vpop.permute.xlu0 %1850 }
 0x6b8   :  { %v1868_v10 = vmul.f32 %v5294_v55, %v1851_v60 }
 0x6ba   :  { %v1964_v59 = vsel %vm138_vm1, %v1947_v43, %v1868_v10  ;;  %v4504_v43 = vld [vmem:[#allocation7 + $0x40] sm:$0xff] }
 0x6bb   :  { %3841 = vmatprep.subr.mxu1 %v1964_v59  ;;  %v1841_v44 = vpop.permute.xlu0 %1840 }
 0x6bc   :  { %v1866_v35 = vmul.f32 %v1841_v44, %v5299_v15  ;;  %3842 = vmatpush3.msra.mxu1 %v1964_v59  ;;  %v1862_v15 = vmul.f32 %v1821_v1, %v5285_v16  ;;  %v4510_v1 = vld [vmem:[#allocation7 + $0x70] sm:$0xff] }
 0x6bd   :  { %3843 = vmatprep.subr.mxu1 %v1963_v32 }
 0x6be   :  { %3844 = vmatpush3.msra.mxu1 %v1963_v32  ;;  %v1962_v17 = vsel %vm138_vm1, %v1937_v7, %v1866_v35  ;;  %v1958_v16 = vsel %vm138_vm1, %v1917_v23, %v1862_v15  ;;  %v4498_v23 = vld [vmem:[#allocation7 + $0x10] sm:$0xff] }
 0x6bf   :  { %3845 = vmatprep.subr.mxu1 %v1962_v17  ;;  %v1801_v55 = vpop.permute.xlu0 %1800  ;;  %v4506_v7 = vld [vmem:[#allocation7 + $0x50] sm:$0xff] }
 0x6c0   :  { %3846 = vmatpush3.msra.mxu1 %v1962_v17  ;;  %v1858_v2 = vmul.f32 %v1801_v55, %v5277_v38  ;;  %v1882_v38 = vpop.permute.xlu1 %1881 }
 0x6c1   :  { %3847 = vmatprep.subr.mxu1 %v1961_v58 }
 0x6c2   :  { %3848 = vmatpush3.msra.mxu1 %v1961_v58  ;;  %v1954_v3 = vsel %vm138_vm1, %v1897_v50, %v1858_v2 }
 0x6c3   :  { %3849 = vmatprep.subr.mxu1 %v1960_v25  ;;  %v1796_v21 = vpop.permute.xlu0 %1795 }
 0x6c4   :  { %3850 = vmatpush3.msra.mxu1 %v1960_v25  ;;  %v1857_v42 = vmul.f32 %v1796_v21, %v5273_v30  ;;  %v1877_v27 = vpop.permute.xlu1 %1876 }
 0x6c5   :  { %3851 = vmatprep.subr.mxu1 %v1959_v11 }
 0x6c6   :  { %3852 = vmatpush3.msra.mxu1 %v1959_v11  ;;  %v1953_v30 = vsel %vm138_vm1, %v1892_v19, %v1857_v42 }
 0x6c7   :  { %3853 = vmatprep.subr.mxu1 %v1958_v16  ;;  %v1791_v51 = vpop.permute.xlu0 %1790 }
 0x6c8   :  { %3854 = vmatpush3.msra.mxu1 %v1958_v16  ;;  %v1856_v24 = vmul.f32 %v5267_v8, %v1791_v51 }
 0x6c9   :  { %3855 = vmatprep.subr.mxu1 %v1957_v61 }
 0x6ca   :  { %3856 = vmatpush3.msra.mxu1 %v1957_v61  ;;  %v1952_v8 = vsel %vm138_vm1, %v1887_v12, %v1856_v24 }
 0x6cb   :  { %3857 = vmatprep.subr.mxu1 %v1956_v28  ;;  %v1786_v31 = vpop.permute.xlu0 %1785 }
 0x6cc   :  { %3858 = vmatpush3.msra.mxu1 %v1956_v28  ;;  %v1855_v47 = vmul.f32 %v5263_v48, %v1786_v31 }
 0x6cd   :  { %3859 = vmatprep.subr.mxu1 %v1955_v9 }
 0x6ce   :  { %3860 = vmatpush3.msra.mxu1 %v1955_v9  ;;  %v1951_v53 = vsel %vm138_vm1, %v1882_v38, %v1855_v47 }
 0x6cf   :  { %3861 = vmatprep.subr.mxu1 %v1954_v3  ;;  %v1781_v63 = vpop.permute.xlu0 %1780 }
 0x6d0   :  { %3862 = vmatpush3.msra.mxu1 %v1954_v3  ;;  %v1854_v26 = vmul.f32 %v1781_v63, %v5269_v46 }
 0x6d1   :  { %3863 = vmatprep.subr.mxu1 %v1953_v30 }
 0x6d2   :  { %3864 = vmatpush3.msra.mxu1 %v1953_v30  ;;  %v1950_v4 = vsel %vm138_vm1, %v1877_v27, %v1854_v26 }
 0x6d3   :  { %3865 = vmatprep.subr.mxu1 %v1952_v8  ;;  %v1776_v22 = vpop.permute.xlu0 %1775 }
 0x6d4   :  { %3866 = vmatpush3.msra.mxu1 %v1952_v8  ;;  %v1853_v48 = vmul.f32 %v1776_v22, %v5265_v33  ;;  %v4501_v33 = vld [vmem:[#allocation7 + $0x28] sm:$0xff] }
 0x6d5   :  { %3867 = vmatprep.subr.mxu1 %v1951_v53 }
 0x6d6   :  { %3868 = vmatpush3.msra.mxu1 %v1951_v53 }
 0x6d7   :  { %3869 = vmatprep.subr.mxu1 %v1950_v4  ;;  %v1872_v46 = vpop.permute.xlu0 %1871 }
 0x6d8   :  { %3870 = vmatpush3.msra.mxu1 %v1950_v4  ;;  %v1949_v45 = vsel %vm138_vm1, %v1872_v46, %v1853_v48 }
 0x6d9   :  { %3871 = vmatprep.subr.mxu1 %v1949_v45 }
 0x6da   :  { %3872 = vmatpush3.msra.mxu1 %v1949_v45 }
 0x6db   :  { %3874 = vmatmul.mubr.f32.vlgmr.msra.gmra.mxu1 %v4497_v62  ;;  %v2352_v62 = vld [vmem:[#allocation12 + $0x10] sm:$0xff] }
 0x6dc   :  { %3876 = vmatprep.mubr.f32.mxu1 %v4498_v23  ;;  %v2353_v23 = vld [vmem:[#allocation12 + $0x18] sm:$0xff] }
 0x6df   :  { %3877 = vmatmul.mubr.f32.gmra.mxu1 %v4499_v14  ;;  %v2350_v14 = vld [vmem:[#allocation12] sm:$0xff] }
 0x6e0   :  { %3879 = vmatprep.mubr.f32.mxu1 %v4500_v13  ;;  %v2380_v13 = vpack.c.bf16 %v2353_v23, %v2352_v62 }
 0x6e2   :  { %3897 = vmatprep.subr.bf16.mxu0 %v2380_v13 }
 0x6e3   :  { %3880 = vmatmul.mubr.f32.gmra.mxu1 %v4501_v33  ;;  %v2351_v33 = vld [vmem:[#allocation12 + $0x8] sm:$0xff]  ;;  %3898 = vmatpush3.bf16.msra.mxu0 %v2380_v13 }
 0x6e4   :  { %3882 = vmatprep.mubr.f32.mxu1 %v4502_v57 }
 0x6e7   :  { %3883 = vmatmul.mubr.f32.gmra.mxu1 %v4503_v52 }
 0x6e8   :  { %3885 = vmatprep.mubr.f32.mxu1 %v4504_v43 }
 0x6eb   :  { %3886 = vmatmul.mubr.f32.gmra.mxu1 %v4505_v20 }
 0x6ec   :  { %3888 = vmatprep.mubr.f32.mxu1 %v4506_v7 }
 0x6ef   :  { %3889 = vmatmul.mubr.f32.gmra.mxu1 %v4507_v36 }
 0x6f0   :  { %3891 = vmatprep.mubr.f32.mxu1 %v4508_v40 }
 0x6f3   :  { %3892 = vmatmul.mubr.f32.gmra.mxu1 %v4509_v54 }
 0x6f4   :  { %3894 = vmatprep.mubr.f32.mxu1 %v4510_v1 }
 0x6f7   :  { %3895 = vmatmul.mubr.f32.gmra.mxu1 %v4511_v56 }
 0x6f8   :  { %3958 = vmatprep.mubr.f32.mxu1 %v4502_v57  ;;  %v2379_v57 = vpack.c.bf16 %v2351_v33, %v2350_v14 }
 0x6fa   :  { %3899 = vmatprep.subr.bf16.mxu0 %v2379_v57 }
 0x6fb   :  { %3900 = vmatpush3.bf16.msra.mxu0 %v2379_v57 }
 0x79b   :  { %v5583_v6 = vpop.f32.mrf.mxu1 }
 0x79c   :  { %v2111_v37 = vsel %vm138_vm1, 0.0, %v5583_v6  ;;  %v2175_v52 = vmul.f32 %v5583_v6, %v5583_v6 }
 0x79d   :  { %v2127_v60 = vmul.f32 %v2111_v37, %v2111_v37  ;;  %v5588_v5 = vpop.f32.mrf.mxu1 }
 0x79e   :  { %v2110_v10 = vsel %vm138_vm1, 0.0, %v5588_v5  ;;  %v2174_v20 = vmul.f32 %v5588_v5, %v5588_v5 }
 0x79f   :  { %v2126_v59 = vmul.f32 %v2110_v10, %v2110_v10  ;;  %2144 = vadd.xlane.f32.xlu0 %v2127_v60  ;;  %v5593_v44 = vpop.f32.mrf.mxu1 }
 0x7a0   :  { %v2113_v39 = vsel %vm138_vm1, 0.0, %v5593_v44  ;;  %v2177_v1 = vmul.f32 %v5593_v44, %v5593_v44 }
 0x7a1   :  { %2142 = vadd.xlane.f32.xlu1 %v2126_v59  ;;  %v5598_v35 = vpop.f32.mrf.mxu1  ;;  %v2129_v50 = vmul.f32 %v2113_v39, %v2113_v39 }
 0x7a2   :  { %v2112_v32 = vsel %vm138_vm1, 0.0, %v5598_v35  ;;  %v2176_v56 = vmul.f32 %v5598_v35, %v5598_v35 }
 0x7a3   :  { %v2128_v0 = vmul.f32 %v2112_v32, %v2112_v32  ;;  %v5603_v17 = vpop.f32.mrf.mxu1 }
 0x7a4   :  { %v2115_v55 = vsel %vm138_vm1, 0.0, %v5603_v17 }
 0x7a5   :  { %2148 = vadd.xlane.f32.xlu1 %v2129_v50  ;;  %2146 = vadd.xlane.f32.xlu0 %v2128_v0  ;;  %v5608_v34 = vpop.f32.mrf.mxu1  ;;  %v2131_v15 = vmul.f32 %v2115_v55, %v2115_v55  ;;  %v2179_v0 = vmul.f32 %v5603_v17, %v5603_v17 }
 0x7a6   :  { %v2114_v58 = vsel %vm138_vm1, 0.0, %v5608_v34  ;;  %v2178_v55 = vmul.f32 %v5608_v34, %v5608_v34 }
 0x7a7   :  { %v2130_v25 = vmul.f32 %v2114_v58, %v2114_v58  ;;  %v5613_v19 = vpop.f32.mrf.mxu1 }
 0x7a8   :  { %v2117_v21 = vsel %vm138_vm1, 0.0, %v5613_v19 }
 0x7a9   :  { %2152 = vadd.xlane.f32.xlu1 %v2131_v15  ;;  %2150 = vadd.xlane.f32.xlu0 %v2130_v25  ;;  %v5618_v29 = vpop.f32.mrf.mxu1  ;;  %v2133_v18 = vmul.f32 %v2117_v21, %v2117_v21 }
 0x7aa   :  { %v2116_v11 = vsel %vm138_vm1, 0.0, %v5618_v29 }
 0x7ab   :  { %v2132_v16 = vmul.f32 %v2116_v11, %v2116_v11  ;;  %v5623_v51 = vpop.f32.mrf.mxu1 }
 0x7ac   :  { %v2119_v49 = vsel %vm138_vm1, 0.0, %v5623_v51 }
 0x7ad   :  { %2156 = vadd.xlane.f32.xlu1 %v2133_v18  ;;  %2154 = vadd.xlane.f32.xlu0 %v2132_v16  ;;  %v5628_v61 = vpop.f32.mrf.mxu1  ;;  %v2135_v2 = vmul.f32 %v2119_v49, %v2119_v49 }
 0x7ae   :  { %v2118_v12 = vsel %vm138_vm1, 0.0, %v5628_v61 }
 0x7af   :  { %v2134_v28 = vmul.f32 %v2118_v12, %v2118_v12  ;;  %v5633_v31 = vpop.f32.mrf.mxu1  ;;  %v2181_v12 = vmul.f32 %v5613_v19, %v5613_v19 }
 0x7b0   :  { %v2121_v42 = vsel %vm138_vm1, 0.0, %v5633_v31 }
 0x7b1   :  { %2160 = vadd.xlane.f32.xlu1 %v2135_v2  ;;  %2158 = vadd.xlane.f32.xlu0 %v2134_v28  ;;  %v5638_v9 = vpop.f32.mrf.mxu1  ;;  %v2137_v3 = vmul.f32 %v2121_v42, %v2121_v42  ;;  %v2180_v2 = vmul.f32 %v5618_v29, %v5618_v29 }
 0x7b2   :  { %v2120_v24 = vsel %vm138_vm1, 0.0, %v5638_v9 }
 0x7b3   :  { %v2136_v38 = vmul.f32 %v2120_v24, %v2120_v24  ;;  %v5643_v63 = vpop.f32.mrf.mxu1 }
 0x7b4   :  { %v2123_v47 = vsel %vm138_vm1, 0.0, %v5643_v63 }
 0x7b5   :  { %2164 = vadd.xlane.f32.xlu1 %v2137_v3  ;;  %2162 = vadd.xlane.f32.xlu0 %v2136_v38  ;;  %v5648_v30 = vpop.f32.mrf.mxu1  ;;  %v2139_v8 = vmul.f32 %v2123_v47, %v2123_v47 }
 0x7b6   :  { %v2122_v26 = vsel %vm138_vm1, 0.0, %v5648_v30 }
 0x7b7   :  { %v2138_v22 = vmul.f32 %v2122_v26, %v2122_v26  ;;  %v5653_v53 = vpop.f32.mrf.mxu1 }
 0x7b8   :  { %v2125_v27 = vsel %vm138_vm1, 0.0, %v5653_v53 }
 0x7b9   :  { %2168 = vadd.xlane.f32.xlu1 %v2139_v8  ;;  %2166 = vadd.xlane.f32.xlu0 %v2138_v22  ;;  %v5658_v48 = vpop.f32.mrf.mxu1  ;;  %v2141_v46 = vmul.f32 %v2125_v27, %v2125_v27  ;;  %v2183_v22 = vmul.f32 %v5623_v51, %v5623_v51  ;;  %v2182_v27 = vmul.f32 %v5628_v61, %v5628_v61 }
 0x7ba   :  { %v2124_v4 = vsel %vm138_vm1, 0.0, %v5658_v48 }
 0x7bb   :  { %v2140_v45 = vmul.f32 %v2124_v4, %v2124_v4 }
 0x7bd   :  { %2172 = vadd.xlane.f32.xlu1 %v2141_v46  ;;  %2170 = vadd.xlane.f32.xlu0 %v2140_v45 }
 0x828   :  { %v2145_v43 = vpop.xlane.xlu0 %2144 }
 0x829   :  { %v2191_v7 = vsub.f32 %v2175_v52, %v2145_v43  ;;  %v2185_v52 = vmul.f32 %v5633_v31, %v5633_v31  ;;  %v2184_v43 = vmul.f32 %v5638_v9, %v5638_v9 }
 0x82a   :  { %v2143_v36 = vpop.xlane.xlu1 %2142 }
 0x82b   :  { %v2207_v40 = vand.u32 2147483647, %v2191_v7  ;;  %v2190_v54 = vsub.f32 %v2174_v20, %v2143_v36 }
 0x82d   :  { %v2223_v37 = vmax.f32 %v2207_v40, 1e-08  ;;  %v2206_v60 = vand.u32 2147483647, %v2190_v54 }
 0x82e   :  { %v2149_v10 = vpop.xlane.xlu1 %2148  ;;  %v2147_v59 = vpop.xlane.xlu0 %2146 }
 0x82f   :  { %4305 = vrsqrt.f32 %v2223_v37  ;;  %v2222_v39 = vmax.f32 %v2206_v60, 1e-08  ;;  %v2193_v32 = vsub.f32 %v2177_v1, %v2149_v10  ;;  %v2192_v50 = vsub.f32 %v2176_v56, %v2147_v59 }
 0x830   :  { %v2187_v10 = vmul.f32 %v5643_v63, %v5643_v63  ;;  %v2186_v59 = vmul.f32 %v5648_v30, %v5648_v30 }
 0x831   :  { %4307 = vrsqrt.f32 %v2222_v39  ;;  %v2209_v58 = vand.u32 2147483647, %v2193_v32  ;;  %v2208_v15 = vand.u32 2147483647, %v2192_v50 }
 0x832   :  { %v2153_v25 = vpop.xlane.xlu1 %2152  ;;  %v2151_v21 = vpop.xlane.xlu0 %2150 }
 0x833   :  { %v2225_v11 = vmax.f32 %v2209_v58, 1e-08  ;;  %v2224_v18 = vmax.f32 %v2208_v15, 1e-08  ;;  %v2195_v16 = vsub.f32 %v2179_v0, %v2153_v25  ;;  %v2194_v49 = vsub.f32 %v2178_v55, %v2151_v21 }
 0x835   :  { %4309 = vrsqrt.f32 %v2225_v11  ;;  %v2211_v28 = vand.u32 2147483647, %v2195_v16  ;;  %v2210_v42 = vand.u32 2147483647, %v2194_v49 }
 0x836   :  { %4311 = vrsqrt.f32 %v2224_v18  ;;  %v2157_v24 = vpop.xlane.xlu1 %2156  ;;  %v2155_v3 = vpop.xlane.xlu0 %2154  ;;  %v2189_v18 = vmul.f32 %v5653_v53, %v5653_v53 }
 0x837   :  { %v2227_v38 = vmax.f32 %v2211_v28, 1e-08  ;;  %v2226_v47 = vmax.f32 %v2210_v42, 1e-08  ;;  %v2197_v26 = vsub.f32 %v2181_v12, %v2157_v24  ;;  %v2196_v8 = vsub.f32 %v2180_v2, %v2155_v3 }
 0x838   :  { %v2188_v12 = vmul.f32 %v5658_v48, %v5658_v48 }
 0x839   :  { %4313 = vrsqrt.f32 %v2227_v38  ;;  %v2213_v4 = vand.u32 2147483647, %v2197_v26  ;;  %v2212_v46 = vand.u32 2147483647, %v2196_v8 }
 0x83a   :  { %4315 = vrsqrt.f32 %v2226_v47  ;;  %v2161_v45 = vpop.xlane.xlu1 %2160  ;;  %v2159_v62 = vpop.xlane.xlu0 %2158 }
 0x83b   :  { %v2229_v23 = vmax.f32 %v2213_v4, 1e-08  ;;  %v2228_v14 = vmax.f32 %v2212_v46, 1e-08  ;;  %v2199_v13 = vsub.f32 %v2183_v22, %v2161_v45  ;;  %v2198_v33 = vsub.f32 %v2182_v27, %v2159_v62 }
 0x83c   :  { %v4306_v57 = vpop.eup %4305 }
 0x83d   :  { %4317 = vrsqrt.f32 %v2229_v23  ;;  %v2215_v20 = vand.u32 2147483647, %v2199_v13  ;;  %v2214_v7 = vand.u32 2147483647, %v2198_v33  ;;  %2261 = vperm.xlu1 %4015, %v4306_v57  }
 0x83e   :  { %v4308_v36 = vpop.eup %4307  ;;  %4319 = vrsqrt.f32 %v2228_v14  ;;  %v2165_v40 = vpop.xlane.xlu1 %2164 }
 0x83f   :  { %v2163_v54 = vpop.xlane.xlu0 %2162  ;;  %v2231_v1 = vmax.f32 %v2215_v20, 1e-08  ;;  %v2230_v56 = vmax.f32 %v2214_v7, 1e-08  ;;  %v2201_v37 = vsub.f32 %v2185_v52, %v2165_v40  ;;  %2256 = vperm.xlu0 %4016, %v4308_v36  }
 0x840   :  { %v2200_v60 = vsub.f32 %v2184_v43, %v2163_v54 }
 0x841   :  { %4321 = vrsqrt.f32 %v2231_v1  ;;  %v2217_v39 = vand.u32 2147483647, %v2201_v37 }
 0x842   :  { %v2216_v32 = vand.u32 2147483647, %v2200_v60  ;;  %v4310_v50 = vpop.eup %4309  ;;  %4323 = vrsqrt.f32 %v2230_v56  ;;  %v2169_v0 = vpop.xlane.xlu1 %2168 }
 0x843   :  { %v2167_v55 = vpop.xlane.xlu0 %2166  ;;  %v4312_v58 = vpop.eup %4311  ;;  %v2233_v15 = vmax.f32 %v2217_v39, 1e-08  ;;  %v2203_v21 = vsub.f32 %v2187_v10, %v2169_v0  ;;  %2271 = vperm.xlu0 %4016, %v4310_v50  }
 0x844   :  { %v2232_v25 = vmax.f32 %v2216_v32, 1e-08  ;;  %v2202_v11 = vsub.f32 %v2186_v59, %v2167_v55  ;;  %2266 = vperm.xlu1 %4015, %v4312_v58  }
 0x845   :  { %4325 = vrsqrt.f32 %v2233_v15  ;;  %v2219_v16 = vand.u32 2147483647, %v2203_v21 }
 0x846   :  { %v2218_v49 = vand.u32 2147483647, %v2202_v11  ;;  %v4314_v2 = vpop.eup %4313  ;;  %4327 = vrsqrt.f32 %v2232_v25  ;;  %v2173_v28 = vpop.xlane.xlu1 %2172 }
 0x847   :  { %v2171_v42 = vpop.xlane.xlu0 %2170  ;;  %v4316_v24 = vpop.eup %4315  ;;  %v2235_v3 = vmax.f32 %v2219_v16, 1e-08  ;;  %v2205_v47 = vsub.f32 %v2189_v18, %v2173_v28  ;;  %2281 = vperm.xlu0 %4016, %v4314_v2  }
 0x848   :  { %v2234_v38 = vmax.f32 %v2218_v49, 1e-08  ;;  %v2204_v26 = vsub.f32 %v2188_v12, %v2171_v42  ;;  %2276 = vperm.xlu1 %4015, %v4316_v24  }
 0x849   :  { %4329 = vrsqrt.f32 %v2235_v3  ;;  %v2221_v8 = vand.u32 2147483647, %v2205_v47 }
 0x84a   :  { %v2220_v22 = vand.u32 2147483647, %v2204_v26  ;;  %v4318_v27 = vpop.eup %4317  ;;  %4331 = vrsqrt.f32 %v2234_v38 }
 0x84b   :  { %v4320_v4 = vpop.eup %4319  ;;  %v2237_v46 = vmax.f32 %v2221_v8, 1e-08  ;;  %2291 = vperm.xlu0 %4016, %v4318_v27  }
 0x84c   :  { %v2236_v45 = vmax.f32 %v2220_v22, 1e-08  ;;  %2286 = vperm.xlu1 %4015, %v4320_v4  }
 0x84d   :  { %4333 = vrsqrt.f32 %v2237_v46 }
 0x84e   :  { %v4322_v62 = vpop.eup %4321  ;;  %4335 = vrsqrt.f32 %v2236_v45 }
 0x84f   :  { %v4324_v23 = vpop.eup %4323  ;;  %2301 = vperm.xlu0 %4016, %v4322_v62  }
 0x850   :  { %2296 = vperm.xlu1 %4015, %v4324_v23  }
 0x852   :  { %v4326_v14 = vpop.eup %4325 }
 0x853   :  { %v4328_v13 = vpop.eup %4327  ;;  %2311 = vperm.xlu0 %4016, %v4326_v14  }
 0x854   :  { %2306 = vperm.xlu1 %4015, %v4328_v13  }
 0x856   :  { %v4330_v33 = vpop.eup %4329 }
 0x857   :  { %v4332_v57 = vpop.eup %4331  ;;  %2321 = vperm.xlu0 %4016, %v4330_v33  }
 0x858   :  { %2316 = vperm.xlu1 %4015, %v4332_v57  }
 0x85a   :  { %v4334_v52 = vpop.eup %4333 }
 0x85b   :  { %v4336_v43 = vpop.eup %4335  ;;  %2331 = vperm.xlu0 %4016, %v4334_v52  }
 0x85c   :  { %2326 = vperm.xlu1 %4015, %v4336_v43  }
 0x8b8   :  { %v2262_v20 = vpop.permute.xlu1 %2261 }
 0x8b9   :  { %v2335_v7 = vmul.f32 %v5583_v6, %v2262_v20 }
 0x8ba   :  { %v2257_v36 = vpop.permute.xlu0 %2256 }
 0x8bb   :  { %v2334_v40 = vmul.f32 %v2257_v36, %v5588_v5  ;;  %v2356_v54 = vmax.f32 %v2335_v7, 0.0 }
 0x8bd   :  { %v2355_v1 = vmax.f32 %v2334_v40, 0.0 }
 0x8be   :  { %v2272_v56 = vpop.permute.xlu0 %2271 }
 0x8bf   :  { %v2371_v37 = vpack.c.bf16 %v2356_v54, %v2355_v1  ;;  %v2267_v60 = vpop.permute.xlu1 %2266  ;;  %v2337_v10 = vmul.f32 %v5593_v44, %v2272_v56 }
 0x8c0   :  { %v2336_v59 = vmul.f32 %v2267_v60, %v5598_v35 }
 0x8c1   :  { %v2358_v39 = vmax.f32 %v2337_v10, 0.0  ;;  %3901 = vmatprep.mubr.msk.bf16.mxu0 %vm1266_vm4, %v2371_v37 }
 0x8c2   :  { %v2357_v32 = vmax.f32 %v2336_v59, 0.0  ;;  %v2282_v50 = vpop.permute.xlu0 %2281 }
 0x8c3   :  { %v2277_v0 = vpop.permute.xlu1 %2276  ;;  %v2339_v6 = vmul.f32 %v5603_v17, %v2282_v50 }
 0x8c4   :  { %v2372_v55 = vpack.c.bf16 %v2358_v39, %v2357_v32  ;;  %v2338_v5 = vmul.f32 %v2277_v0, %v5608_v34 }
 0x8c5   :  { %v2360_v58 = vmax.f32 %v2339_v6, 0.0 }
 0x8c6   :  { %v2359_v15 = vmax.f32 %v2338_v5, 0.0  ;;  %3902 = vmatmul.mubr.msk.bf16.vlgmr.msra.gmra.mxu0 %vm1266_vm4, %v2372_v55  ;;  %v2292_v25 = vpop.permute.xlu0 %2291 }
 0x8c7   :  { %v2287_v21 = vpop.permute.xlu1 %2286  ;;  %v2341_v44 = vmul.f32 %v5613_v19, %v2292_v25 }
 0x8c8   :  { %v2373_v35 = vpack.c.bf16 %v2360_v58, %v2359_v15  ;;  %v2340_v11 = vmul.f32 %v2287_v21, %v5618_v29 }
 0x8c9   :  { %v2362_v18 = vmax.f32 %v2341_v44, 0.0 }
 0x8ca   :  { %v2361_v16 = vmax.f32 %v2340_v11, 0.0  ;;  %3905 = vmatprep.mubr.msk.bf16.mxu0 %vm1266_vm4, %v2373_v35  ;;  %v2302_v49 = vpop.permute.xlu0 %2301 }
 0x8cb   :  { %v2297_v17 = vpop.permute.xlu1 %2296  ;;  %v2343_v12 = vmul.f32 %v5623_v51, %v2302_v49 }
 0x8cc   :  { %v2374_v34 = vpack.c.bf16 %v2362_v18, %v2361_v16  ;;  %v2342_v2 = vmul.f32 %v2297_v17, %v5628_v61 }
 0x8cd   :  { %v2364_v28 = vmax.f32 %v2343_v12, 0.0 }
 0x8ce   :  { %v2363_v42 = vmax.f32 %v2342_v2, 0.0  ;;  %3906 = vmatmul.mubr.msk.bf16.gmra.mxu0 %vm1266_vm4, %v2374_v34  ;;  %v2312_v24 = vpop.permute.xlu0 %2311 }
 0x8cf   :  { %v2307_v19 = vpop.permute.xlu1 %2306  ;;  %v2345_v3 = vmul.f32 %v5633_v31, %v2312_v24 }
 0x8d0   :  { %v2375_v29 = vpack.c.bf16 %v2364_v28, %v2363_v42  ;;  %v2344_v38 = vmul.f32 %v2307_v19, %v5638_v9 }
 0x8d1   :  { %v2366_v47 = vmax.f32 %v2345_v3, 0.0 }
 0x8d2   :  { %v2365_v26 = vmax.f32 %v2344_v38, 0.0  ;;  %3909 = vmatprep.mubr.msk.bf16.mxu0 %vm1266_vm4, %v2375_v29  ;;  %v2322_v8 = vpop.permute.xlu0 %2321 }
 0x8d3   :  { %v2317_v51 = vpop.permute.xlu1 %2316  ;;  %v2347_v22 = vmul.f32 %v5643_v63, %v2322_v8  ;;  %v4512_v63 = vld [vmem:[#allocation7] sm:$0xff] }
 0x8d4   :  { %v2376_v61 = vpack.c.bf16 %v2366_v47, %v2365_v26  ;;  %v2346_v27 = vmul.f32 %v2317_v51, %v5648_v30 }
 0x8d5   :  { %v2368_v4 = vmax.f32 %v2347_v22, 0.0 }
 0x8d6   :  { %v2367_v46 = vmax.f32 %v2346_v27, 0.0  ;;  %3910 = vmatmul.mubr.msk.bf16.gmra.mxu0 %vm1266_vm4, %v2376_v61  ;;  %v2332_v45 = vpop.permute.xlu0 %2331 }
 0x8d7   :  { %v2327_v31 = vpop.permute.xlu1 %2326  ;;  %v2349_v62 = vmul.f32 %v5653_v53, %v2332_v45 }
 0x8d8   :  { %v2377_v9 = vpack.c.bf16 %v2368_v4, %v2367_v46  ;;  %v2348_v23 = vmul.f32 %v2327_v31, %v5658_v48 }
 0x8d9   :  { %v2370_v14 = vmax.f32 %v2349_v62, 0.0 }
 0x8da   :  { %v2369_v13 = vmax.f32 %v2348_v23, 0.0  ;;  %3913 = vmatprep.mubr.msk.bf16.mxu0 %vm1266_vm4, %v2377_v9 }
 0x8dc   :  { %v2378_v33 = vpack.c.bf16 %v2370_v14, %v2369_v13 }
 0x8de   :  { %3914 = vmatmul.mubr.msk.bf16.gmra.mxu0 %vm1266_vm4, %v2378_v33 }
 0x8df   :  { %3949 = vmatprep.mubr.f32.mxu0 %v4512_v63 }
 0x986   :  { %v5719_v30 = vpop.f32.mrf.mxu0 }
 0x987   :  { %v2504_v51 = vsel %vm138_vm1, 0.0, %v5719_v30 }
 0x988   :  { %v5721_v57 = vpop.f32.mrf.mxu0  ;;  %v2520_v46 = vmul.f32 %v2504_v51, %v2504_v51 }
 0x989   :  { %v2502_v31 = vsel %vm138_vm1, 0.0, %v5721_v57 }
 0x98a   :  { %v5723_v52 = vpop.f32.mrf.mxu0  ;;  %v2518_v14 = vmul.f32 %v2502_v31, %v2502_v31 }
 0x98b   :  { %v2505_v47 = vsel %vm138_vm1, 0.0, %v5723_v52 }
 0x98c   :  { %v5725_v43 = vpop.f32.mrf.mxu0  ;;  %v2521_v27 = vmul.f32 %v2505_v47, %v2505_v47 }
 0x98d   :  { %v2503_v4 = vsel %vm138_vm1, 0.0, %v5725_v43 }
 0x98e   :  { %v5727_v53 = vpop.f32.mrf.mxu0  ;;  %v2519_v23 = vmul.f32 %v2503_v4, %v2503_v4 }
 0x98f   :  { %v2508_v34 = vsel %vm138_vm1, 0.0, %v5727_v53 }
 0x990   :  { %v5729_v48 = vpop.f32.mrf.mxu0  ;;  %v2524_v24 = vmul.f32 %v2508_v34, %v2508_v34 }
 0x991   :  { %v2506_v19 = vsel %vm138_vm1, 0.0, %v5729_v48 }
 0x992   :  { %v5731_v20 = vpop.f32.mrf.mxu0  ;;  %v2522_v26 = vmul.f32 %v2506_v19, %v2506_v19 }
 0x993   :  { %v2509_v17 = vsel %vm138_vm1, 0.0, %v5731_v20 }
 0x994   :  { %v5733_v7 = vpop.f32.mrf.mxu0  ;;  %v2525_v28 = vmul.f32 %v2509_v17, %v2509_v17 }
 0x995   :  { %v2507_v42 = vsel %vm138_vm1, 0.0, %v5733_v7 }
 0x996   :  { %v5735_v36 = vpop.f32.mrf.mxu0  ;;  %v2523_v38 = vmul.f32 %v2507_v42, %v2507_v42 }
 0x997   :  { %v3600_v0 = vmul.f32 -1.442695, %v5735_v36  ;;  %v2512_v25 = vsel %vm138_vm1, 0.0, %v5735_v36 }
 0x998   :  { %v5737_v40 = vpop.f32.mrf.mxu0  ;;  %v2528_v11 = vmul.f32 %v2512_v25, %v2512_v25 }
 0x999   :  { %4337 = vpow2.f32 %v3600_v0  ;;  %v3598_v21 = vmul.f32 -1.442695, %v5737_v40  ;;  %v2510_v18 = vsel %vm138_vm1, 0.0, %v5737_v40 }
 0x99a   :  { %v5739_v54 = vpop.f32.mrf.mxu0  ;;  %v2526_v12 = vmul.f32 %v2510_v18, %v2510_v18 }
 0x99b   :  { %v2513_v58 = vsel %vm138_vm1, 0.0, %v5739_v54  ;;  %4339 = vpow2.f32 %v3598_v21  ;;  %v3601_v16 = vmul.f32 -1.442695, %v5739_v54 }
 0x99c   :  { %v5741_v1 = vpop.f32.mrf.mxu0  ;;  %v2529_v44 = vmul.f32 %v2513_v58, %v2513_v58 }
 0x99d   :  { %v2511_v35 = vsel %vm138_vm1, 0.0, %v5741_v1  ;;  %4341 = vpow2.f32 %v3601_v16  ;;  %v3599_v2 = vmul.f32 -1.442695, %v5741_v1 }
 0x99e   :  { %v5743_v56 = vpop.f32.mrf.mxu0  ;;  %v2527_v49 = vmul.f32 %v2511_v35, %v2511_v35 }
 0x99f   :  { %v2516_v37 = vsel %vm138_vm1, 0.0, %v5743_v56  ;;  %4343 = vpow2.f32 %v3599_v2  ;;  %v3604_v3 = vmul.f32 -1.442695, %v5743_v56 }
 0x9a0   :  { %v2532_v60 = vmul.f32 %v2516_v37, %v2516_v37  ;;  %v5748_v10 = vpop.f32.mrf.mxu0 }
 0x9a1   :  { %v2514_v6 = vsel %vm138_vm1, 0.0, %v5748_v10  ;;  %v3602_v8 = vmul.f32 -1.442695, %v5748_v10  ;;  %4345 = vpow2.f32 %v3604_v3 }
 0x9a2   :  { %2562 = vadd.xlane.f32.xlu0 %v2532_v60  ;;  %v5750_v59 = vpop.f32.mrf.mxu0  ;;  %v2530_v15 = vmul.f32 %v2514_v6, %v2514_v6  ;;  %v5807_v6 = vstv %s3581_s23 }
 0x9a3   :  { %v2517_v39 = vsel %vm138_vm1, 0.0, %v5750_v59  ;;  %4347 = vpow2.f32 %v3602_v8  ;;  %v3605_v45 = vmul.f32 -1.442695, %v5750_v59 }
 0x9a4   :  { %v2533_v32 = vmul.f32 %v2517_v39, %v2517_v39  ;;  %v5755_v50 = vpop.f32.mrf.mxu0 }
 0x9a5   :  { %v2515_v55 = vsel %vm138_vm1, 0.0, %v5755_v50  ;;  %v3603_v13 = vmul.f32 -1.442695, %v5755_v50 }
 0x9a6   :  { %v2531_v5 = vmul.f32 %v2515_v55, %v2515_v55  ;;  %2564 = vadd.xlane.f32.xlu1 %v2533_v32  ;;  %v4338_v29 = vpop.eup %4337 }
 0x9a7   :  { %v2640_v22 = vadd.f32 1.0, %v4338_v29 }
 0x9a8   :  { %2560 = vadd.xlane.f32.xlu0 %v2531_v5  ;;  %v4340_v61 = vpop.eup %4339 }
 0x9a9   :  { %4349 = vrcp.f32 %v2640_v22  ;;  %v2638_v62 = vadd.f32 1.0, %v4340_v61  ;;  %v3597_v61 = vmul.f32 -1.442695, %v5731_v20 }
 0x9aa   :  { %2558 = vadd.xlane.f32.xlu1 %v2530_v15  ;;  %v4342_v9 = vpop.eup %4341  ;;  %4351 = vpow2.f32 %v3605_v45 }
 0x9ab   :  { %4353 = vrcp.f32 %v2638_v62  ;;  %v2641_v33 = vadd.f32 1.0, %v4342_v9 }
 0x9ac   :  { %2556 = vadd.xlane.f32.xlu0 %v2529_v44  ;;  %v4344_v63 = vpop.eup %4343  ;;  %4355 = vpow2.f32 %v3603_v13 }
 0x9ad   :  { %4357 = vrcp.f32 %v2641_v33  ;;  %v2639_v37 = vadd.f32 1.0, %v4344_v63  ;;  %v3594_v33 = vmul.f32 -1.442695, %v5729_v48 }
 0x9ae   :  { %2554 = vadd.xlane.f32.xlu1 %v2528_v11  ;;  %v4346_v60 = vpop.eup %4345 }
 0x9af   :  { %4359 = vrcp.f32 %v2639_v37  ;;  %v2644_v32 = vadd.f32 1.0, %v4346_v60  ;;  %v3593_v37 = vmul.f32 -1.442695, %v5723_v52 }
 0x9b0   :  { %2552 = vadd.xlane.f32.xlu0 %v2527_v49  ;;  %v4348_v39 = vpop.eup %4347 }
 0x9b1   :  { %4361 = vrcp.f32 %v2644_v32  ;;  %v2642_v5 = vadd.f32 1.0, %v4348_v39 }
 0x9b2   :  { %2550 = vadd.xlane.f32.xlu1 %v2526_v12 }
 0x9b3   :  { %4363 = vrcp.f32 %v2642_v5 }
 0x9b4   :  { %2548 = vadd.xlane.f32.xlu0 %v2525_v28 }
 0x9b6   :  { %2546 = vadd.xlane.f32.xlu1 %v2524_v24  ;;  %v4350_v0 = vpop.eup %4349 }
 0x9b7   :  { %v4352_v55 = vpop.eup %4351  ;;  %v2689_v58 = vmul.f32 %v4350_v0, %v5807_v6  ;;  %v3592_v0 = vmul.f32 -1.442695, %v5719_v30 }
 0x9b8   :  { %2544 = vadd.xlane.f32.xlu0 %v2523_v38  ;;  %v4354_v15 = vpop.eup %4353  ;;  %v2645_v21 = vadd.f32 1.0, %v4352_v55 }
 0x9b9   :  { %v4356_v25 = vpop.eup %4355  ;;  %v5810_v44 = vadd.f32 1.1, %v2689_v58  ;;  %v2687_v35 = vmul.f32 %v4354_v15, %v5807_v6 }
 0x9ba   :  { %2542 = vadd.xlane.f32.xlu1 %v2522_v26  ;;  %v4358_v11 = vpop.eup %4357  ;;  %4365 = vrcp.f32 %v2645_v21  ;;  %v2643_v18 = vadd.f32 1.0, %v4356_v25 }
 0x9bb   :  { %v5814_v16 = vadd.f32 1.1, %v2687_v35  ;;  %v2690_v49 = vmul.f32 %v4358_v11, %v5807_v6  ;;  %v3591_v11 = vmul.f32 -1.442695, %v5725_v43 }
 0x9bc   :  { %2540 = vadd.xlane.f32.xlu0 %v2521_v27  ;;  %v4360_v17 = vpop.eup %4359  ;;  %4367 = vrcp.f32 %v2643_v18  ;;  %v3596_v27 = vmul.f32 -1.442695, %v5727_v53 }
 0x9bd   :  { %v5818_v12 = vadd.f32 1.1, %v2690_v49  ;;  %v2688_v34 = vmul.f32 %v4360_v17, %v5807_v6  ;;  %4369 = vpow2.f32 %v3597_v61 }
 0x9be   :  { %2538 = vadd.xlane.f32.xlu1 %v2520_v46  ;;  %v4362_v2 = vpop.eup %4361  ;;  %4371 = vpow2.f32 %v3596_v27 }
 0x9bf   :  { %v5822_v28 = vadd.f32 1.1, %v2688_v34  ;;  %v2693_v42 = vmul.f32 %v4362_v2, %v5807_v6 }
 0x9c0   :  { %2536 = vadd.xlane.f32.xlu0 %v2519_v23  ;;  %v4364_v24 = vpop.eup %4363  ;;  %v3595_v23 = vmul.f32 -1.442695, %v5733_v7 }
 0x9c1   :  { %v2709_v19 = vadd.f32 1.1, %v2693_v42  ;;  %v2691_v3 = vmul.f32 %v4364_v24, %v5807_v6 }
 0x9c2   :  { %2534 = vadd.xlane.f32.xlu1 %v2518_v14 }
 0x9c3   :  { %v5827_v38 = vadd.f32 1.1, %v2691_v3  ;;  %v2725_v39 = vmul.f32 %v2709_v19, %v2709_v19 }
 0x9c5   :  { %v3620_v5 = vadd.f32 -1.0, %v2725_v39 }
 0x9c7   :  { %v4366_v29 = vpop.eup %4365 }
 0x9c8   :  { %v2694_v47 = vmul.f32 %v4366_v29, %v5807_v6 }
 0x9c9   :  { %v4368_v26 = vpop.eup %4367 }
 0x9ca   :  { %v5831_v8 = vadd.f32 1.1, %v2694_v47  ;;  %v2692_v51 = vmul.f32 %v4368_v26, %v5807_v6  ;;  %v4370_v4 = vpop.eup %4369 }
 0x9cb   :  { %v4372_v46 = vpop.eup %4371  ;;  %v2637_v31 = vadd.f32 1.0, %v4370_v4  ;;  %v3590_v4 = vmul.f32 -1.442695, %v5721_v57 }
 0x9cc   :  { %v5835_v22 = vadd.f32 1.1, %v2692_v51  ;;  %v2636_v9 = vadd.f32 1.0, %v4372_v46 }
 0x9d3   :  { %3035 = vperm.xlu1 %4015, %v5810_v44  }
 0x9d7   :  { %3025 = vperm.xlu1 %4015, %v5814_v16  }
 0x9db   :  { %3040 = vperm.xlu1 %4015, %v5818_v12  }
 0x9df   :  { %3030 = vperm.xlu1 %4015, %v5822_v28  }
 0x9e3   :  { %3055 = vperm.xlu1 %4015, %v2709_v19  }
 0x9e7   :  { %3045 = vperm.xlu1 %4015, %v5827_v38  }
 0x9eb   :  { %3060 = vperm.xlu1 %4015, %v5831_v8  }
 0x9ef   :  { %3050 = vperm.xlu1 %4015, %v5835_v22  }
 0xa2b   :  { %v2563_v45 = vpop.xlane.xlu0 %2562 }
 0xa2c   :  { %v2580_v62 = vmax.f32 %v2563_v45, 1e-08 }
 0xa2e   :  { %4373 = vrcp.f32 %v2580_v62 }
 0xa2f   :  { %v5841_v14 = vpop.xlane.xlu1 %2564  ;;  %4375 = vrcp.f32 %v2637_v31 }
 0xa30   :  { %4377 = vrcp.f32 %v2636_v9 }
 0xa31   :  { %v5843_v13 = vpop.xlane.xlu0 %2560  ;;  %4379 = vpow2.f32 %v3595_v23  ;;  %v2721_v23 = vmul.f32 %v5810_v44, %v5810_v44  ;;  %v2719_v44 = vmul.f32 %v5814_v16, %v5814_v16 }
 0xa32   :  { %4381 = vpow2.f32 %v3594_v33 }
 0xa33   :  { %v5846_v63 = vpop.xlane.xlu1 %2558  ;;  %4383 = vpow2.f32 %v3593_v37 }
 0xa34   :  { %4385 = vpow2.f32 %v3592_v0 }
 0xa35   :  { %v2557_v60 = vpop.xlane.xlu0 %2556 }
 0xa36   :  { %v2577_v26 = vmax.f32 %v2557_v60, 1e-08  ;;  %v2578_v60 = vmax.f32 %v5846_v63, 1e-08  ;;  %v2581_v63 = vmax.f32 %v5841_v14, 1e-08 }
 0xa37   :  { %v2555_v32 = vpop.xlane.xlu1 %2554  ;;  %v2579_v14 = vmax.f32 %v5843_v13, 1e-08 }
 0xa38   :  { %v2576_v58 = vmax.f32 %v2555_v32, 1e-08 }
 0xa39   :  { %v2553_v55 = vpop.xlane.xlu0 %2552 }
 0xa3a   :  { %4387 = vrcp.f32 %v2576_v58  ;;  %v2575_v45 = vmax.f32 %v2553_v55, 1e-08  ;;  %v3616_v55 = vadd.f32 -1.0, %v2721_v23 }
 0xa3b   :  { %v4374_v15 = vpop.eup %4373  ;;  %v2551_v25 = vpop.xlane.xlu1 %2550 }
 0xa3c   :  { %v2772_v21 = vmul.f32 %v4374_v15, %v3620_v5  ;;  %v4376_v35 = vpop.eup %4375  ;;  %v2574_v42 = vmax.f32 %v2551_v25, 1e-08 }
 0xa3d   :  { %v2549_v18 = vpop.xlane.xlu0 %2548  ;;  %v4378_v49 = vpop.eup %4377  ;;  %v2686_v19 = vmul.f32 %v4376_v35, %v5807_v6 }
 0xa3e   :  { %v2573_v17 = vmax.f32 %v2549_v18, 1e-08  ;;  %4389 = vrsqrt.f32 %v2772_v21  ;;  %v4380_v2 = vpop.eup %4379  ;;  %v2685_v3 = vmul.f32 %v4378_v49, %v5807_v6  ;;  %vm2875_vm4 = vcmp.eq.f32.partialorder %v2772_v21, inf }
 0xa3f   :  { %v2547_v34 = vpop.xlane.xlu1 %2546  ;;  %v2635_v29 = vadd.f32 1.0, %v4380_v2  ;;  %v4382_v47 = vpop.eup %4381  ;;  %v2702_v51 = vadd.f32 1.1, %v2686_v19  ;;  %v2878_v35 = vand.u32 2147483648, %v2772_v21  ;;  %vm2877_vm9 = vcmp.eq.f32.partialorder %v2772_v21, 0.0 }
 0xa40   :  { %4391 = vrcp.f32 %v2573_v17  ;;  %v2572_v24 = vmax.f32 %v2547_v34, 1e-08  ;;  %v5853_v61 = vadd.f32 1.1, %v2685_v3  ;;  %v4384_v27 = vpop.eup %4383  ;;  %v2634_v46 = vadd.f32 1.0, %v4382_v47 }
 0xa41   :  { %4393 = vpow2.f32 %v3591_v11  ;;  %v2718_v31 = vmul.f32 %v2702_v51, %v2702_v51  ;;  %v4386_v62 = vpop.eup %4385  ;;  %v2633_v9 = vadd.f32 1.0, %v4384_v27  ;;  %v2722_v19 = vmul.f32 %v5818_v12, %v5818_v12 }
 0xa42   :  { %4395 = vrcp.f32 %v2572_v24  ;;  %v2717_v33 = vmul.f32 %v5853_v61, %v5853_v61  ;;  %v2632_v32 = vadd.f32 1.0, %v4386_v62  ;;  %v3614_v24 = vadd.f32 -1.0, %v2719_v44 }
 0xa43   :  { %4397 = vrcp.f32 %v2574_v42  ;;  %v3613_v0 = vadd.f32 -1.0, %v2718_v31  ;;  %v2720_v27 = vmul.f32 %v5822_v28, %v5822_v28  ;;  %v2543_v31 = vpop.xlane.xlu1 %2542 }
 0xa44   :  { %4399 = vrcp.f32 %v2635_v29  ;;  %v3612_v15 = vadd.f32 -1.0, %v2717_v33  ;;  %v2545_v29 = vpop.xlane.xlu0 %2544  ;;  %v2570_v33 = vmax.f32 %v2543_v31, 1e-08 }
 0xa45   :  { %4401 = vrcp.f32 %v2577_v26  ;;  %v3617_v26 = vadd.f32 -1.0, %v2722_v19  ;;  %v2571_v12 = vmax.f32 %v2545_v29, 1e-08  ;;  %v3615_v28 = vadd.f32 -1.0, %v2720_v27 }
 0xa46   :  { %4403 = vpow2.f32 %v3590_v4 }
 0xa47   :  { %v4388_v37 = vpop.eup %4387  ;;  %4405 = vrcp.f32 %v2634_v46 }
 0xa48   :  { %4407 = vrcp.f32 %v2575_v45  ;;  %v5866_v17 = vmul.f32 %v4388_v37, %v3616_v55  ;;  %v2541_v55 = vpop.xlane.xlu0 %2540 }
 0xa49   :  { %4409 = vrcp.f32 %v2633_v9 }
 0xa4a   :  { %4411 = vrcp.f32 %v2578_v60  ;;  %vm2847_vm14 = vcmp.eq.f32.partialorder %v5866_v17, inf  ;;  %vm2849_vm15 = vcmp.eq.f32.partialorder %v5866_v17, 0.0 }
 0xa4b   :  { %v4390_v39 = vpop.eup %4389 }
 0xa4c   :  { %v2874_v58 = vmul.f32 %v4390_v39, %v2772_v21 }
 0xa4d   :  { %v4392_v5 = vpop.eup %4391 }
 0xa4e   :  { %v4394_v25 = vpop.eup %4393  ;;  %v5863_v11 = vmul.f32 %v4392_v5, %v3613_v0  ;;  %v2876_v49 = vsel %vm2875_vm4, %v2772_v21, %v2874_v58 }
 0xa4f   :  { %v4396_v18 = vpop.eup %4395  ;;  %v2879_v34 = vsel %vm2877_vm9, %v2878_v35, %v2876_v49  ;;  %v2631_v16 = vadd.f32 1.0, %v4394_v25 }
 0xa50   :  { %v5868_v2 = vmul.f32 %v4396_v18, %v3612_v15  ;;  %4413 = vrsqrt.f32 %v5863_v11  ;;  %v4398_v42 = vpop.eup %4397  ;;  %2959 = vperm.xlu1 %4015, %v2879_v34   ;;  %v2569_v18 = vmax.f32 %v2541_v55, 1e-08  ;;  %vm2826_vm12 = vcmp.eq.f32.partialorder %v5863_v11, inf }
 0xa51   :  { %4415 = vrcp.f32 %v2632_v32  ;;  %v4400_v21 = vpop.eup %4399  ;;  %v5875_v3 = vmul.f32 %v4398_v42, %v3614_v24  ;;  %v2724_v42 = vmul.f32 %v5835_v22, %v5835_v22  ;;  %v2829_v31 = vand.u32 2147483648, %v5863_v11 }
 0xa52   :  { %4417 = vrsqrt.f32 %v5868_v2  ;;  %v4402_v47 = vpop.eup %4401  ;;  %v2684_v46 = vmul.f32 %v4400_v21, %v5807_v6  ;;  %vm2819_vm10 = vcmp.eq.f32.partialorder %v5868_v2, inf  ;;  %v2822_v24 = vand.u32 2147483648, %v5868_v2 }
 0xa53   :  { %4419 = vrcp.f32 %v2581_v63  ;;  %v4404_v4 = vpop.eup %4403  ;;  %v5881_v13 = vmul.f32 %v4402_v47, %v3617_v26  ;;  %vm2821_vm11 = vcmp.eq.f32.partialorder %v5868_v2, 0.0  ;;  %vm2828_vm13 = vcmp.eq.f32.partialorder %v5863_v11, 0.0 }
 0xa54   :  { %4421 = vrsqrt.f32 %v5866_v17  ;;  %3020 = vperm.xlu1 %4015, %v2702_v51   ;;  %v4406_v45 = vpop.eup %4405  ;;  %v2723_v51 = vmul.f32 %v5827_v38, %v5827_v38  ;;  %v2630_v23 = vadd.f32 1.0, %v4404_v4  ;;  %v2700_v37 = vadd.f32 1.1, %v2684_v46 }
 0xa55   :  { %4423 = vrcp.f32 %v2631_v16  ;;  %v4408_v62 = vpop.eup %4407  ;;  %v2683_v60 = vmul.f32 %v4406_v45, %v5807_v6  ;;  %v2726_v38 = vmul.f32 %v5831_v8, %v5831_v8  ;;  %v2539_v16 = vpop.xlane.xlu1 %2538  ;;  %vm2833_vm0 = vcmp.eq.f32.partialorder %v5875_v3, inf }
 0xa56   :  { %4425 = vrcp.f32 %v2579_v14  ;;  %v4410_v9 = vpop.eup %4409  ;;  %v5888_v32 = vmul.f32 %v4408_v62, %v3615_v28  ;;  %v3618_v5 = vadd.f32 -1.0, %v2723_v51  ;;  %v2568_v27 = vmax.f32 %v2539_v16, 1e-08  ;;  %v2537_v45 = vpop.xlane.xlu0 %2536 }
 0xa57   :  { %4427 = vrsqrt.f32 %v5875_v3  ;;  %v4412_v39 = vpop.eup %4411  ;;  %v2682_v58 = vmul.f32 %v4410_v9, %v5807_v6  ;;  %v2699_v44 = vadd.f32 1.1, %v2683_v60  ;;  %v3621_v34 = vadd.f32 -1.0, %v2726_v38 }
 0xa58   :  { %3015 = vperm.xlu1 %4015, %v5853_v61   ;;  %4429 = vrcp.f32 %v2571_v12  ;;  %v5894_v25 = vmul.f32 %v4412_v39, %v3618_v5  ;;  %v2716_v62 = vmul.f32 %v2700_v37, %v2700_v37  ;;  %v2567_v60 = vmax.f32 %v2537_v45, 1e-08 }
 0xa59   :  { %4431 = vrsqrt.f32 %v5881_v13  ;;  %v2698_v19 = vadd.f32 1.1, %v2682_v58  ;;  %v2535_v39 = vpop.xlane.xlu1 %2534  ;;  %v2715_v55 = vmul.f32 %v2699_v44, %v2699_v44  ;;  %vm2835_vm2 = vcmp.eq.f32.partialorder %v5875_v3, 0.0 }
 0xa5a   :  { %4433 = vrcp.f32 %v2630_v23  ;;  %v3611_v38 = vadd.f32 -1.0, %v2716_v62  ;;  %vm2854_vm3 = vcmp.eq.f32.partialorder %v5881_v13, inf  ;;  %vm2856_vm5 = vcmp.eq.f32.partialorder %v5881_v13, 0.0 }
 0xa5b   :  { %4435 = vrcp.f32 %v2570_v33  ;;  %vm2840_vm6 = vcmp.eq.f32.partialorder %v5888_v32, inf  ;;  %vm2842_vm7 = vcmp.eq.f32.partialorder %v5888_v32, 0.0  ;;  %vm2861_vm8 = vcmp.eq.f32.partialorder %v5894_v25, inf }
 0xa5c   :  { %3010 = vperm.xlu1 %4015, %v2700_v37   ;;  %4437 = vrsqrt.f32 %v5888_v32  ;;  %vm2863_vm4 = vcmp.eq.f32.partialorder %v5894_v25, 0.0 }
 0xa5d   :  { %v4414_v0 = vpop.eup %4413  ;;  %4439 = vrsqrt.f32 %v5894_v25 }
 0xa5e   :  { %v4416_v61 = vpop.eup %4415  ;;  %v2825_v49 = vmul.f32 %v4414_v0, %v5863_v11  ;;  %4441 = vrcp.f32 %v2569_v18 }
 0xa5f   :  { %v4418_v15 = vpop.eup %4417  ;;  %v2681_v21 = vmul.f32 %v4416_v61, %v5807_v6 }
 0xa60   :  { %v4420_v35 = vpop.eup %4419  ;;  %v2818_v63 = vmul.f32 %v4418_v15, %v5868_v2  ;;  %3005 = vperm.xlu1 %4015, %v2699_v44   ;;  %v2827_v4 = vsel %vm2826_vm12, %v5863_v11, %v2825_v49  ;;  %v2850_v11 = vand.u32 2147483648, %v5866_v17  ;;  %v2566_v15 = vmax.f32 %v2535_v39, 1e-08 }
 0xa61   :  { %v4422_v8 = vpop.eup %4421  ;;  %v5906_v47 = vmul.f32 %v4420_v35, %v3621_v34  ;;  %v2697_v51 = vadd.f32 1.1, %v2681_v21  ;;  %v2830_v28 = vsel %vm2828_vm13, %v2829_v31, %v2827_v4  ;;  %v3610_v34 = vadd.f32 -1.0, %v2715_v55 }
 0xa62   :  { %v2820_v14 = vsel %vm2819_vm10, %v5868_v2, %v2818_v63  ;;  %v4424_v29 = vpop.eup %4423  ;;  %v2846_v12 = vmul.f32 %v4422_v8, %v5866_v17  ;;  %v3619_v2 = vadd.f32 -1.0, %v2724_v42  ;;  %v2714_v42 = vmul.f32 %v2698_v19, %v2698_v19 }
 0xa63   :  { %v2823_v26 = vsel %vm2821_vm11, %v2822_v24, %v2820_v14  ;;  %v4426_v22 = vpop.eup %4425  ;;  %v2680_v9 = vmul.f32 %v4424_v29, %v5807_v6  ;;  %4443 = vrsqrt.f32 %v5906_v47  ;;  %vm2882_vm9 = vcmp.eq.f32.partialorder %v5906_v47, inf }
 0xa64   :  { %2919 = vperm.xlu0 %4016, %v2823_v26   ;;  %v4428_v46 = vpop.eup %4427  ;;  %3000 = vperm.xlu1 %4015, %v2698_v19   ;;  %v5915_v23 = vmul.f32 %v4426_v22, %v3619_v2  ;;  %4445 = vrcp.f32 %v2568_v27  ;;  %v2848_v0 = vsel %vm2847_vm14, %v5866_v17, %v2846_v12  ;;  %v2836_v17 = vand.u32 2147483648, %v5875_v3 }
 0xa65   :  { %v4430_v33 = vpop.eup %4429  ;;  %v2832_v37 = vmul.f32 %v4428_v46, %v5875_v3  ;;  %v2696_v61 = vadd.f32 1.1, %v2680_v9  ;;  %v2851_v35 = vsel %vm2849_vm15, %v2850_v11, %v2848_v0  ;;  %v2857_v22 = vand.u32 2147483648, %v5881_v13 }
 0xa66   :  { %v4432_v5 = vpop.eup %4431  ;;  %4447 = vrsqrt.f32 %v5915_v23  ;;  %v5925_v63 = vmul.f32 %v4430_v33, %v3611_v38  ;;  %v2713_v27 = vmul.f32 %v2697_v51, %v2697_v51  ;;  %vm2884_vm10 = vcmp.eq.f32.partialorder %v5906_v47, 0.0 }
 0xa67   :  { %v4434_v58 = vpop.eup %4433  ;;  %4449 = vrcp.f32 %v2567_v60  ;;  %v2834_v49 = vsel %vm2833_vm0, %v5875_v3, %v2832_v37  ;;  %v2853_v8 = vmul.f32 %v4432_v5, %v5881_v13  ;;  %v3609_v3 = vadd.f32 -1.0, %v2714_v42 }
 0xa68   :  { %2924 = vperm.xlu0 %4016, %v2830_v28   ;;  %2995 = vperm.xlu1 %4015, %v2697_v51   ;;  %v4436_v18 = vpop.eup %4435  ;;  %4451 = vrcp.f32 %v2566_v15  ;;  %v2837_v16 = vsel %vm2835_vm2, %v2836_v17, %v2834_v49  ;;  %v2679_v19 = vmul.f32 %v4434_v58, %v5807_v6  ;;  %v2843_v6 = vand.u32 2147483648, %v5888_v32 }
 0xa69   :  { %v4438_v44 = vpop.eup %4437  ;;  %v5932_v14 = vmul.f32 %v4436_v18, %v3610_v34  ;;  %v2855_v21 = vsel %vm2854_vm3, %v5881_v13, %v2853_v8  ;;  %4453 = vrsqrt.f32 %v5925_v63  ;;  %v3608_v51 = vadd.f32 -1.0, %v2713_v27 }
 0xa6a   :  { %v4440_v24 = vpop.eup %4439  ;;  %v2839_v29 = vmul.f32 %v4438_v44, %v5888_v32  ;;  %v2858_v4 = vsel %vm2856_vm5, %v2857_v22, %v2855_v21  ;;  %v5947_v62 = vadd.f32 1.1, %v2679_v19  ;;  %v2712_v13 = vmul.f32 %v2696_v61, %v2696_v61 }
 0xa6b   :  { %v4442_v26 = vpop.eup %4441  ;;  %v2860_v45 = vmul.f32 %v4440_v24, %v5894_v25  ;;  %4455 = vrsqrt.f32 %v5932_v14  ;;  %v2864_v37 = vand.u32 2147483648, %v5894_v25  ;;  %vm2868_vm11 = vcmp.eq.f32.partialorder %v5915_v23, inf }
 0xa6c   :  { %2939 = vperm.xlu0 %4016, %v2851_v35   ;;  %2990 = vperm.xlu1 %4015, %v2696_v61   ;;  %v5941_v46 = vmul.f32 %v4442_v26, %v3609_v3  ;;  %v2841_v2 = vsel %vm2840_vm6, %v5888_v32, %v2839_v29  ;;  %v2711_v5 = vmul.f32 %v5947_v62, %v5947_v62  ;;  %v3607_v32 = vadd.f32 -1.0, %v2712_v13 }
 0xa6d   :  { %v2844_v9 = vsel %vm2842_vm7, %v2843_v6, %v2841_v2  ;;  %v2862_v60 = vsel %vm2861_vm8, %v5894_v25, %v2860_v45  ;;  %v2885_v35 = vand.u32 2147483648, %v5906_v47  ;;  %v2871_v34 = vand.u32 2147483648, %v5915_v23 }
 0xa6e   :  { %4457 = vrsqrt.f32 %v5941_v46  ;;  %v2865_v11 = vsel %vm2863_vm4, %v2864_v37, %v2862_v60  ;;  %v3606_v18 = vadd.f32 -1.0, %v2711_v5  ;;  %vm2870_vm12 = vcmp.eq.f32.partialorder %v5915_v23, 0.0  ;;  %v3036_v37 = vpop.permute.xlu1 %3035 }
 0xa6f   :  { %vm2812_vm13 = vcmp.eq.f32.partialorder %v5925_v63, inf  ;;  %v2815_v21 = vand.u32 2147483648, %v5925_v63  ;;  %vm2814_vm14 = vcmp.eq.f32.partialorder %v5925_v63, 0.0  ;;  %vm2805_vm15 = vcmp.eq.f32.partialorder %v5932_v14, inf }
 0xa70   :  { %2929 = vperm.xlu0 %4016, %v2837_v16   ;;  %v4444_v12 = vpop.eup %4443  ;;  %v2808_v19 = vand.u32 2147483648, %v5932_v14  ;;  %vm2807_vm0 = vcmp.eq.f32.partialorder %v5932_v14, 0.0  ;;  %vm2798_vm2 = vcmp.eq.f32.partialorder %v5941_v46, inf  ;;  %vm2800_vm3 = vcmp.eq.f32.partialorder %v5941_v46, 0.0 }
 0xa71   :  { %v4446_v31 = vpop.eup %4445  ;;  %v2881_v39 = vmul.f32 %v4444_v12, %v5906_v47  ;;  %v2801_v12 = vand.u32 2147483648, %v5941_v46 }
 0xa72   :  { %v5951_v33 = vmul.f32 %v4446_v31, %v3608_v51  ;;  %v5991_v5 = vpop.permute.xlu1 %3025 }
 0xa73   :  { %v4448_v28 = vpop.eup %4447  ;;  %v2883_v61 = vsel %vm2882_vm9, %v5906_v47, %v2881_v39 }
 0xa74   :  { %2944 = vperm.xlu0 %4016, %v2858_v4   ;;  %v4450_v0 = vpop.eup %4449  ;;  %v2867_v58 = vmul.f32 %v4448_v28, %v5915_v23  ;;  %4459 = vrsqrt.f32 %v5951_v33  ;;  %v2886_v49 = vsel %vm2884_vm10, %v2885_v35, %v2883_v61  ;;  %vm2791_vm5 = vcmp.eq.f32.partialorder %v5951_v33, inf }
 0xa75   :  { %v4452_v38 = vpop.eup %4451  ;;  %v2746_v55 = vmul.f32 %v4450_v0, %v3607_v32  ;;  %v2794_v6 = vand.u32 2147483648, %v5951_v33  ;;  %vm2793_vm6 = vcmp.eq.f32.partialorder %v5951_v33, 0.0 }
 0xa76   :  { %v4454_v15 = vpop.eup %4453  ;;  %v2744_v25 = vmul.f32 %v4452_v38, %v3606_v18  ;;  %v2869_v8 = vsel %vm2868_vm11, %v5915_v23, %v2867_v58 }
 0xa77   :  { %v2811_v44 = vmul.f32 %v4454_v15, %v5925_v63  ;;  %4461 = vrsqrt.f32 %v2746_v55  ;;  %v2872_v42 = vsel %vm2870_vm12, %v2871_v34, %v2869_v8  ;;  %vm2784_vm7 = vcmp.eq.f32.partialorder %v2746_v55, inf }
 0xa78   :  { %2934 = vperm.xlu0 %4016, %v2844_v9   ;;  %v4456_v17 = vpop.eup %4455  ;;  %4463 = vrsqrt.f32 %v2744_v25  ;;  %v2787_v28 = vand.u32 2147483648, %v2746_v55  ;;  %vm2786_vm8 = vcmp.eq.f32.partialorder %v2746_v55, 0.0  ;;  %vm2777_vm4 = vcmp.eq.f32.partialorder %v2744_v25, inf }
 0xa79   :  { %v2813_v47 = vsel %vm2812_vm13, %v5925_v63, %v2811_v44  ;;  %v2804_v16 = vmul.f32 %v4456_v17, %v5932_v14  ;;  %v2780_v39 = vand.u32 2147483648, %v2744_v25  ;;  %vm2779_vm9 = vcmp.eq.f32.partialorder %v2744_v25, 0.0 }
 0xa7a   :  { %v2816_v29 = vsel %vm2814_vm14, %v2815_v21, %v2813_v47 }
 0xa7b   :  { %v4458_v24 = vpop.eup %4457  ;;  %v2806_v23 = vsel %vm2805_vm15, %v5932_v14, %v2804_v16 }
 0xa7c   :  { %2949 = vperm.xlu0 %4016, %v2865_v11   ;;  %v2797_v26 = vmul.f32 %v4458_v24, %v5941_v46  ;;  %v2809_v3 = vsel %vm2807_vm0, %v2808_v19, %v2806_v23 }
 0xa7e   :  { %v2799_v27 = vsel %vm2798_vm2, %v5941_v46, %v2797_v26 }
 0xa7f   :  { %v2802_v2 = vsel %vm2800_vm3, %v2801_v12, %v2799_v27 }
 0xa80   :  { %2964 = vperm.xlu0 %4016, %v2886_v49  }
 0xa81   :  { %v4460_v22 = vpop.eup %4459 }
 0xa82   :  { %v2790_v63 = vmul.f32 %v4460_v22, %v5951_v33 }
 0xa84   :  { %2954 = vperm.xlu0 %4016, %v2872_v42   ;;  %v4462_v4 = vpop.eup %4461  ;;  %v2792_v45 = vsel %vm2791_vm5, %v5951_v33, %v2790_v63  ;;  %v3041_v33 = vpop.permute.xlu1 %3040 }
 0xa85   :  { %v2783_v14 = vmul.f32 %v4462_v4, %v2746_v55  ;;  %v4464_v31 = vpop.eup %4463  ;;  %v2795_v51 = vsel %vm2793_vm6, %v2794_v6, %v2792_v45 }
 0xa86   :  { %v2776_v9 = vmul.f32 %v4464_v31, %v2744_v25 }
 0xa87   :  { %v2785_v13 = vsel %vm2784_vm7, %v2746_v55, %v2783_v14 }
 0xa88   :  { %2914 = vperm.xlu0 %4016, %v2816_v29   ;;  %v2788_v46 = vsel %vm2786_vm8, %v2787_v28, %v2785_v13  ;;  %v2778_v60 = vsel %vm2777_vm4, %v2744_v25, %v2776_v9  ;;  %v3031_v32 = vpop.permute.xlu1 %3030 }
 0xa89   :  { %v2781_v0 = vsel %vm2779_vm9, %v2780_v39, %v2778_v60 }
 0xa8c   :  { %2909 = vperm.xlu0 %4016, %v2809_v3   ;;  %v3056_v11 = vpop.permute.xlu1 %3055 }
 0xa90   :  { %2904 = vperm.xlu0 %4016, %v2802_v2   ;;  %v3046_v38 = vpop.permute.xlu1 %3045 }
 0xa94   :  { %2899 = vperm.xlu0 %4016, %v2795_v51   ;;  %v3061_v55 = vpop.permute.xlu1 %3060 }
 0xa98   :  { %2894 = vperm.xlu0 %4016, %v2788_v46   ;;  %v3051_v35 = vpop.permute.xlu1 %3050 }
 0xa9c   :  { %2889 = vperm.xlu0 %4016, %v2781_v0  }
 0xaa0   :  { %2985 = vperm.xlu0 %4016, %v5947_v62  }
 0xacb   :  { %v2960_v49 = vpop.permute.xlu1 %2959 }
 0xacc   :  { %v2981_v42 = vmul.f32 %v5743_v56, %v2960_v49  ;;  %v4524_v49 = vld [vmem:[#allocation7 + $0x68] sm:$0xff] }
 0xace   :  { %v3077_v23 = vsel %vm138_vm1, %v3056_v11, %v2981_v42  ;;  %v4516_v11 = vld [vmem:[#allocation7 + $0x40] sm:$0xff] }
 0xacf   :  { %v5993_v44 = vpop.permute.xlu1 %3020 }
 0xad3   :  { %v5995_v62 = vpop.permute.xlu1 %3015 }
 0xad7   :  { %v3011_v26 = vpop.permute.xlu1 %3010 }
 0xadb   :  { %v3006_v3 = vpop.permute.xlu1 %3005 }
 0xadf   :  { %v2920_v61 = vpop.permute.xlu0 %2919  ;;  %v3001_v45 = vpop.permute.xlu1 %3000 }
 0xae0   :  { %v2973_v2 = vmul.f32 %v5727_v53, %v2920_v61  ;;  %v4518_v61 = vld [vmem:[#allocation7 + $0x48] sm:$0xff] }
 0xae2   :  { %v3069_v6 = vsel %vm138_vm1, %v5995_v62, %v2973_v2 }
 0xae3   :  { %v2925_v58 = vpop.permute.xlu0 %2924  ;;  %v2996_v13 = vpop.permute.xlu1 %2995 }
 0xae7   :  { %v2940_v15 = vpop.permute.xlu0 %2939  ;;  %v2991_v39 = vpop.permute.xlu1 %2990 }
 0xaeb   :  { %v2930_v18 = vpop.permute.xlu0 %2929 }
 0xaef   :  { %v2945_v8 = vpop.permute.xlu0 %2944 }
 0xaf0   :  { %v2978_v56 = vmul.f32 %v5739_v54, %v2945_v8  ;;  %v4525_v8 = vld [vmem:[#allocation7 + $0x70] sm:$0xff] }
 0xaf2   :  { %v3074_v54 = vsel %vm138_vm1, %v3041_v33, %v2978_v56  ;;  %v4513_v33 = vld [vmem:[#allocation7 + $0x8] sm:$0xff] }
 0xaf3   :  { %v2935_v25 = vpop.permute.xlu0 %2934 }
 0xaf4   :  { %v2976_v19 = vmul.f32 %v2935_v25, %v5741_v1  ;;  %v2974_v1 = vmul.f32 %v5731_v20, %v2925_v58  ;;  %v4519_v58 = vld [vmem:[#allocation7 + $0x20] sm:$0xff]  ;;  %v4526_v25 = vld [vmem:[#allocation7 + $0x78] sm:$0xff] }
 0xaf6   :  { %v3072_v4 = vsel %vm138_vm1, %v3031_v32, %v2976_v19  ;;  %v3070_v14 = vsel %vm138_vm1, %v5993_v44, %v2974_v1  ;;  %v4515_v32 = vld [vmem:[#allocation7 + $0x10] sm:$0xff] }
 0xaf7   :  { %v2950_v17 = vpop.permute.xlu0 %2949 }
 0xaf8   :  { %v2979_v21 = vmul.f32 %v2950_v17, %v5748_v10 }
 0xafa   :  { %v3075_v22 = vsel %vm138_vm1, %v3046_v38, %v2979_v21  ;;  %v4517_v38 = vld [vmem:[#allocation7 + $0x18] sm:$0xff] }
 0xafb   :  { %v2965_v34 = vpop.permute.xlu0 %2964 }
 0xafc   :  { %v2982_v47 = vmul.f32 %v5750_v59, %v2965_v34 }
 0xafe   :  { %v3078_v16 = vsel %vm138_vm1, %v3061_v55, %v2982_v47  ;;  %v4520_v55 = vld [vmem:[#allocation7 + $0x50] sm:$0xff] }
 0xaff   :  { %3917 = vmatprep.subr.mxu0 %v3078_v16  ;;  %3973 = vmatprep.subr.mxu1 %v3078_v16  ;;  %v2955_v24 = vpop.permute.xlu0 %2954 }
 0xb00   :  { %v2980_v29 = vmul.f32 %v2955_v24, %v5755_v50  ;;  %3918 = vmatpush3.msra.mxu0 %v3078_v16  ;;  %3989 = vmatpush3.msra.mxu1 %v3078_v16  ;;  %v2977_v50 = vmul.f32 %v5735_v36, %v2940_v15  ;;  %v2975_v36 = vmul.f32 %v2930_v18, %v5737_v40  ;;  %v4521_v15 = vld [vmem:[#allocation7 + $0x28] sm:$0xff]  ;;  %v4523_v18 = vld [vmem:[#allocation7 + $0x60] sm:$0xff] }
 0xb01   :  { %3919 = vmatprep.subr.mxu0 %v3077_v23  ;;  %3974 = vmatprep.subr.mxu1 %v3077_v23 }
 0xb02   :  { %3920 = vmatpush3.msra.mxu0 %v3077_v23  ;;  %3990 = vmatpush3.msra.mxu1 %v3077_v23  ;;  %v3076_v59 = vsel %vm138_vm1, %v3051_v35, %v2980_v29  ;;  %v3073_v63 = vsel %vm138_vm1, %v3036_v37, %v2977_v50  ;;  %v3071_v40 = vsel %vm138_vm1, %v5991_v5, %v2975_v36  ;;  %v4522_v35 = vld [vmem:[#allocation7 + $0x58] sm:$0xff] }
 0xb03   :  { %3921 = vmatprep.subr.mxu0 %v3076_v59  ;;  %3975 = vmatprep.subr.mxu1 %v3076_v59  ;;  %v2915_v10 = vpop.permute.xlu0 %2914 }
 0xb04   :  { %3922 = vmatpush3.msra.mxu0 %v3076_v59  ;;  %3991 = vmatpush3.msra.mxu1 %v3076_v59  ;;  %v2972_v20 = vmul.f32 %v2915_v10, %v5733_v7 }
 0xb05   :  { %3923 = vmatprep.subr.mxu0 %v3075_v22  ;;  %3976 = vmatprep.subr.mxu1 %v3075_v22 }
 0xb06   :  { %3924 = vmatpush3.msra.mxu0 %v3075_v22  ;;  %3992 = vmatpush3.msra.mxu1 %v3075_v22  ;;  %v3068_v51 = vsel %vm138_vm1, %v3011_v26, %v2972_v20 }
 0xb07   :  { %3925 = vmatprep.subr.mxu0 %v3074_v54  ;;  %3977 = vmatprep.subr.mxu1 %v3074_v54  ;;  %v2910_v27 = vpop.permute.xlu0 %2909 }
 0xb08   :  { %3926 = vmatpush3.msra.mxu0 %v3074_v54  ;;  %3993 = vmatpush3.msra.mxu1 %v3074_v54  ;;  %v2971_v31 = vmul.f32 %v2910_v27, %v5729_v48 }
 0xb09   :  { %3927 = vmatprep.subr.mxu0 %v3073_v63  ;;  %3978 = vmatprep.subr.mxu1 %v3073_v63 }
 0xb0a   :  { %3928 = vmatpush3.msra.mxu0 %v3073_v63  ;;  %3994 = vmatpush3.msra.mxu1 %v3073_v63  ;;  %v3067_v28 = vsel %vm138_vm1, %v3006_v3, %v2971_v31 }
 0xb0b   :  { %3929 = vmatprep.subr.mxu0 %v3072_v4  ;;  %3979 = vmatprep.subr.mxu1 %v3072_v4  ;;  %v2905_v12 = vpop.permute.xlu0 %2904 }
 0xb0c   :  { %3930 = vmatpush3.msra.mxu0 %v3072_v4  ;;  %3995 = vmatpush3.msra.mxu1 %v3072_v4  ;;  %v2970_v7 = vmul.f32 %v5723_v52, %v2905_v12 }
 0xb0d   :  { %3931 = vmatprep.subr.mxu0 %v3071_v40  ;;  %3980 = vmatprep.subr.mxu1 %v3071_v40 }
 0xb0e   :  { %3932 = vmatpush3.msra.mxu0 %v3071_v40  ;;  %3996 = vmatpush3.msra.mxu1 %v3071_v40  ;;  %v3066_v46 = vsel %vm138_vm1, %v3001_v45, %v2970_v7 }
 0xb0f   :  { %3933 = vmatprep.subr.mxu0 %v3070_v14  ;;  %3981 = vmatprep.subr.mxu1 %v3070_v14  ;;  %v2900_v53 = vpop.permute.xlu0 %2899 }
 0xb10   :  { %3934 = vmatpush3.msra.mxu0 %v3070_v14  ;;  %3997 = vmatpush3.msra.mxu1 %v3070_v14  ;;  %v2969_v48 = vmul.f32 %v5719_v30, %v2900_v53 }
 0xb11   :  { %3935 = vmatprep.subr.mxu0 %v3069_v6  ;;  %3982 = vmatprep.subr.mxu1 %v3069_v6 }
 0xb12   :  { %3936 = vmatpush3.msra.mxu0 %v3069_v6  ;;  %3998 = vmatpush3.msra.mxu1 %v3069_v6  ;;  %v3065_v30 = vsel %vm138_vm1, %v2996_v13, %v2969_v48 }
 0xb13   :  { %3937 = vmatprep.subr.mxu0 %v3068_v51  ;;  %3983 = vmatprep.subr.mxu1 %v3068_v51  ;;  %v2895_v9 = vpop.permute.xlu0 %2894 }
 0xb14   :  { %3938 = vmatpush3.msra.mxu0 %v3068_v51  ;;  %3999 = vmatpush3.msra.mxu1 %v3068_v51  ;;  %v2968_v52 = vmul.f32 %v2895_v9, %v5725_v43 }
 0xb15   :  { %3939 = vmatprep.subr.mxu0 %v3067_v28  ;;  %3984 = vmatprep.subr.mxu1 %v3067_v28 }
 0xb16   :  { %3940 = vmatpush3.msra.mxu0 %v3067_v28  ;;  %4000 = vmatpush3.msra.mxu1 %v3067_v28  ;;  %v3064_v43 = vsel %vm138_vm1, %v2991_v39, %v2968_v52 }
 0xb17   :  { %3941 = vmatprep.subr.mxu0 %v3066_v46  ;;  %3985 = vmatprep.subr.mxu1 %v3066_v46  ;;  %v2890_v60 = vpop.permute.xlu0 %2889 }
 0xb18   :  { %3942 = vmatpush3.msra.mxu0 %v3066_v46  ;;  %4001 = vmatpush3.msra.mxu1 %v3066_v46  ;;  %v2967_v0 = vmul.f32 %v2890_v60, %v5721_v57  ;;  %v4514_v57 = vld [vmem:[#allocation7 + $0x38] sm:$0xff] }
 0xb19   :  { %3943 = vmatprep.subr.mxu0 %v3065_v30  ;;  %3986 = vmatprep.subr.mxu1 %v3065_v30 }
 0xb1a   :  { %3944 = vmatpush3.msra.mxu0 %v3065_v30  ;;  %4002 = vmatpush3.msra.mxu1 %v3065_v30 }
 0xb1b   :  { %3945 = vmatprep.subr.mxu0 %v3064_v43  ;;  %3987 = vmatprep.subr.mxu1 %v3064_v43  ;;  %v2986_v37 = vpop.permute.xlu0 %2985 }
 0xb1c   :  { %v3063_v5 = vsel %vm138_vm1, %v2986_v37, %v2967_v0  ;;  %3946 = vmatpush3.msra.mxu0 %v3064_v43  ;;  %4003 = vmatpush3.msra.mxu1 %v3064_v43 }
 0xb1d   :  { %3947 = vmatprep.subr.mxu0 %v3063_v5  ;;  %3988 = vmatprep.subr.mxu1 %v3063_v5 }
 0xb1e   :  { %3948 = vmatpush3.msra.mxu0 %v3063_v5  ;;  %4004 = vmatpush3.msra.mxu1 %v3063_v5 }
 0xb1f   :  { %3950 = vmatmul.mubr.f32.vlgmr.msra.gmra.mxu0 %v4513_v33  ;;  %3959 = vmatmul.mubr.f32.vlgmr.msra.gmra.mxu1 %v4514_v57 }
 0xb20   :  { %3952 = vmatprep.mubr.f32.mxu0 %v4515_v32  ;;  %3961 = vmatprep.mubr.f32.mxu1 %v4516_v11 }
 0xb23   :  { %3953 = vmatmul.mubr.f32.gmra.mxu0 %v4517_v38  ;;  %3962 = vmatmul.mubr.f32.gmra.mxu1 %v4518_v61 }
 0xb24   :  { %3955 = vmatprep.mubr.f32.mxu0 %v4519_v58  ;;  %3964 = vmatprep.mubr.f32.mxu1 %v4520_v55 }
 0xb27   :  { %3956 = vmatmul.mubr.f32.gmra.mxu0 %v4521_v15  ;;  %3965 = vmatmul.mubr.f32.gmra.mxu1 %v4522_v35 }
 0xb28   :  { %3967 = vmatprep.mubr.f32.mxu1 %v4523_v18 }
 0xb2b   :  { %3968 = vmatmul.mubr.f32.gmra.mxu1 %v4524_v49 }
 0xb2c   :  { %3970 = vmatprep.mubr.f32.mxu1 %v4525_v8 }
 0xb2f   :  { %3971 = vmatmul.mubr.f32.gmra.mxu1 %v4526_v25 }
 0xbdf   :  { %v6048_v44 = vpop.f32.mrf.mxu0  ;;  %v6050_v17 = vpop.f32.mrf.mxu1 }
 0xbe0   :  { %v3225_v62 = vsel %vm138_vm1, 0.0, %v6048_v44  ;;  %v3231_v34 = vsel %vm138_vm1, 0.0, %v6050_v17  ;;  %v3295_v5 = vmul.f32 %v6050_v17, %v6050_v17  ;;  %v3289_v33 = vmul.f32 %v6048_v44, %v6048_v44 }
 0xbe1   :  { %v3241_v42 = vmul.f32 %v3225_v62, %v3225_v62  ;;  %v3247_v47 = vmul.f32 %v3231_v34, %v3231_v34  ;;  %v6058_v16 = vpop.f32.mrf.mxu0  ;;  %v6060_v24 = vpop.f32.mrf.mxu1 }
 0xbe2   :  { %v3224_v21 = vsel %vm138_vm1, 0.0, %v6058_v16  ;;  %v3230_v29 = vsel %vm138_vm1, 0.0, %v6060_v24  ;;  %v3294_v41 = vmul.f32 %v6060_v24, %v6060_v24  ;;  %v3288_v55 = vmul.f32 %v6058_v16, %v6058_v16 }
 0xbe3   :  { %3270 = vadd.xlane.f32.xlu1 %v3247_v47  ;;  %3258 = vadd.xlane.f32.xlu0 %v3241_v42  ;;  %v6068_v23 = vpop.f32.mrf.mxu0  ;;  %v6070_v26 = vpop.f32.mrf.mxu1  ;;  %v3240_v56 = vmul.f32 %v3224_v21, %v3224_v21  ;;  %v3246_v59 = vmul.f32 %v3230_v29, %v3230_v29 }
 0xbe4   :  { %v3227_v22 = vsel %vm138_vm1, 0.0, %v6068_v23  ;;  %v3233_v1 = vsel %vm138_vm1, 0.0, %v6070_v26  ;;  %v3291_v62 = vmul.f32 %v6068_v23, %v6068_v23 }
 0xbe5   :  { %v6072_v10 = vpop.f32.mrf.mxu0  ;;  %v6074_v50 = vpop.f32.mrf.mxu1  ;;  %v3243_v27 = vmul.f32 %v3227_v22, %v3227_v22  ;;  %v3249_v40 = vmul.f32 %v3233_v1, %v3233_v1 }
 0xbe6   :  { %v3226_v19 = vsel %vm138_vm1, 0.0, %v6072_v10  ;;  %v3232_v4 = vsel %vm138_vm1, 0.0, %v6074_v50  ;;  %v3290_v47 = vmul.f32 %v6072_v10, %v6072_v10 }
 0xbe7   :  { %3268 = vadd.xlane.f32.xlu0 %v3246_v59  ;;  %3256 = vadd.xlane.f32.xlu1 %v3240_v56  ;;  %v6082_v54 = vpop.f32.mrf.mxu0  ;;  %v6084_v3 = vpop.f32.mrf.mxu1  ;;  %v3242_v36 = vmul.f32 %v3226_v19, %v3226_v19  ;;  %v3248_v45 = vmul.f32 %v3232_v4, %v3232_v4  ;;  %v3296_v4 = vmul.f32 %v6074_v50, %v6074_v50 }
 0xbe8   :  { %v3229_v20 = vsel %vm138_vm1, 0.0, %v6082_v54  ;;  %v3235_v7 = vsel %vm138_vm1, 0.0, %v6084_v3 }
 0xbe9   :  { %v6086_v63 = vpop.f32.mrf.mxu1  ;;  %v6094_v12 = vpop.f32.mrf.mxu0  ;;  %v3245_v31 = vmul.f32 %v3229_v20, %v3229_v20  ;;  %v3251_v9 = vmul.f32 %v3235_v7, %v3235_v7  ;;  %v3293_v7 = vmul.f32 %v6082_v54, %v6082_v54 }
 0xbea   :  { %v3228_v14 = vsel %vm138_vm1, 0.0, %v6094_v12  ;;  %v3234_v51 = vsel %vm138_vm1, 0.0, %v6086_v63 }
 0xbeb   :  { %3262 = vadd.xlane.f32.xlu1 %v3243_v27  ;;  %3260 = vadd.xlane.f32.xlu0 %v3242_v36  ;;  %v6096_v2 = vpop.f32.mrf.mxu1  ;;  %v3244_v6 = vmul.f32 %v3228_v14, %v3228_v14  ;;  %v3250_v48 = vmul.f32 %v3234_v51, %v3234_v51  ;;  %v3297_v27 = vmul.f32 %v6070_v26, %v6070_v26 }
 0xbec   :  { %v3237_v28 = vsel %vm138_vm1, 0.0, %v6096_v2  ;;  %v3292_v51 = vmul.f32 %v6094_v12, %v6094_v12 }
 0xbed   :  { %v6104_v53 = vpop.f32.mrf.mxu1  ;;  %v3253_v60 = vmul.f32 %v3237_v28, %v3237_v28 }
 0xbee   :  { %v3236_v52 = vsel %vm138_vm1, 0.0, %v6104_v53 }
 0xbef   :  { %3274 = vadd.xlane.f32.xlu1 %v3249_v40  ;;  %3272 = vadd.xlane.f32.xlu0 %v3248_v45  ;;  %v6112_v13 = vpop.f32.mrf.mxu1  ;;  %v3252_v30 = vmul.f32 %v3236_v52, %v3236_v52 }
 0xbf0   :  { %v3239_v39 = vsel %vm138_vm1, 0.0, %v6112_v13 }
 0xbf1   :  { %v6120_v46 = vpop.f32.mrf.mxu1  ;;  %v3255_v43 = vmul.f32 %v3239_v39, %v3239_v39 }
 0xbf2   :  { %v3238_v0 = vsel %vm138_vm1, 0.0, %v6120_v46 }
 0xbf3   :  { %3266 = vadd.xlane.f32.xlu1 %v3245_v31  ;;  %3264 = vadd.xlane.f32.xlu0 %v3244_v6  ;;  %v3254_v37 = vmul.f32 %v3238_v0, %v3238_v0 }
 0xbf7   :  { %3278 = vadd.xlane.f32.xlu1 %v3251_v9  ;;  %3276 = vadd.xlane.f32.xlu0 %v3250_v48 }
 0xbfb   :  { %3282 = vadd.xlane.f32.xlu1 %v3253_v60  ;;  %3280 = vadd.xlane.f32.xlu0 %v3252_v30 }
 0xbff   :  { %3286 = vadd.xlane.f32.xlu1 %v3255_v43  ;;  %3284 = vadd.xlane.f32.xlu0 %v3254_v37  ;;  %v3299_v43 = vmul.f32 %v6084_v3, %v6084_v3 }
 0xc6c   :  { %v3271_v57 = vpop.xlane.xlu1 %3270  ;;  %v3259_v32 = vpop.xlane.xlu0 %3258 }
 0xc6d   :  { %v3311_v11 = vsub.f32 %v3295_v5, %v3271_v57  ;;  %v3305_v38 = vsub.f32 %v3289_v33, %v3259_v32  ;;  %v3298_v33 = vmul.f32 %v6086_v63, %v6086_v63 }
 0xc6f   :  { %v3327_v61 = vand.u32 2147483647, %v3311_v11  ;;  %v3321_v58 = vand.u32 2147483647, %v3305_v38 }
 0xc70   :  { %v3269_v15 = vpop.xlane.xlu0 %3268  ;;  %v3257_v35 = vpop.xlane.xlu1 %3256 }
 0xc71   :  { %v3343_v18 = vmax.f32 %v3327_v61, 1e-08  ;;  %v3337_v49 = vmax.f32 %v3321_v58, 1e-08  ;;  %v3310_v8 = vsub.f32 %v3294_v41, %v3269_v15  ;;  %v3304_v25 = vsub.f32 %v3288_v55, %v3257_v35 }
 0xc72   :  { %v3301_v15 = vmul.f32 %v6096_v2, %v6096_v2 }
 0xc73   :  { %4465 = vrsqrt.f32 %v3343_v18  ;;  %v3326_v34 = vand.u32 2147483647, %v3310_v8  ;;  %v3320_v42 = vand.u32 2147483647, %v3304_v25 }
 0xc74   :  { %4467 = vrsqrt.f32 %v3337_v49  ;;  %v3263_v21 = vpop.xlane.xlu1 %3262  ;;  %v3261_v29 = vpop.xlane.xlu0 %3260  ;;  %v3300_v49 = vmul.f32 %v6104_v53, %v6104_v53 }
 0xc75   :  { %v3342_v56 = vmax.f32 %v3326_v34, 1e-08  ;;  %v3336_v59 = vmax.f32 %v3320_v42, 1e-08  ;;  %v3307_v22 = vsub.f32 %v3291_v62, %v3263_v21  ;;  %v3306_v19 = vsub.f32 %v3290_v47, %v3261_v29 }
 0xc77   :  { %4469 = vrsqrt.f32 %v3342_v56  ;;  %v3323_v36 = vand.u32 2147483647, %v3307_v22  ;;  %v3322_v1 = vand.u32 2147483647, %v3306_v19  ;;  %v3303_v56 = vmul.f32 %v6112_v13, %v6112_v13 }
 0xc78   :  { %4471 = vrsqrt.f32 %v3336_v59  ;;  %v3275_v40 = vpop.xlane.xlu1 %3274  ;;  %v3273_v45 = vpop.xlane.xlu0 %3272  ;;  %v3302_v59 = vmul.f32 %v6120_v46, %v6120_v46 }
 0xc79   :  { %v3339_v20 = vmax.f32 %v3323_v36, 1e-08  ;;  %v3338_v14 = vmax.f32 %v3322_v1, 1e-08  ;;  %v3313_v31 = vsub.f32 %v3297_v27, %v3275_v40  ;;  %v3312_v6 = vsub.f32 %v3296_v4, %v3273_v45 }
 0xc7b   :  { %4473 = vrsqrt.f32 %v3339_v20  ;;  %v3329_v9 = vand.u32 2147483647, %v3313_v31  ;;  %v3328_v48 = vand.u32 2147483647, %v3312_v6 }
 0xc7c   :  { %4475 = vrsqrt.f32 %v3338_v14  ;;  %v3267_v28 = vpop.xlane.xlu1 %3266  ;;  %v3265_v52 = vpop.xlane.xlu0 %3264 }
 0xc7d   :  { %v3345_v60 = vmax.f32 %v3329_v9, 1e-08  ;;  %v3344_v30 = vmax.f32 %v3328_v48, 1e-08  ;;  %v3309_v39 = vsub.f32 %v3293_v7, %v3267_v28  ;;  %v3308_v0 = vsub.f32 %v3292_v51, %v3265_v52 }
 0xc7f   :  { %4477 = vrsqrt.f32 %v3345_v60  ;;  %v3325_v37 = vand.u32 2147483647, %v3309_v39  ;;  %v3324_v5 = vand.u32 2147483647, %v3308_v0 }
 0xc80   :  { %v4466_v57 = vpop.eup %4465  ;;  %4479 = vrsqrt.f32 %v3344_v30  ;;  %v3279_v32 = vpop.xlane.xlu1 %3278 }
 0xc81   :  { %v3277_v11 = vpop.xlane.xlu0 %3276  ;;  %v4468_v38 = vpop.eup %4467  ;;  %v3341_v61 = vmax.f32 %v3325_v37, 1e-08  ;;  %v3340_v58 = vmax.f32 %v3324_v5, 1e-08  ;;  %v3315_v41 = vsub.f32 %v3299_v43, %v3279_v32  ;;  %3405 = vperm.xlu0 %4016, %v4466_v57  }
 0xc82   :  { %v3314_v55 = vsub.f32 %v3298_v33, %v3277_v11  ;;  %3375 = vperm.xlu1 %4015, %v4468_v38  }
 0xc83   :  { %4481 = vrsqrt.f32 %v3341_v61  ;;  %v3331_v35 = vand.u32 2147483647, %v3315_v41 }
 0xc84   :  { %v3330_v18 = vand.u32 2147483647, %v3314_v55  ;;  %v4470_v8 = vpop.eup %4469  ;;  %4483 = vrsqrt.f32 %v3340_v58  ;;  %v3283_v25 = vpop.xlane.xlu1 %3282 }
 0xc85   :  { %v3281_v62 = vpop.xlane.xlu0 %3280  ;;  %v4472_v34 = vpop.eup %4471  ;;  %v3347_v42 = vmax.f32 %v3331_v35, 1e-08  ;;  %v3317_v21 = vsub.f32 %v3301_v15, %v3283_v25 }
 0xc86   :  { %v3346_v47 = vmax.f32 %v3330_v18, 1e-08  ;;  %v3316_v29 = vsub.f32 %v3300_v49, %v3281_v62  ;;  %3400 = vperm.xlu1 %4015, %v4470_v8   ;;  %3370 = vperm.xlu0 %4016, %v4472_v34  }
 0xc87   :  { %4485 = vrsqrt.f32 %v3347_v42  ;;  %v3333_v22 = vand.u32 2147483647, %v3317_v21 }
 0xc88   :  { %v3332_v19 = vand.u32 2147483647, %v3316_v29  ;;  %v4474_v27 = vpop.eup %4473  ;;  %4487 = vrsqrt.f32 %v3346_v47  ;;  %v3287_v36 = vpop.xlane.xlu1 %3286 }
 0xc89   :  { %v3285_v1 = vpop.xlane.xlu0 %3284  ;;  %v4476_v4 = vpop.eup %4475  ;;  %v3349_v40 = vmax.f32 %v3333_v22, 1e-08  ;;  %v3319_v20 = vsub.f32 %v3303_v56, %v3287_v36 }
 0xc8a   :  { %v3348_v45 = vmax.f32 %v3332_v19, 1e-08  ;;  %v3318_v14 = vsub.f32 %v3302_v59, %v3285_v1  ;;  %3380 = vperm.xlu1 %4015, %v4476_v4   ;;  %3385 = vperm.xlu0 %4016, %v4474_v27  }
 0xc8b   :  { %4489 = vrsqrt.f32 %v3349_v40  ;;  %v3335_v31 = vand.u32 2147483647, %v3319_v20 }
 0xc8c   :  { %v3334_v6 = vand.u32 2147483647, %v3318_v14  ;;  %v4478_v7 = vpop.eup %4477  ;;  %4491 = vrsqrt.f32 %v3348_v45 }
 0xc8d   :  { %v4480_v51 = vpop.eup %4479  ;;  %v3351_v9 = vmax.f32 %v3335_v31, 1e-08 }
 0xc8e   :  { %v3350_v48 = vmax.f32 %v3334_v6, 1e-08  ;;  %3410 = vperm.xlu1 %4015, %v4480_v51   ;;  %3415 = vperm.xlu0 %4016, %v4478_v7  }
 0xc8f   :  { %4493 = vrsqrt.f32 %v3351_v9 }
 0xc90   :  { %v4482_v28 = vpop.eup %4481  ;;  %4495 = vrsqrt.f32 %v3350_v48 }
 0xc91   :  { %v4484_v52 = vpop.eup %4483 }
 0xc92   :  { %3395 = vperm.xlu0 %4016, %v4482_v28   ;;  %3390 = vperm.xlu1 %4015, %v4484_v52  }
 0xc94   :  { %v4486_v60 = vpop.eup %4485 }
 0xc95   :  { %v4488_v30 = vpop.eup %4487 }
 0xc96   :  { %3425 = vperm.xlu0 %4016, %v4486_v60   ;;  %3420 = vperm.xlu1 %4015, %v4488_v30  }
 0xc98   :  { %v4490_v39 = vpop.eup %4489 }
 0xc99   :  { %v4492_v0 = vpop.eup %4491 }
 0xc9a   :  { %3435 = vperm.xlu0 %4016, %v4490_v39   ;;  %3430 = vperm.xlu1 %4015, %v4492_v0  }
 0xc9c   :  { %v4494_v43 = vpop.eup %4493 }
 0xc9d   :  { %v4496_v37 = vpop.eup %4495 }
 0xc9e   :  { %3445 = vperm.xlu0 %4016, %v4494_v43   ;;  %3440 = vperm.xlu1 %4015, %v4496_v37  }
 0xcfc   :  { %v3406_v5 = vpop.permute.xlu0 %3405 }
 0xcfd   :  { %v3376_v33 = vpop.permute.xlu1 %3375  ;;  %v3455_v57 = vmul.f32 %v6050_v17, %v3406_v5 }
 0xcfe   :  { %v3449_v32 = vmul.f32 %v6048_v44, %v3376_v33 }
 0xcff   :  { %3471 = vst [vmem:[#allocation13 + $0x38] sm:$0xff] %v3455_v57 }
 0xd00   :  { %3465 = vst [vmem:[#allocation13 + $0x8] sm:$0xff] %v3449_v32 }
 0xd01   :  { %v3401_v11 = vpop.permute.xlu1 %3400  ;;  %v3371_v38 = vpop.permute.xlu0 %3370 }
 0xd02   :  { %v3454_v61 = vmul.f32 %v3401_v11, %v6060_v24  ;;  %v3448_v58 = vmul.f32 %v3371_v38, %v6058_v16 }
 0xd04   :  { %3470 = vst [vmem:[#allocation13 + $0x30] sm:$0xff] %v3454_v61  ;;  %3464 = vst [vmem:[#allocation13] sm:$0xff] %v3448_v58 }
 0xd05   :  { %v3381_v41 = vpop.permute.xlu1 %3380  ;;  %v3386_v55 = vpop.permute.xlu0 %3385 }
 0xd06   :  { %v3450_v15 = vmul.f32 %v3381_v41, %v6072_v10  ;;  %v3451_v35 = vmul.f32 %v6068_v23, %v3386_v55 }
 0xd08   :  { %3466 = vst [vmem:[#allocation13 + $0x10] sm:$0xff] %v3450_v15  ;;  %3467 = vst [vmem:[#allocation13 + $0x18] sm:$0xff] %v3451_v35 }
 0xd09   :  { %v3411_v17 = vpop.permute.xlu1 %3410  ;;  %v3416_v44 = vpop.permute.xlu0 %3415 }
 0xd0a   :  { %v3456_v18 = vmul.f32 %v3411_v17, %v6074_v50  ;;  %v3457_v49 = vmul.f32 %v6070_v26, %v3416_v44 }
 0xd0c   :  { %3472 = vst [vmem:[#allocation13 + $0x40] sm:$0xff] %v3456_v18  ;;  %3473 = vst [vmem:[#allocation13 + $0x48] sm:$0xff] %v3457_v49 }
 0xd0d   :  { %v3391_v24 = vpop.permute.xlu1 %3390  ;;  %v3396_v16 = vpop.permute.xlu0 %3395 }
 0xd0e   :  { %v3452_v8 = vmul.f32 %v3391_v24, %v6094_v12  ;;  %v3453_v25 = vmul.f32 %v6082_v54, %v3396_v16 }
 0xd10   :  { %3468 = vst [vmem:[#allocation13 + $0x20] sm:$0xff] %v3452_v8  ;;  %3469 = vst [vmem:[#allocation13 + $0x28] sm:$0xff] %v3453_v25 }
 0xd11   :  { %v3421_v10 = vpop.permute.xlu1 %3420  ;;  %v3426_v23 = vpop.permute.xlu0 %3425 }
 0xd12   :  { %v3458_v62 = vmul.f32 %v3421_v10, %v6086_v63  ;;  %v3459_v34 = vmul.f32 %v6084_v3, %v3426_v23 }
 0xd14   :  { %3474 = vst [vmem:[#allocation13 + $0x50] sm:$0xff] %v3458_v62  ;;  %3475 = vst [vmem:[#allocation13 + $0x58] sm:$0xff] %v3459_v34 }
 0xd15   :  { %v3431_v50 = vpop.permute.xlu1 %3430  ;;  %v3436_v26 = vpop.permute.xlu0 %3435 }
 0xd16   :  { %v3460_v42 = vmul.f32 %v3431_v50, %v6104_v53  ;;  %v3461_v47 = vmul.f32 %v6096_v2, %v3436_v26 }
 0xd18   :  { %3476 = vst [vmem:[#allocation13 + $0x60] sm:$0xff] %v3460_v42  ;;  %3477 = vst [vmem:[#allocation13 + $0x68] sm:$0xff] %v3461_v47 }
 0xd19   :  { %v3441_v54 = vpop.permute.xlu1 %3440  ;;  %v3446_v12 = vpop.permute.xlu0 %3445 }
 0xd1a   :  { %v3462_v21 = vmul.f32 %v3441_v54, %v6120_v46  ;;  %v3463_v63 = vmul.f32 %v6112_v13, %v3446_v12 }
 0xd1c   :  { %3478 = vst [vmem:[#allocation13 + $0x70] sm:$0xff] %v3462_v21  ;;  %3479 = vst [vmem:[#allocation13 + $0x78] sm:$0xff] %v3463_v63 }
 0xd1d   :  { %4646 = shalt.err (!%p4643_p1)
}
 0xd1e   :  { %3491 = dma.vmem_to_hbm [thread:$0]  %s3486_s25, 2048, %s6188_s6, [#allocation4], %s4667_s26, %s4667_s26, %s4668_s27  }
 0xd1f   :  { %4663 = dma.done.wait [#allocation4], 2048  }
 0xd20   :  { %4664 = vsyncadd [#allocation4], 4294965248 }
 0xd21   :  { %3495 = vsyncpa [#allocation3], 1 }
 0xd22   :  { %3496 = vsyncpa [#allocation8], 1 }
 0xd23   :  { %3497 = vsyncpa [#allocation11], 1 }
 0xd24   :  { %3498 = vsyncpa [#allocation4], 1 }
 0xd25   :  { %3499 = vsyncpa [#allocation5], 1 }

</bundles_post_ra>
